<compile_context>
chip_gen: v6e
topology: v6e:2x2x1
jax: 0.10.0
libtpu: 0.0.40
codegen_flags: <defaults>
</compile_context>

<pallas_src>
import jax
import jax.numpy as jnp
from jax.experimental import pallas as pl
from jax.experimental.pallas import tpu as pltpu

_LANE = 128


def _round_up(x, m):
    return ((x + m - 1) // m) * m


def _fold_bn(gamma, beta, running_mean, running_var, eps=1e-5):
    scale = gamma.astype(jnp.float32) / jnp.sqrt(
        running_var.astype(jnp.float32) + eps)
    shift = beta.astype(jnp.float32) - running_mean.astype(jnp.float32) * scale
    return scale, shift


def _prep_weights(w_hwio, bn_scale, cin, cout, cp, coutp):
    # Fold BN scale into the conv weights (conv(x,w)*s + b == conv(x, w*s) + b),
    # zero-pad channels to the lane-padded sizes, tap-major layout, bf16.
    w = w_hwio.astype(jnp.float32) * bn_scale[None, None, None, :]
    wp = jnp.zeros((3, 3, cp, coutp), jnp.float32).at[:, :, :cin, :cout].set(w)
    return wp.reshape(9, cp, coutp).astype(jnp.bfloat16)   # (9, Cp, Coutp)


def _prep_bias(bn_shift, cout, coutp):
    return jnp.zeros((1, coutp), jnp.float32).at[0, :cout].set(
        bn_shift.astype(jnp.float32))


def _vmem_limit_bytes(h, w, cp):
    act = h * w * cp
    est = (2 * act * 2                       # double-buffered bf16 input blocks
           + 2 * act * 4                     # double-buffered f32 output blocks
           + 2 * 2 * 9 * cp * cp * 2         # two bf16 weight tensors, 2 buffers
           + (h + 2) * (w + 2) * cp * 4      # padded f32 scratch
           + 4 * act * 4)                    # live f32 temps (acc / y1 / slabs)
    return int(min(max(2 * est, 32 * 1024 * 1024), 64 * 1024 * 1024))


# ---------------------------------------------------------------------------
# Fused kernel: conv3x3+bn1+relu -> conv3x3+bn2 + residual + relu  (one image)
# ---------------------------------------------------------------------------
def _make_basic_block_kernel(h, w, cp):
    def kernel(x_ref, w1_ref, b1_ref, w2_ref, b2_ref, o_ref, xpad_ref):
        # x_ref   : (1, H, W, Cp)  bf16 input block (channel lanes padded)
        # w1/w2   : (9, Cp, Cp)    bf16, BN scale folded in, tap-major
        # b1/b2   : (1, Cp)        f32 folded BN shift
        # o_ref   : (1, H, W, Cp)  f32 output block
        # xpad_ref: (H+2, W+2, Cp) f32 scratch holding the spatially padded
        #           conv input (reused for conv1 and conv2).

        def conv3x3(w_ref):
            # 9 accumulating MXU matmuls, K = Cp each, f32 accumulation.
            acc = jnp.zeros((h * w, cp), jnp.float32)
            for t in range(9):
                kh, kw = divmod(t, 3)
                slab = xpad_ref[kh:kh + h, kw:kw + w, :]          # f32 (H,W,Cp)
                slab = slab.reshape(h * w, cp).astype(jnp.bfloat16)
                acc = acc + jnp.dot(slab, w_ref[t],
                                    preferred_element_type=jnp.float32)
            return acc

        # Zero the scratch every grid step (border must be zero; interior is
        # overwritten below).  Cheap VMEM store; safe under megacore sharding.
        xpad_ref[...] = jnp.zeros_like(xpad_ref)

        # ---- conv1 + bn1 + relu (stays on-chip) ----
        xpad_ref[1:h + 1, 1:w + 1, :] = x_ref[0].astype(jnp.float32)
        y = jnp.maximum(conv3x3(w1_ref) + b1_ref[...], 0.0)

        # ---- conv2 + bn2 + residual + relu ----
        xpad_ref[1:h + 1, 1:w + 1, :] = y.reshape(h, w, cp)
        y = conv3x3(w2_ref) + b2_ref[...]
        y = y + x_ref[0].astype(jnp.float32).reshape(h * w, cp)   # identity shortcut
        y = jnp.maximum(y, 0.0)
        o_ref[...] = y.reshape(1, h, w, cp).astype(o_ref.dtype)

    return kernel


# ---------------------------------------------------------------------------
# BasicBlock forward (stride=1, downsample=None), NCHW in / NCHW out
# ---------------------------------------------------------------------------
def basic_block_forward(x_nchw, params, eps=1e-5):
    n, c, h, w = x_nchw.shape
    cp = _round_up(c, _LANE)

    # NCHW -> NHWC, cast to bf16, pad channel lanes (one fused host copy).
    # Spatial pad=1 is handled in-kernel.
    x = jnp.transpose(x_nchw, (0, 2, 3, 1)).astype(jnp.bfloat16)
    x = jnp.pad(x, ((0, 0), (0, 0), (0, 0), (0, cp - c)))

    s1, b1 = _fold_bn(*params["bn1"], eps)
    s2, b2 = _fold_bn(*params["bn2"], eps)
    w1 = _prep_weights(params["w1"], s1, c, c, cp, cp)
    w2 = _prep_weights(params["w2"], s2, c, c, cp, cp)
    b1p = _prep_bias(b1, c, cp)
    b2p = _prep_bias(b2, c, cp)

    out = pl.pallas_call(
        _make_basic_block_kernel(h, w, cp),
        out_shape=jax.ShapeDtypeStruct((n, h, w, cp), x_nchw.dtype),
        grid=(n,),
        in_specs=[
            pl.BlockSpec((1, h, w, cp), lambda i: (i, 0, 0, 0)),
            pl.BlockSpec((9, cp, cp), lambda i: (0, 0, 0)),   # grid-invariant
            pl.BlockSpec((1, cp), lambda i: (0, 0)),
            pl.BlockSpec((9, cp, cp), lambda i: (0, 0, 0)),   # grid-invariant
            pl.BlockSpec((1, cp), lambda i: (0, 0)),
        ],
        out_specs=pl.BlockSpec((1, h, w, cp), lambda i: (i, 0, 0, 0)),
        scratch_shapes=[pltpu.VMEM((h + 2, w + 2, cp), jnp.float32)],
        compiler_params=pltpu.CompilerParams(
            dimension_semantics=("parallel",),
            vmem_limit_bytes=_vmem_limit_bytes(h, w, cp)),
    )(x, w1, b1p, w2, b2p)

    out = out[..., :c]                                  # drop channel padding
    return jnp.transpose(out, (0, 3, 1, 2))             # back to NCHW


# ---------------------------------------------------------------------------
# Pure-JAX reference matching the kernel's precision (bf16 in, f32 accumulate)
# ---------------------------------------------------------------------------
def _ref_forward(x_nchw, params, eps=1e-5):
    def conv(x, w):
        return jax.lax.conv_general_dilated(
            x, w, window_strides=(1, 1), padding=((1, 1), (1, 1)),
            dimension_numbers=("NHWC", "HWIO", "NHWC"))

    def bf16_round(a):
        return a.astype(jnp.bfloat16).astype(jnp.float32)

    x = bf16_round(jnp.transpose(x_nchw, (0, 2, 3, 1)))
    s1, b1 = _fold_bn(*params["bn1"], eps)
    s2, b2 = _fold_bn(*params["bn2"], eps)
    w1 = bf16_round(params["w1"].astype(jnp.float32) * s1[None, None, None, :])
    w2 = bf16_round(params["w2"].astype(jnp.float32) * s2[None, None, None, :])
    o = jnp.maximum(conv(x, w1) + b1, 0.0)
    o = bf16_round(o)                       # conv2 consumes bf16 slabs in-kernel
    o = jnp.maximum(conv(o, w2) + b2 + x, 0.0)
    return jnp.transpose(o, (0, 3, 1, 2))


if __name__ == "__main__":
    # BasicBlock(inplanes=4, planes=4, stride=1, downsample=None)
    N, C, H, W = 2, 4, 16, 16
    key = jax.random.PRNGKey(0)
    k = jax.random.split(key, 11)

    x = jax.random.normal(k[0], (N, C, H, W), dtype=jnp.float32)

    params = {
        "w1": jax.random.normal(k[1], (3, 3, C, C), jnp.float32) * 0.1,
        "w2": jax.random.normal(k[2], (3, 3, C, C), jnp.float32) * 0.1,
        "bn1": (
            1.0 + 0.1 * jax.random.normal(k[3], (C,), jnp.float32),   # gamma
            0.1 * jax.random.normal(k[4], (C,), jnp.float32),         # beta
            0.1 * jax.random.normal(k[5], (C,), jnp.float32),         # running_mean
            0.5 + jax.random.uniform(k[6], (C,), jnp.float32),        # running_var
        ),
        "bn2": (
            1.0 + 0.1 * jax.random.normal(k[7], (C,), jnp.float32),
            0.1 * jax.random.normal(k[8], (C,), jnp.float32),
            0.1 * jax.random.normal(k[9], (C,), jnp.float32),
            0.5 + jax.random.uniform(k[10], (C,), jnp.float32),
        ),
    }

    fwd = jax.jit(basic_block_forward)
    out = jax.block_until_ready(fwd(x, params))
    ref = jax.block_until_ready(_ref_forward(x, params))

    assert out.shape == (N, C, H, W), out.shape
    assert jnp.allclose(out, ref, atol=2e-3, rtol=2e-3), (
        float(jnp.max(jnp.abs(out - ref)))
    )
    print("KERNEL_OK")
</pallas_src>

<mosaic_0001>
module attributes {stable_mosaic.version = 11 : i64} {
  func.func @kernel(%arg0: i32, %arg1: memref<1x16x16x128xbf16, #tpu.memory_space<vmem>>, %arg2: memref<9x128x128xbf16, #tpu.memory_space<vmem>>, %arg3: memref<1x128xf32, #tpu.memory_space<vmem>>, %arg4: memref<9x128x128xbf16, #tpu.memory_space<vmem>>, %arg5: memref<1x128xf32, #tpu.memory_space<vmem>>, %arg6: memref<1x16x16x128xf32, #tpu.memory_space<vmem>>, %arg7: memref<18x18x128xf32, #tpu.memory_space<vmem>>) attributes {dimension_semantics = [#tpu.dimension_semantics<parallel>], iteration_bounds = array<i64: 2>, scalar_prefetch = 0 : i64, scratch_operands = 1 : i64, tpu.core_type = #tpu.core_type<tc>, window_params = [{transform_indices = @transform_0, window_bounds = array<i64: 1, 16, 16, 128>}, {pipeline_mode = #tpu.pipeline_mode<synchronous>, transform_indices = @transform_1, window_bounds = array<i64: 9, 128, 128>}, {pipeline_mode = #tpu.pipeline_mode<synchronous>, transform_indices = @transform_2, window_bounds = array<i64: 1, 128>}, {pipeline_mode = #tpu.pipeline_mode<synchronous>, transform_indices = @transform_3, window_bounds = array<i64: 9, 128, 128>}, {pipeline_mode = #tpu.pipeline_mode<synchronous>, transform_indices = @transform_4, window_bounds = array<i64: 1, 128>}, {transform_indices = @transform_5, window_bounds = array<i64: 1, 16, 16, 128>}]} {
    %cst = arith.constant 0.000000e+00 : f32
    %0 = vector.broadcast %cst : f32 to vector<18x18x128xf32>
    %c0 = arith.constant 0 : index
    %c0_0 = arith.constant 0 : index
    %c0_1 = arith.constant 0 : index
    %1 = vector.load %arg7[%c0, %c0_0, %c0_1] : memref<18x18x128xf32, #tpu.memory_space<vmem>>, vector<18x18x128xf32>
    tpu.vector_store %arg7[%c0, %c0_0, %c0_1], %0 {strides = array<i32>} : memref<18x18x128xf32, #tpu.memory_space<vmem>>, vector<18x18x128xf32>,
    %c0_2 = arith.constant 0 : index
    %c0_3 = arith.constant 0 : index
    %c0_4 = arith.constant 0 : index
    %c0_5 = arith.constant 0 : index
    %2 = vector.load %arg1[%c0_2, %c0_3, %c0_4, %c0_5] : memref<1x16x16x128xbf16, #tpu.memory_space<vmem>>, vector<1x16x16x128xbf16>
    %3 = vector.shape_cast %2 : vector<1x16x16x128xbf16> to vector<16x16x128xbf16>
    %4 = arith.extf %3 : vector<16x16x128xbf16> to vector<16x16x128xf32>
    %c1 = arith.constant 1 : index
    %c1_6 = arith.constant 1 : index
    %c0_7 = arith.constant 0 : index
    %5 = vector.load %arg7[%c1, %c1_6, %c0_7] : memref<18x18x128xf32, #tpu.memory_space<vmem>>, vector<16x16x128xf32>
    tpu.vector_store %arg7[%c1, %c1_6, %c0_7], %4 {strides = array<i32>} : memref<18x18x128xf32, #tpu.memory_space<vmem>>, vector<16x16x128xf32>,
    %cst_8 = arith.constant 0.000000e+00 : f32
    %6 = vector.broadcast %cst_8 : f32 to vector<256x128xf32>
    %c0_9 = arith.constant 0 : index
    %c0_10 = arith.constant 0 : index
    %c0_11 = arith.constant 0 : index
    %7 = vector.load %arg7[%c0_9, %c0_10, %c0_11] : memref<18x18x128xf32, #tpu.memory_space<vmem>>, vector<16x16x128xf32>
    %8 = vector.shape_cast %7 : vector<16x16x128xf32> to vector<256x128xf32>
    %9 = arith.truncf %8 : vector<256x128xf32> to vector<256x128xbf16>
    %c0_12 = arith.constant 0 : index
    %c0_13 = arith.constant 0 : index
    %c0_14 = arith.constant 0 : index
    %10 = vector.load %arg2[%c0_12, %c0_13, %c0_14] : memref<9x128x128xbf16, #tpu.memory_space<vmem>>, vector<1x128x128xbf16>
    %11 = vector.shape_cast %10 : vector<1x128x128xbf16> to vector<128x128xbf16>
    %cst_15 = arith.constant dense<0.000000e+00> : vector<256x128xf32>
    %12 = tpu.matmul %9, %11, %cst_15 {dimension_numbers = #tpu.dot_dimension_numbers<[1], [0], [0], [1], [0, 0, 1, 1], [], []>} : vector<256x128xbf16>, vector<128x128xbf16>, vector<256x128xf32> -> vector<256x128xf32>
    %13 = arith.addf %6, %12 : vector<256x128xf32>
    %c0_16 = arith.constant 0 : index
    %c1_17 = arith.constant 1 : index
    %c0_18 = arith.constant 0 : index
    %14 = vector.load %arg7[%c0_16, %c1_17, %c0_18] : memref<18x18x128xf32, #tpu.memory_space<vmem>>, vector<16x16x128xf32>
    %15 = vector.shape_cast %14 : vector<16x16x128xf32> to vector<256x128xf32>
    %16 = arith.truncf %15 : vector<256x128xf32> to vector<256x128xbf16>
    %c1_19 = arith.constant 1 : index
    %c0_20 = arith.constant 0 : index
    %c0_21 = arith.constant 0 : index
    %17 = vector.load %arg2[%c1_19, %c0_20, %c0_21] : memref<9x128x128xbf16, #tpu.memory_space<vmem>>, vector<1x128x128xbf16>
    %18 = vector.shape_cast %17 : vector<1x128x128xbf16> to vector<128x128xbf16>
    %cst_22 = arith.constant dense<0.000000e+00> : vector<256x128xf32>
    %19 = tpu.matmul %16, %18, %cst_22 {dimension_numbers = #tpu.dot_dimension_numbers<[1], [0], [0], [1], [0, 0, 1, 1], [], []>} : vector<256x128xbf16>, vector<128x128xbf16>, vector<256x128xf32> -> vector<256x128xf32>
    %20 = arith.addf %13, %19 : vector<256x128xf32>
    %c0_23 = arith.constant 0 : index
    %c2 = arith.constant 2 : index
    %c0_24 = arith.constant 0 : index
    %21 = vector.load %arg7[%c0_23, %c2, %c0_24] : memref<18x18x128xf32, #tpu.memory_space<vmem>>, vector<16x16x128xf32>
    %22 = vector.shape_cast %21 : vector<16x16x128xf32> to vector<256x128xf32>
    %23 = arith.truncf %22 : vector<256x128xf32> to vector<256x128xbf16>
    %c2_25 = arith.constant 2 : index
    %c0_26 = arith.constant 0 : index
    %c0_27 = arith.constant 0 : index
    %24 = vector.load %arg2[%c2_25, %c0_26, %c0_27] : memref<9x128x128xbf16, #tpu.memory_space<vmem>>, vector<1x128x128xbf16>
    %25 = vector.shape_cast %24 : vector<1x128x128xbf16> to vector<128x128xbf16>
    %cst_28 = arith.constant dense<0.000000e+00> : vector<256x128xf32>
    %26 = tpu.matmul %23, %25, %cst_28 {dimension_numbers = #tpu.dot_dimension_numbers<[1], [0], [0], [1], [0, 0, 1, 1], [], []>} : vector<256x128xbf16>, vector<128x128xbf16>, vector<256x128xf32> -> vector<256x128xf32>
    %27 = arith.addf %20, %26 : vector<256x128xf32>
    %c1_29 = arith.constant 1 : index
    %c0_30 = arith.constant 0 : index
    %c0_31 = arith.constant 0 : index
    %28 = vector.load %arg7[%c1_29, %c0_30, %c0_31] : memref<18x18x128xf32, #tpu.memory_space<vmem>>, vector<16x16x128xf32>
    %29 = vector.shape_cast %28 : vector<16x16x128xf32> to vector<256x128xf32>
    %30 = arith.truncf %29 : vector<256x128xf32> to vector<256x128xbf16>
    %c3 = arith.constant 3 : index
    %c0_32 = arith.constant 0 : index
    %c0_33 = arith.constant 0 : index
    %31 = vector.load %arg2[%c3, %c0_32, %c0_33] : memref<9x128x128xbf16, #tpu.memory_space<vmem>>, vector<1x128x128xbf16>
    %32 = vector.shape_cast %31 : vector<1x128x128xbf16> to vector<128x128xbf16>
    %cst_34 = arith.constant dense<0.000000e+00> : vector<256x128xf32>
    %33 = tpu.matmul %30, %32, %cst_34 {dimension_numbers = #tpu.dot_dimension_numbers<[1], [0], [0], [1], [0, 0, 1, 1], [], []>} : vector<256x128xbf16>, vector<128x128xbf16>, vector<256x128xf32> -> vector<256x128xf32>
    %34 = arith.addf %27, %33 : vector<256x128xf32>
    %c1_35 = arith.constant 1 : index
    %c1_36 = arith.constant 1 : index
    %c0_37 = arith.constant 0 : index
    %35 = vector.load %arg7[%c1_35, %c1_36, %c0_37] : memref<18x18x128xf32, #tpu.memory_space<vmem>>, vector<16x16x128xf32>
    %36 = vector.shape_cast %35 : vector<16x16x128xf32> to vector<256x128xf32>
    %37 = arith.truncf %36 : vector<256x128xf32> to vector<256x128xbf16>
    %c4 = arith.constant 4 : index
    %c0_38 = arith.constant 0 : index
    %c0_39 = arith.constant 0 : index
    %38 = vector.load %arg2[%c4, %c0_38, %c0_39] : memref<9x128x128xbf16, #tpu.memory_space<vmem>>, vector<1x128x128xbf16>
    %39 = vector.shape_cast %38 : vector<1x128x128xbf16> to vector<128x128xbf16>
    %cst_40 = arith.constant dense<0.000000e+00> : vector<256x128xf32>
    %40 = tpu.matmul %37, %39, %cst_40 {dimension_numbers = #tpu.dot_dimension_numbers<[1], [0], [0], [1], [0, 0, 1, 1], [], []>} : vector<256x128xbf16>, vector<128x128xbf16>, vector<256x128xf32> -> vector<256x128xf32>
    %41 = arith.addf %34, %40 : vector<256x128xf32>
    %c1_41 = arith.constant 1 : index
    %c2_42 = arith.constant 2 : index
    %c0_43 = arith.constant 0 : index
    %42 = vector.load %arg7[%c1_41, %c2_42, %c0_43] : memref<18x18x128xf32, #tpu.memory_space<vmem>>, vector<16x16x128xf32>
    %43 = vector.shape_cast %42 : vector<16x16x128xf32> to vector<256x128xf32>
    %44 = arith.truncf %43 : vector<256x128xf32> to vector<256x128xbf16>
    %c5 = arith.constant 5 : index
    %c0_44 = arith.constant 0 : index
    %c0_45 = arith.constant 0 : index
    %45 = vector.load %arg2[%c5, %c0_44, %c0_45] : memref<9x128x128xbf16, #tpu.memory_space<vmem>>, vector<1x128x128xbf16>
    %46 = vector.shape_cast %45 : vector<1x128x128xbf16> to vector<128x128xbf16>
    %cst_46 = arith.constant dense<0.000000e+00> : vector<256x128xf32>
    %47 = tpu.matmul %44, %46, %cst_46 {dimension_numbers = #tpu.dot_dimension_numbers<[1], [0], [0], [1], [0, 0, 1, 1], [], []>} : vector<256x128xbf16>, vector<128x128xbf16>, vector<256x128xf32> -> vector<256x128xf32>
    %48 = arith.addf %41, %47 : vector<256x128xf32>
    %c2_47 = arith.constant 2 : index
    %c0_48 = arith.constant 0 : index
    %c0_49 = arith.constant 0 : index
    %49 = vector.load %arg7[%c2_47, %c0_48, %c0_49] : memref<18x18x128xf32, #tpu.memory_space<vmem>>, vector<16x16x128xf32>
    %50 = vector.shape_cast %49 : vector<16x16x128xf32> to vector<256x128xf32>
    %51 = arith.truncf %50 : vector<256x128xf32> to vector<256x128xbf16>
    %c6 = arith.constant 6 : index
    %c0_50 = arith.constant 0 : index
    %c0_51 = arith.constant 0 : index
    %52 = vector.load %arg2[%c6, %c0_50, %c0_51] : memref<9x128x128xbf16, #tpu.memory_space<vmem>>, vector<1x128x128xbf16>
    %53 = vector.shape_cast %52 : vector<1x128x128xbf16> to vector<128x128xbf16>
    %cst_52 = arith.constant dense<0.000000e+00> : vector<256x128xf32>
    %54 = tpu.matmul %51, %53, %cst_52 {dimension_numbers = #tpu.dot_dimension_numbers<[1], [0], [0], [1], [0, 0, 1, 1], [], []>} : vector<256x128xbf16>, vector<128x128xbf16>, vector<256x128xf32> -> vector<256x128xf32>
    %55 = arith.addf %48, %54 : vector<256x128xf32>
    %c2_53 = arith.constant 2 : index
    %c1_54 = arith.constant 1 : index
    %c0_55 = arith.constant 0 : index
    %56 = vector.load %arg7[%c2_53, %c1_54, %c0_55] : memref<18x18x128xf32, #tpu.memory_space<vmem>>, vector<16x16x128xf32>
    %57 = vector.shape_cast %56 : vector<16x16x128xf32> to vector<256x128xf32>
    %58 = arith.truncf %57 : vector<256x128xf32> to vector<256x128xbf16>
    %c7 = arith.constant 7 : index
    %c0_56 = arith.constant 0 : index
    %c0_57 = arith.constant 0 : index
    %59 = vector.load %arg2[%c7, %c0_56, %c0_57] : memref<9x128x128xbf16, #tpu.memory_space<vmem>>, vector<1x128x128xbf16>
    %60 = vector.shape_cast %59 : vector<1x128x128xbf16> to vector<128x128xbf16>
    %cst_58 = arith.constant dense<0.000000e+00> : vector<256x128xf32>
    %61 = tpu.matmul %58, %60, %cst_58 {dimension_numbers = #tpu.dot_dimension_numbers<[1], [0], [0], [1], [0, 0, 1, 1], [], []>} : vector<256x128xbf16>, vector<128x128xbf16>, vector<256x128xf32> -> vector<256x128xf32>
    %62 = arith.addf %55, %61 : vector<256x128xf32>
    %c2_59 = arith.constant 2 : index
    %c2_60 = arith.constant 2 : index
    %c0_61 = arith.constant 0 : index
    %63 = vector.load %arg7[%c2_59, %c2_60, %c0_61] : memref<18x18x128xf32, #tpu.memory_space<vmem>>, vector<16x16x128xf32>
    %64 = vector.shape_cast %63 : vector<16x16x128xf32> to vector<256x128xf32>
    %65 = arith.truncf %64 : vector<256x128xf32> to vector<256x128xbf16>
    %c8 = arith.constant 8 : index
    %c0_62 = arith.constant 0 : index
    %c0_63 = arith.constant 0 : index
    %66 = vector.load %arg2[%c8, %c0_62, %c0_63] : memref<9x128x128xbf16, #tpu.memory_space<vmem>>, vector<1x128x128xbf16>
    %67 = vector.shape_cast %66 : vector<1x128x128xbf16> to vector<128x128xbf16>
    %cst_64 = arith.constant dense<0.000000e+00> : vector<256x128xf32>
    %68 = tpu.matmul %65, %67, %cst_64 {dimension_numbers = #tpu.dot_dimension_numbers<[1], [0], [0], [1], [0, 0, 1, 1], [], []>} : vector<256x128xbf16>, vector<128x128xbf16>, vector<256x128xf32> -> vector<256x128xf32>
    %69 = arith.addf %62, %68 : vector<256x128xf32>
    %c0_65 = arith.constant 0 : index
    %c0_66 = arith.constant 0 : index
    %70 = vector.load %arg3[%c0_65, %c0_66] : memref<1x128xf32, #tpu.memory_space<vmem>>, vector<1x128xf32>
    %71 = vector.broadcast %70 : vector<1x128xf32> to vector<256x128xf32>
    %72 = arith.addf %69, %71 : vector<256x128xf32>
    %cst_67 = arith.constant 0.000000e+00 : f32
    %73 = vector.broadcast %cst_67 : f32 to vector<256x128xf32>
    %74 = arith.maximumf %72, %73 : vector<256x128xf32>
    %75 = vector.shape_cast %74 : vector<256x128xf32> to vector<16x16x128xf32>
    %c1_68 = arith.constant 1 : index
    %c1_69 = arith.constant 1 : index
    %c0_70 = arith.constant 0 : index
    %76 = vector.load %arg7[%c1_68, %c1_69, %c0_70] : memref<18x18x128xf32, #tpu.memory_space<vmem>>, vector<16x16x128xf32>
    tpu.vector_store %arg7[%c1_68, %c1_69, %c0_70], %75 {strides = array<i32>} : memref<18x18x128xf32, #tpu.memory_space<vmem>>, vector<16x16x128xf32>,
    %cst_71 = arith.constant 0.000000e+00 : f32
    %77 = vector.broadcast %cst_71 : f32 to vector<256x128xf32>
    %c0_72 = arith.constant 0 : index
    %c0_73 = arith.constant 0 : index
    %c0_74 = arith.constant 0 : index
    %78 = vector.load %arg7[%c0_72, %c0_73, %c0_74] : memref<18x18x128xf32, #tpu.memory_space<vmem>>, vector<16x16x128xf32>
    %79 = vector.shape_cast %78 : vector<16x16x128xf32> to vector<256x128xf32>
    %80 = arith.truncf %79 : vector<256x128xf32> to vector<256x128xbf16>
    %c0_75 = arith.constant 0 : index
    %c0_76 = arith.constant 0 : index
    %c0_77 = arith.constant 0 : index
    %81 = vector.load %arg4[%c0_75, %c0_76, %c0_77] : memref<9x128x128xbf16, #tpu.memory_space<vmem>>, vector<1x128x128xbf16>
    %82 = vector.shape_cast %81 : vector<1x128x128xbf16> to vector<128x128xbf16>
    %cst_78 = arith.constant dense<0.000000e+00> : vector<256x128xf32>
    %83 = tpu.matmul %80, %82, %cst_78 {dimension_numbers = #tpu.dot_dimension_numbers<[1], [0], [0], [1], [0, 0, 1, 1], [], []>} : vector<256x128xbf16>, vector<128x128xbf16>, vector<256x128xf32> -> vector<256x128xf32>
    %84 = arith.addf %77, %83 : vector<256x128xf32>
    %c0_79 = arith.constant 0 : index
    %c1_80 = arith.constant 1 : index
    %c0_81 = arith.constant 0 : index
    %85 = vector.load %arg7[%c0_79, %c1_80, %c0_81] : memref<18x18x128xf32, #tpu.memory_space<vmem>>, vector<16x16x128xf32>
    %86 = vector.shape_cast %85 : vector<16x16x128xf32> to vector<256x128xf32>
    %87 = arith.truncf %86 : vector<256x128xf32> to vector<256x128xbf16>
    %c1_82 = arith.constant 1 : index
    %c0_83 = arith.constant 0 : index
    %c0_84 = arith.constant 0 : index
    %88 = vector.load %arg4[%c1_82, %c0_83, %c0_84] : memref<9x128x128xbf16, #tpu.memory_space<vmem>>, vector<1x128x128xbf16>
    %89 = vector.shape_cast %88 : vector<1x128x128xbf16> to vector<128x128xbf16>
    %cst_85 = arith.constant dense<0.000000e+00> : vector<256x128xf32>
    %90 = tpu.matmul %87, %89, %cst_85 {dimension_numbers = #tpu.dot_dimension_numbers<[1], [0], [0], [1], [0, 0, 1, 1], [], []>} : vector<256x128xbf16>, vector<128x128xbf16>, vector<256x128xf32> -> vector<256x128xf32>
    %91 = arith.addf %84, %90 : vector<256x128xf32>
    %c0_86 = arith.constant 0 : index
    %c2_87 = arith.constant 2 : index
    %c0_88 = arith.constant 0 : index
    %92 = vector.load %arg7[%c0_86, %c2_87, %c0_88] : memref<18x18x128xf32, #tpu.memory_space<vmem>>, vector<16x16x128xf32>
    %93 = vector.shape_cast %92 : vector<16x16x128xf32> to vector<256x128xf32>
    %94 = arith.truncf %93 : vector<256x128xf32> to vector<256x128xbf16>
    %c2_89 = arith.constant 2 : index
    %c0_90 = arith.constant 0 : index
    %c0_91 = arith.constant 0 : index
    %95 = vector.load %arg4[%c2_89, %c0_90, %c0_91] : memref<9x128x128xbf16, #tpu.memory_space<vmem>>, vector<1x128x128xbf16>
    %96 = vector.shape_cast %95 : vector<1x128x128xbf16> to vector<128x128xbf16>
    %cst_92 = arith.constant dense<0.000000e+00> : vector<256x128xf32>
    %97 = tpu.matmul %94, %96, %cst_92 {dimension_numbers = #tpu.dot_dimension_numbers<[1], [0], [0], [1], [0, 0, 1, 1], [], []>} : vector<256x128xbf16>, vector<128x128xbf16>, vector<256x128xf32> -> vector<256x128xf32>
    %98 = arith.addf %91, %97 : vector<256x128xf32>
    %c1_93 = arith.constant 1 : index
    %c0_94 = arith.constant 0 : index
    %c0_95 = arith.constant 0 : index
    %99 = vector.load %arg7[%c1_93, %c0_94, %c0_95] : memref<18x18x128xf32, #tpu.memory_space<vmem>>, vector<16x16x128xf32>
    %100 = vector.shape_cast %99 : vector<16x16x128xf32> to vector<256x128xf32>
    %101 = arith.truncf %100 : vector<256x128xf32> to vector<256x128xbf16>
    %c3_96 = arith.constant 3 : index
    %c0_97 = arith.constant 0 : index
    %c0_98 = arith.constant 0 : index
    %102 = vector.load %arg4[%c3_96, %c0_97, %c0_98] : memref<9x128x128xbf16, #tpu.memory_space<vmem>>, vector<1x128x128xbf16>
    %103 = vector.shape_cast %102 : vector<1x128x128xbf16> to vector<128x128xbf16>
    %cst_99 = arith.constant dense<0.000000e+00> : vector<256x128xf32>
    %104 = tpu.matmul %101, %103, %cst_99 {dimension_numbers = #tpu.dot_dimension_numbers<[1], [0], [0], [1], [0, 0, 1, 1], [], []>} : vector<256x128xbf16>, vector<128x128xbf16>, vector<256x128xf32> -> vector<256x128xf32>
    %105 = arith.addf %98, %104 : vector<256x128xf32>
    %c1_100 = arith.constant 1 : index
    %c1_101 = arith.constant 1 : index
    %c0_102 = arith.constant 0 : index
    %106 = vector.load %arg7[%c1_100, %c1_101, %c0_102] : memref<18x18x128xf32, #tpu.memory_space<vmem>>, vector<16x16x128xf32>
    %107 = vector.shape_cast %106 : vector<16x16x128xf32> to vector<256x128xf32>
    %108 = arith.truncf %107 : vector<256x128xf32> to vector<256x128xbf16>
    %c4_103 = arith.constant 4 : index
    %c0_104 = arith.constant 0 : index
    %c0_105 = arith.constant 0 : index
    %109 = vector.load %arg4[%c4_103, %c0_104, %c0_105] : memref<9x128x128xbf16, #tpu.memory_space<vmem>>, vector<1x128x128xbf16>
    %110 = vector.shape_cast %109 : vector<1x128x128xbf16> to vector<128x128xbf16>
    %cst_106 = arith.constant dense<0.000000e+00> : vector<256x128xf32>
    %111 = tpu.matmul %108, %110, %cst_106 {dimension_numbers = #tpu.dot_dimension_numbers<[1], [0], [0], [1], [0, 0, 1, 1], [], []>} : vector<256x128xbf16>, vector<128x128xbf16>, vector<256x128xf32> -> vector<256x128xf32>
    %112 = arith.addf %105, %111 : vector<256x128xf32>
    %c1_107 = arith.constant 1 : index
    %c2_108 = arith.constant 2 : index
    %c0_109 = arith.constant 0 : index
    %113 = vector.load %arg7[%c1_107, %c2_108, %c0_109] : memref<18x18x128xf32, #tpu.memory_space<vmem>>, vector<16x16x128xf32>
    %114 = vector.shape_cast %113 : vector<16x16x128xf32> to vector<256x128xf32>
    %115 = arith.truncf %114 : vector<256x128xf32> to vector<256x128xbf16>
    %c5_110 = arith.constant 5 : index
    %c0_111 = arith.constant 0 : index
    %c0_112 = arith.constant 0 : index
    %116 = vector.load %arg4[%c5_110, %c0_111, %c0_112] : memref<9x128x128xbf16, #tpu.memory_space<vmem>>, vector<1x128x128xbf16>
    %117 = vector.shape_cast %116 : vector<1x128x128xbf16> to vector<128x128xbf16>
    %cst_113 = arith.constant dense<0.000000e+00> : vector<256x128xf32>
    %118 = tpu.matmul %115, %117, %cst_113 {dimension_numbers = #tpu.dot_dimension_numbers<[1], [0], [0], [1], [0, 0, 1, 1], [], []>} : vector<256x128xbf16>, vector<128x128xbf16>, vector<256x128xf32> -> vector<256x128xf32>
    %119 = arith.addf %112, %118 : vector<256x128xf32>
    %c2_114 = arith.constant 2 : index
    %c0_115 = arith.constant 0 : index
    %c0_116 = arith.constant 0 : index
    %120 = vector.load %arg7[%c2_114, %c0_115, %c0_116] : memref<18x18x128xf32, #tpu.memory_space<vmem>>, vector<16x16x128xf32>
    %121 = vector.shape_cast %120 : vector<16x16x128xf32> to vector<256x128xf32>
    %122 = arith.truncf %121 : vector<256x128xf32> to vector<256x128xbf16>
    %c6_117 = arith.constant 6 : index
    %c0_118 = arith.constant 0 : index
    %c0_119 = arith.constant 0 : index
    %123 = vector.load %arg4[%c6_117, %c0_118, %c0_119] : memref<9x128x128xbf16, #tpu.memory_space<vmem>>, vector<1x128x128xbf16>
    %124 = vector.shape_cast %123 : vector<1x128x128xbf16> to vector<128x128xbf16>
    %cst_120 = arith.constant dense<0.000000e+00> : vector<256x128xf32>
    %125 = tpu.matmul %122, %124, %cst_120 {dimension_numbers = #tpu.dot_dimension_numbers<[1], [0], [0], [1], [0, 0, 1, 1], [], []>} : vector<256x128xbf16>, vector<128x128xbf16>, vector<256x128xf32> -> vector<256x128xf32>
    %126 = arith.addf %119, %125 : vector<256x128xf32>
    %c2_121 = arith.constant 2 : index
    %c1_122 = arith.constant 1 : index
    %c0_123 = arith.constant 0 : index
    %127 = vector.load %arg7[%c2_121, %c1_122, %c0_123] : memref<18x18x128xf32, #tpu.memory_space<vmem>>, vector<16x16x128xf32>
    %128 = vector.shape_cast %127 : vector<16x16x128xf32> to vector<256x128xf32>
    %129 = arith.truncf %128 : vector<256x128xf32> to vector<256x128xbf16>
    %c7_124 = arith.constant 7 : index
    %c0_125 = arith.constant 0 : index
    %c0_126 = arith.constant 0 : index
    %130 = vector.load %arg4[%c7_124, %c0_125, %c0_126] : memref<9x128x128xbf16, #tpu.memory_space<vmem>>, vector<1x128x128xbf16>
    %131 = vector.shape_cast %130 : vector<1x128x128xbf16> to vector<128x128xbf16>
    %cst_127 = arith.constant dense<0.000000e+00> : vector<256x128xf32>
    %132 = tpu.matmul %129, %131, %cst_127 {dimension_numbers = #tpu.dot_dimension_numbers<[1], [0], [0], [1], [0, 0, 1, 1], [], []>} : vector<256x128xbf16>, vector<128x128xbf16>, vector<256x128xf32> -> vector<256x128xf32>
    %133 = arith.addf %126, %132 : vector<256x128xf32>
    %c2_128 = arith.constant 2 : index
    %c2_129 = arith.constant 2 : index
    %c0_130 = arith.constant 0 : index
    %134 = vector.load %arg7[%c2_128, %c2_129, %c0_130] : memref<18x18x128xf32, #tpu.memory_space<vmem>>, vector<16x16x128xf32>
    %135 = vector.shape_cast %134 : vector<16x16x128xf32> to vector<256x128xf32>
    %136 = arith.truncf %135 : vector<256x128xf32> to vector<256x128xbf16>
    %c8_131 = arith.constant 8 : index
    %c0_132 = arith.constant 0 : index
    %c0_133 = arith.constant 0 : index
    %137 = vector.load %arg4[%c8_131, %c0_132, %c0_133] : memref<9x128x128xbf16, #tpu.memory_space<vmem>>, vector<1x128x128xbf16>
    %138 = vector.shape_cast %137 : vector<1x128x128xbf16> to vector<128x128xbf16>
    %cst_134 = arith.constant dense<0.000000e+00> : vector<256x128xf32>
    %139 = tpu.matmul %136, %138, %cst_134 {dimension_numbers = #tpu.dot_dimension_numbers<[1], [0], [0], [1], [0, 0, 1, 1], [], []>} : vector<256x128xbf16>, vector<128x128xbf16>, vector<256x128xf32> -> vector<256x128xf32>
    %140 = arith.addf %133, %139 : vector<256x128xf32>
    %c0_135 = arith.constant 0 : index
    %c0_136 = arith.constant 0 : index
    %141 = vector.load %arg5[%c0_135, %c0_136] : memref<1x128xf32, #tpu.memory_space<vmem>>, vector<1x128xf32>
    %142 = vector.broadcast %141 : vector<1x128xf32> to vector<256x128xf32>
    %143 = arith.addf %140, %142 : vector<256x128xf32>
    %c0_137 = arith.constant 0 : index
    %c0_138 = arith.constant 0 : index
    %c0_139 = arith.constant 0 : index
    %c0_140 = arith.constant 0 : index
    %144 = vector.load %arg1[%c0_137, %c0_138, %c0_139, %c0_140] : memref<1x16x16x128xbf16, #tpu.memory_space<vmem>>, vector<1x16x16x128xbf16>
    %145 = vector.shape_cast %144 : vector<1x16x16x128xbf16> to vector<16x16x128xbf16>
    %146 = arith.extf %145 : vector<16x16x128xbf16> to vector<16x16x128xf32>
    %147 = vector.shape_cast %146 : vector<16x16x128xf32> to vector<256x128xf32>
    %148 = arith.addf %143, %147 : vector<256x128xf32>
    %cst_141 = arith.constant 0.000000e+00 : f32
    %149 = vector.broadcast %cst_141 : f32 to vector<256x128xf32>
    %150 = arith.maximumf %148, %149 : vector<256x128xf32>
    %151 = vector.shape_cast %150 : vector<256x128xf32> to vector<1x16x16x128xf32>
    %c0_142 = arith.constant 0 : index
    %c0_143 = arith.constant 0 : index
    %c0_144 = arith.constant 0 : index
    %c0_145 = arith.constant 0 : index
    %152 = vector.load %arg6[%c0_142, %c0_143, %c0_144, %c0_145] : memref<1x16x16x128xf32, #tpu.memory_space<vmem>>, vector<1x16x16x128xf32>
    tpu.vector_store %arg6[%c0_142, %c0_143, %c0_144, %c0_145], %151 {strides = array<i32>} : memref<1x16x16x128xf32, #tpu.memory_space<vmem>>, vector<1x16x16x128xf32>,
    return
  }
  func.func @transform_0(%arg0: i32) -> (i32, i32, i32, i32) {
    %c0_i32 = arith.constant 0 : i32
    %c0_i32_0 = arith.constant 0 : i32
    %c0_i32_1 = arith.constant 0 : i32
    %c0_i32_2 = arith.constant 0 : i32
    return %arg0, %c0_i32, %c0_i32_0, %c0_i32_1 : i32, i32, i32, i32
  }
  func.func @transform_1(%arg0: i32) -> (i32, i32, i32) {
    %c0_i32 = arith.constant 0 : i32
    %c0_i32_0 = arith.constant 0 : i32
    %c0_i32_1 = arith.constant 0 : i32
    %c0_i32_2 = arith.constant 0 : i32
    return %c0_i32, %c0_i32_0, %c0_i32_1 : i32, i32, i32
  }
  func.func @transform_2(%arg0: i32) -> (i32, i32) {
    %c0_i32 = arith.constant 0 : i32
    %c0_i32_0 = arith.constant 0 : i32
    %c0_i32_1 = arith.constant 0 : i32
    return %c0_i32, %c0_i32_0 : i32, i32
  }
  func.func @transform_3(%arg0: i32) -> (i32, i32, i32) {
    %c0_i32 = arith.constant 0 : i32
    %c0_i32_0 = arith.constant 0 : i32
    %c0_i32_1 = arith.constant 0 : i32
    %c0_i32_2 = arith.constant 0 : i32
    return %c0_i32, %c0_i32_0, %c0_i32_1 : i32, i32, i32
  }
  func.func @transform_4(%arg0: i32) -> (i32, i32) {
    %c0_i32 = arith.constant 0 : i32
    %c0_i32_0 = arith.constant 0 : i32
    %c0_i32_1 = arith.constant 0 : i32
    return %c0_i32, %c0_i32_0 : i32, i32
  }
  func.func @transform_5(%arg0: i32) -> (i32, i32, i32, i32) {
    %c0_i32 = arith.constant 0 : i32
    %c0_i32_0 = arith.constant 0 : i32
    %c0_i32_1 = arith.constant 0 : i32
    %c0_i32_2 = arith.constant 0 : i32
    return %arg0, %c0_i32, %c0_i32_0, %c0_i32_1 : i32, i32, i32, i32
  }
}

</mosaic_0001>

<bundles_post_ra>
// kernel: basic_block_forward.1
= control target key start
LH: loop header
LB: loop body
LE: loop exit
PB: predicated region body
PF: predicated region fallthrough
CT: control target
= control target key end

     0   :  { %s8193_s18 = smov 0   ;;  %s10451_s0 = inlined_call_operand.vmem [shape: bf16[2,16,16,128], index: 0, kind: input, shape index: {}]   ;;  %s10452_s1 = inlined_call_operand.vmem [shape: bf16[9,128,128], index: 1, kind: input, shape index: {}]   ;;  %s10453_s2 = inlined_call_operand.vmem [shape: f32[1,128], index: 2, kind: input, shape index: {}]   ;;  %s10454_s3 = inlined_call_operand.vmem [shape: bf16[9,128,128], index: 3, kind: input, shape index: {}]   ;;  %s10455_s4 = inlined_call_operand.vmem [shape: f32[1,128], index: 4, kind: input, shape index: {}]   ;;  %s10456_s5 = inlined_call_operand.vmem [shape: f32[2,16,16,128], index: 5, kind: output, shape index: {}]  }
   0x1 LB: > { %s6113_s19 = sadd.s32 4294967295, %s8159_s18   ;;  %p6117_p0 = scmp.ge.s32.totalorder %s8159_s18, 1  ;;  %s8159_s18 = sphi %s8193_s18, %s15_s18  }
   0x2   : > { %p187_p1 = scmp.lt.s32.totalorder %s8159_s18, 3 }
   0x4   : > { %p188_p2 = pnand %p6117_p0, %p187_p1 }
   0x6   : > { %191 = sbr.rel (%p188_p2) target bundleno = 1029 (0x405), region = 40 }
   0xb   : > { %v7991_v0 = vld [vmem:[%s10452_s1 + $0x78] sm:$0xff]   ;;  %v8161_v2 = vmov 0.0   ;;  %v7993_v3 = vld [vmem:[%s10452_s1 + $0x70] sm:$0xff]   ;;  %p215_p3 = scmp.lt.s32.totalorder %s6113_s19, 1  ;;  %v7995_v5 = vld [vmem:[%s10452_s1 + $0x68] sm:$0xff]   ;;  %v8162_v7 = vmov 0.0|0.0  }
   0xc   : > { %v7992_v1 = vld [vmem:[%s10452_s1 + $0x38] sm:$0xff]   ;;  %226 = vst [vmem:[#allocation2] sm:$0xff] %v8161_v2  ;;  %227 = vst [vmem:[#allocation2 + $0x8] sm:$0xff] %v8161_v2  ;;  %7118 = vmatprep.subr.bf16.mxu0 %v7991_v0  ;;  %v7994_v4 = vld [vmem:[%s10452_s1 + $0x30] sm:$0xff]   ;;  %7182 = vmatprep.mubr.bf16.mxu1 %v8162_v7 }
   0xd   : > { %228 = vst [vmem:[#allocation2 + $0x10] sm:$0x3] %v8161_v2  ;;  %229 = vst [vmem:[#allocation2 + $0x18] sm:$0xff] %v8161_v2  ;;  %7166 = vmatprep.subr.bf16.mxu1 %v7992_v1  ;;  %7119 = vmatpush3.bf16.msra.mxu0 %v7991_v0  ;;  %v7996_v6 = vld [vmem:[%s10452_s1 + $0x28] sm:$0xff]   ;;  %s10742_s19 = smov (!%p215_p3, %s6113_s19), 1  ;;  %v7997_v8 = vld [vmem:[%s10452_s1 + $0x60] sm:$0xff]  }
   0xe   : > { %230 = vst [vmem:[#allocation2 + $0x20] sm:$0xff] %v8161_v2  ;;  %231 = vst [vmem:[#allocation2 + $0x28] sm:$0x3] %v8161_v2  ;;  %7167 = vmatpush3.bf16.msra.mxu1 %v7992_v1  ;;  %7120 = vmatprep.subr.bf16.mxu0 %v7993_v3  ;;  %v7998_v9 = vld [vmem:[%s10452_s1 + $0x20] sm:$0xff]   ;;  %s6526_s11 = sshll.u32 %s10742_s19, 7  ;;  %v7999_v10 = vld [vmem:[%s10452_s1 + $0x58] sm:$0xff]  }
   0xf   : > { %232 = vst [vmem:[#allocation2 + $0x30] sm:$0xff] %v8161_v2  ;;  %233 = vst [vmem:[#allocation2 + $0x38] sm:$0xff] %v8161_v2  ;;  %7168 = vmatprep.subr.bf16.mxu1 %v7994_v4  ;;  %v8000_v11 = vld [vmem:[%s10452_s1 + $0x18] sm:$0xff]   ;;  %s8241_s20 = scalar_lea.vmem %s10451_s0, %s6526_s11  ;;  %v8001_v12 = vld [vmem:[%s10452_s1 + $0x50] sm:$0xff]   ;;  %s6527_s29 = sshll.u32 %s10742_s19, 8 }
  0x10   : > { %234 = vst [vmem:[#allocation2 + $0x40] sm:$0x3] %v8161_v2  ;;  %235 = vst [vmem:[#allocation2 + $0x48] sm:$0xff] %v8161_v2  ;;  %v6529_v15 = vld [vmem:[%s8241_s20] sm:$0xff]   ;;  %v8002_v16 = vld [vmem:[%s10452_s1 + $0x10] sm:$0xff]   ;;  %s10211_s6 = scalar_lea.vmem %s10456_s5, %s6527_s29 }
  0x11   : > { %236 = vst [vmem:[#allocation2 + $0x50] sm:$0xff] %v8161_v2  ;;  %237 = vst [vmem:[#allocation2 + $0x58] sm:$0x3] %v8161_v2  ;;  %7121 = vmatpush3.bf16.msra.mxu0 %v7993_v3  ;;  %v6530_v18 = vunpack.c.l.bf16 %v6529_v15  ;;  %v6531_v19 = vunpack.c.h.bf16 %v6529_v15  ;;  %v6656_v20 = vld [vmem:[%s8241_s20 + $0x8] sm:$0xff]   ;;  %v6657_v23 = vld [vmem:[%s8241_s20 + $0x10] sm:$0xff]  }
  0x12   : > { %238 = vst [vmem:[#allocation2 + $0x60] sm:$0xff] %v8161_v2  ;;  %239 = vst [vmem:[#allocation2 + $0x68] sm:$0xff] %v8161_v2  ;;  %7169 = vmatpush3.bf16.msra.mxu1 %v7994_v4  ;;  %7122 = vmatprep.subr.bf16.mxu0 %v7995_v5  ;;  %v6534_v21 = vunpack.c.l.bf16 %v6656_v20  ;;  %v6535_v22 = vunpack.c.h.bf16 %v6656_v20  ;;  %v8003_v24 = vld [vmem:[%s10452_s1 + $0x48] sm:$0xff]   ;;  %v6538_v25 = vunpack.c.l.bf16 %v6657_v23  ;;  %v6539_v26 = vunpack.c.h.bf16 %v6657_v23  ;;  %v6658_v27 = vld [vmem:[%s8241_s20 + $0x18] sm:$0xff]  }
  0x13   : > { %240 = vst [vmem:[#allocation2 + $0x70] sm:$0x3] %v8161_v2  ;;  %241 = vst [vmem:[#allocation2 + $0x78] sm:$0xff] %v8161_v2  ;;  %7170 = vmatprep.subr.bf16.mxu1 %v7996_v6  ;;  %v441_v13 = vld [vmem:[#allocation2 + $0x1] sm:$0xff]  ;;  %v6542_v29 = vunpack.c.l.bf16 %v6658_v27  ;;  %v6543_v30 = vunpack.c.h.bf16 %v6658_v27  ;;  %v6661_v35 = vld [vmem:[%s8241_s20 + $0x30] sm:$0xff]  }
  0x14   : > { %242 = vst [vmem:[#allocation2 + $0x80] sm:$0xff] %v8161_v2  ;;  %243 = vst [vmem:[#allocation2 + $0x88] sm:$0x3] %v8161_v2  ;;  %v442_v14 = vld [vmem:[#allocation2 + $0x9] sm:$0xff]  ;;  %v6659_v31 = vld [vmem:[%s8241_s20 + $0x20] sm:$0xff]   ;;  %v6554_v39 = vunpack.c.l.bf16 %v6661_v35  ;;  %v6555_v40 = vunpack.c.h.bf16 %v6661_v35 }
  0x15   : > { %244 = vst [vmem:[#allocation2 + $0x90] sm:$0xff] %v8161_v2  ;;  %245 = vst [vmem:[#allocation2 + $0x98] sm:$0xff] %v8161_v2  ;;  %7123 = vmatpush3.bf16.msra.mxu0 %v7995_v5  ;;  %v473_v17 = vpack.c.bf16 %v442_v14, %v441_v13  ;;  %v8004_v28 = vld [vmem:[%s10452_s1 + $0x8] sm:$0xff]   ;;  %v6546_v32 = vunpack.c.l.bf16 %v6659_v31  ;;  %v6547_v33 = vunpack.c.h.bf16 %v6659_v31  ;;  %v8005_v36 = vld [vmem:[%s10452_s1 + $0x40] sm:$0xff]  }
  0x16   : > { %246 = vst [vmem:[#allocation2 + $0xa0] sm:$0x3] %v8161_v2  ;;  %247 = vst [vmem:[#allocation2 + $0xa8] sm:$0xff] %v8161_v2  ;;  %7171 = vmatpush3.bf16.msra.mxu1 %v7996_v6  ;;  %7124 = vmatprep.subr.bf16.mxu0 %v7997_v8  ;;  %v6660_v34 = vld [vmem:[%s8241_s20 + $0x28] sm:$0xff]   ;;  %v8006_v41 = vld [vmem:[%s10452_s1] sm:$0xff]  }
  0x17   : > { %248 = vst [vmem:[#allocation2 + $0xb0] sm:$0xff] %v8161_v2  ;;  %249 = vst [vmem:[#allocation2 + $0xb8] sm:$0x3] %v8161_v2  ;;  %7172 = vmatprep.subr.bf16.mxu1 %v7998_v9  ;;  %7134 = vmatprep.mubr.bf16.mxu0 %v473_v17  ;;  %v6550_v37 = vunpack.c.l.bf16 %v6660_v34  ;;  %v6551_v38 = vunpack.c.h.bf16 %v6660_v34  ;;  %v6662_v42 = vld [vmem:[%s8241_s20 + $0x38] sm:$0xff]   ;;  %v6663_v45 = vld [vmem:[%s8241_s20 + $0x40] sm:$0xff]  }
  0x18   : > { %250 = vst [vmem:[#allocation2 + $0xc0] sm:$0xff] %v8161_v2  ;;  %251 = vst [vmem:[#allocation2 + $0xc8] sm:$0xff] %v8161_v2  ;;  %v6558_v43 = vunpack.c.l.bf16 %v6662_v42  ;;  %v6559_v44 = vunpack.c.h.bf16 %v6662_v42  ;;  %v6562_v46 = vunpack.c.l.bf16 %v6663_v45  ;;  %v6563_v47 = vunpack.c.h.bf16 %v6663_v45  ;;  %v8008_v50 = vld [vmem:[%s10452_s1 + $0xb8] sm:$0xff]   ;;  %v8274_v53 = vld [vmem:[%s8241_s20] sm:$0xff] }
  0x19   : > { %252 = vst [vmem:[#allocation2 + $0xd0] sm:$0x3] %v8161_v2  ;;  %253 = vst [vmem:[#allocation2 + $0xd8] sm:$0xff] %v8161_v2  ;;  %7125 = vmatpush3.bf16.msra.mxu0 %v7997_v8  ;;  %v8021_v55 = vld [vmem:[%s10452_s1 + $0xf8] sm:$0xff]   ;;  %v8282_v56 = vld [vmem:[%s8241_s20 + $0x8] sm:$0xff] }
  0x1a   : > { %254 = vst [vmem:[#allocation2 + $0xe0] sm:$0xff] %v8161_v2  ;;  %255 = vst [vmem:[#allocation2 + $0xe8] sm:$0x3] %v8161_v2  ;;  %7173 = vmatpush3.bf16.msra.mxu1 %v7998_v9  ;;  %7126 = vmatprep.subr.bf16.mxu0 %v7999_v10  ;;  %v8011_v58 = vld [vmem:[%s10452_s1 + $0xb0] sm:$0xff]   ;;  %v6664_v60 = vld [vmem:[%s8241_s20 + $0x48] sm:$0xff]  }
  0x1b   : > { %256 = vst [vmem:[#allocation2 + $0xf0] sm:$0xff] %v8161_v2  ;;  %257 = vst [vmem:[#allocation2 + $0xf8] sm:$0xff] %v8161_v2  ;;  %7174 = vmatprep.subr.bf16.mxu1 %v8000_v11  ;;  %v8022_v59 = vld [vmem:[%s10452_s1 + $0xf0] sm:$0xff]   ;;  %v8014_v61 = vld [vmem:[%s10452_s1 + $0xa8] sm:$0xff]   ;;  %v6566_v62 = vunpack.c.l.bf16 %v6664_v60  ;;  %v6567_v63 = vunpack.c.h.bf16 %v6664_v60 }
  0x1c   : > { %258 = vst [vmem:[#allocation2 + $0x100] sm:$0x3] %v8161_v2  ;;  %259 = vst [vmem:[#allocation2 + $0x108] sm:$0xff] %v8161_v2  ;;  %v6665_v0 = vld [vmem:[%s8241_s20 + $0x50] sm:$0xff]   ;;  %v8026_v8 = vld [vmem:[%s10452_s1 + $0xe8] sm:$0xff]  }
  0x1d   : > { %260 = vst [vmem:[#allocation2 + $0x110] sm:$0xff] %v8161_v2  ;;  %261 = vst [vmem:[#allocation2 + $0x118] sm:$0x3] %v8161_v2  ;;  %7127 = vmatpush3.bf16.msra.mxu0 %v7999_v10  ;;  %v8302_v1 = vld [vmem:[%s8241_s20 + $0x10] sm:$0xff]  ;;  %v6570_v5 = vunpack.c.l.bf16 %v6665_v0  ;;  %v6571_v6 = vunpack.c.h.bf16 %v6665_v0  ;;  %v8310_v10 = vld [vmem:[%s8241_s20 + $0x18] sm:$0xff] }
  0x1e   : > { %262 = vst [vmem:[#allocation2 + $0x120] sm:$0xff] %v8161_v2  ;;  %263 = vst [vmem:[#allocation2 + $0x128] sm:$0xff] %v8161_v2  ;;  %7175 = vmatpush3.bf16.msra.mxu1 %v8000_v11  ;;  %7128 = vmatprep.subr.bf16.mxu0 %v8001_v12  ;;  %v6667_v13 = vld [vmem:[%s8241_s20 + $0x60] sm:$0xff]   ;;  %v8031_v27 = vld [vmem:[%s10452_s1 + $0xd8] sm:$0xff]  }
  0x1f   : > { %264 = vst [vmem:[#allocation2 + $0x130] sm:$0x3] %v8161_v2  ;;  %265 = vst [vmem:[#allocation2 + $0x138] sm:$0xff] %v8161_v2  ;;  %7176 = vmatprep.subr.bf16.mxu1 %v8002_v16  ;;  %v8017_v14 = vld [vmem:[%s10452_s1 + $0xa0] sm:$0xff]   ;;  %v6578_v17 = vunpack.c.l.bf16 %v6667_v13  ;;  %v8030_v42 = vld [vmem:[%s10452_s1 + $0x88] sm:$0xff]  }
  0x20   : > { %266 = vst [vmem:[#allocation2 + $0x140] sm:$0xff] %v8161_v2  ;;  %267 = vst [vmem:[#allocation2 + $0x148] sm:$0x3] %v8161_v2 }
  0x21   : > { %268 = vst [vmem:[#allocation2 + $0x150] sm:$0xff] %v8161_v2  ;;  %269 = vst [vmem:[#allocation2 + $0x158] sm:$0xff] %v8161_v2  ;;  %7129 = vmatpush3.bf16.msra.mxu0 %v8001_v12  ;;  %v6666_v12 = vld [vmem:[%s8241_s20 + $0x58] sm:$0xff]  }
  0x22   : > { %270 = vst [vmem:[#allocation2 + $0x160] sm:$0x3] %v8161_v2  ;;  %271 = vst [vmem:[#allocation2 + $0x168] sm:$0xff] %v8161_v2  ;;  %7177 = vmatpush3.bf16.msra.mxu1 %v8002_v16  ;;  %7130 = vmatprep.subr.bf16.mxu0 %v8003_v24  ;;  %v6574_v15 = vunpack.c.l.bf16 %v6666_v12  ;;  %v6575_v16 = vunpack.c.h.bf16 %v6666_v12 }
  0x23   : > { %272 = vst [vmem:[#allocation2 + $0x170] sm:$0xff] %v8161_v2  ;;  %273 = vst [vmem:[#allocation2 + $0x178] sm:$0x3] %v8161_v2  ;;  %7178 = vmatprep.subr.bf16.mxu1 %v8004_v28 }
  0x24   : > { %274 = vst [vmem:[#allocation2 + $0x180] sm:$0xff] %v8161_v2  ;;  %275 = vst [vmem:[#allocation2 + $0x188] sm:$0xff] %v8161_v2 }
  0x25   : > { %276 = vst [vmem:[#allocation2 + $0x190] sm:$0x3] %v8161_v2  ;;  %277 = vst [vmem:[#allocation2 + $0x198] sm:$0xff] %v8161_v2  ;;  %7131 = vmatpush3.bf16.msra.mxu0 %v8003_v24 }
  0x26   : > { %278 = vst [vmem:[#allocation2 + $0x1a0] sm:$0xff] %v8161_v2  ;;  %279 = vst [vmem:[#allocation2 + $0x1a8] sm:$0x3] %v8161_v2  ;;  %7179 = vmatpush3.bf16.msra.mxu1 %v8004_v28  ;;  %7132 = vmatprep.subr.bf16.mxu0 %v8005_v36 }
  0x27   : > { %345 = vst [vmem:[#allocation2 + $0x19] sm:$0xff] %v6530_v18  ;;  %346 = vst [vmem:[#allocation2 + $0x21] sm:$0xff] %v6531_v19  ;;  %7180 = vmatprep.subr.bf16.mxu1 %v8006_v41  ;;  %v6579_v18 = vunpack.c.h.bf16 %v6667_v13  ;;  %v8027_v19 = vld [vmem:[%s10452_s1 + $0xe0] sm:$0xff]  }
  0x28   : > { %347 = vst [vmem:[#allocation2 + $0x31] sm:$0xff] %v6534_v21  ;;  %348 = vst [vmem:[#allocation2 + $0x39] sm:$0xff] %v6535_v22  ;;  %v8020_v22 = vld [vmem:[%s10452_s1 + $0x98] sm:$0xff]  }
  0x29   : > { %349 = vst [vmem:[#allocation2 + $0x49] sm:$0xff] %v6538_v25  ;;  %350 = vst [vmem:[#allocation2 + $0x51] sm:$0xff] %v6539_v26  ;;  %7133 = vmatpush3.bf16.msra.mxu0 %v8005_v36  ;;  %v6668_v25 = vld [vmem:[%s8241_s20 + $0x68] sm:$0xff]   ;;  %v8331_v26 = vld [vmem:[%s8241_s20 + $0x20] sm:$0xff] }
  0x2a   : > { %351 = vst [vmem:[#allocation2 + $0x61] sm:$0xff] %v6542_v29  ;;  %352 = vst [vmem:[#allocation2 + $0x69] sm:$0xff] %v6543_v30  ;;  %7181 = vmatpush3.bf16.msra.mxu1 %v8006_v41  ;;  %7214 = vmatprep.subr.bf16.mxu0 %v8008_v50  ;;  %v6582_v28 = vunpack.c.l.bf16 %v6668_v25  ;;  %v6583_v29 = vunpack.c.h.bf16 %v6668_v25  ;;  %v6669_v30 = vld [vmem:[%s8241_s20 + $0x70] sm:$0xff]  }
  0x2b   : > { %353 = vst [vmem:[#allocation2 + $0x79] sm:$0xff] %v6546_v32  ;;  %354 = vst [vmem:[#allocation2 + $0x81] sm:$0xff] %v6547_v33  ;;  %7262 = vmatprep.subr.bf16.mxu1 %v8021_v55  ;;  %v8340_v32 = vld [vmem:[%s8241_s20 + $0x28] sm:$0xff]  ;;  %v6586_v33 = vunpack.c.l.bf16 %v6669_v30  ;;  %v6587_v34 = vunpack.c.h.bf16 %v6669_v30  ;;  %v8025_v36 = vld [vmem:[%s10452_s1 + $0x90] sm:$0xff]  }
  0x2c   : > { %355 = vst [vmem:[#allocation2 + $0x91] sm:$0xff] %v6550_v37  ;;  %356 = vst [vmem:[#allocation2 + $0x99] sm:$0xff] %v6551_v38  ;;  %7135 = vmatmul.mubr.bf16.vlgmr.msra.gmra.mxu0 %v8274_v53  ;;  %v8032_v37 = vld [vmem:[%s10452_s1 + $0xd0] sm:$0xff]  }
  0x2d   : > { %357 = vst [vmem:[#allocation2 + $0xa9] sm:$0xff] %v6554_v39  ;;  %358 = vst [vmem:[#allocation2 + $0xb1] sm:$0xff] %v6555_v40  ;;  %7215 = vmatpush3.bf16.msra.mxu0 %v8008_v50  ;;  %7138 = vmatprep.mubr.bf16.mxu0 %v8282_v56 }
  0x2e   : > { %v379_v48 = vld [vmem:[#allocation2 + $0x18] sm:$0xff]  ;;  %v380_v49 = vld [vmem:[#allocation2 + $0x20] sm:$0xff]  ;;  %359 = vst [vmem:[#allocation2 + $0xc1] sm:$0xff] %v6558_v43  ;;  %360 = vst [vmem:[#allocation2 + $0xc9] sm:$0xff] %v6559_v44  ;;  %7216 = vmatprep.subr.bf16.mxu0 %v8011_v58 }
  0x2f   : > { %v381_v51 = vld [vmem:[#allocation2 + $0x30] sm:$0xff]  ;;  %v382_v52 = vld [vmem:[#allocation2 + $0x38] sm:$0xff]  ;;  %361 = vst [vmem:[#allocation2 + $0xd9] sm:$0xff] %v6562_v46  ;;  %362 = vst [vmem:[#allocation2 + $0xe1] sm:$0xff] %v6563_v47  ;;  %v8276_v54 = vpack.c.bf16 %v380_v49, %v379_v48 }
  0x30   : > { %v8284_v57 = vpack.c.bf16 %v382_v52, %v381_v51  ;;  %v383_v2 = vld [vmem:[#allocation2 + $0x48] sm:$0xff]  ;;  %v384_v3 = vld [vmem:[#allocation2 + $0x50] sm:$0xff]  ;;  %363 = vst [vmem:[#allocation2 + $0xf1] sm:$0xff] %v6566_v62  ;;  %364 = vst [vmem:[#allocation2 + $0xf9] sm:$0xff] %v6567_v63 }
  0x31   : > { %7183 = vmatmul.mubr.bf16.vlgmr.msra.gmra.mxu1 %v8276_v54  ;;  %v385_v4 = vld [vmem:[#allocation2 + $0x60] sm:$0xff]  ;;  %v386_v7 = vld [vmem:[#allocation2 + $0x68] sm:$0xff]  ;;  %365 = vst [vmem:[#allocation2 + $0x109] sm:$0xff] %v6570_v5  ;;  %366 = vst [vmem:[#allocation2 + $0x111] sm:$0xff] %v6571_v6  ;;  %v8307_v9 = vpack.c.bf16 %v384_v3, %v383_v2  ;;  %7217 = vmatpush3.bf16.msra.mxu0 %v8011_v58 }
  0x32   : > { %7186 = vmatprep.mubr.bf16.mxu1 %v8284_v57  ;;  %7263 = vmatpush3.bf16.msra.mxu1 %v8021_v55  ;;  %v8312_v11 = vpack.c.bf16 %v386_v7, %v385_v4  ;;  %367 = vst [vmem:[#allocation2 + $0x121] sm:$0xff] %v6574_v15  ;;  %368 = vst [vmem:[#allocation2 + $0x129] sm:$0xff] %v6575_v16  ;;  %v387_v20 = vld [vmem:[#allocation2 + $0x78] sm:$0xff]  ;;  %v388_v21 = vld [vmem:[#allocation2 + $0x80] sm:$0xff] }
  0x33   : > { %7264 = vmatprep.subr.bf16.mxu1 %v8022_v59  ;;  %7218 = vmatprep.subr.bf16.mxu0 %v8014_v61  ;;  %369 = vst [vmem:[#allocation2 + $0x139] sm:$0xff] %v6578_v17  ;;  %370 = vst [vmem:[#allocation2 + $0x141] sm:$0xff] %v6579_v18  ;;  %v389_v23 = vld [vmem:[#allocation2 + $0x90] sm:$0xff]  ;;  %v390_v24 = vld [vmem:[#allocation2 + $0x98] sm:$0xff]  ;;  %v8337_v31 = vpack.c.bf16 %v388_v21, %v387_v20 }
  0x34   : > { %7139 = vmatmul.mubr.bf16.gmra.mxu0 %v8302_v1  ;;  %v8342_v35 = vpack.c.bf16 %v390_v24, %v389_v23  ;;  %371 = vst [vmem:[#allocation2 + $0x151] sm:$0xff] %v6582_v28  ;;  %372 = vst [vmem:[#allocation2 + $0x159] sm:$0xff] %v6583_v29  ;;  %v391_v38 = vld [vmem:[#allocation2 + $0xa8] sm:$0xff]  ;;  %v392_v39 = vld [vmem:[#allocation2 + $0xb0] sm:$0xff] }
  0x35   : > { %7142 = vmatprep.mubr.bf16.mxu0 %v8310_v10  ;;  %7219 = vmatpush3.bf16.msra.mxu0 %v8014_v61  ;;  %373 = vst [vmem:[#allocation2 + $0x169] sm:$0xff] %v6586_v33  ;;  %374 = vst [vmem:[#allocation2 + $0x171] sm:$0xff] %v6587_v34  ;;  %v393_v40 = vld [vmem:[#allocation2 + $0xc0] sm:$0xff]  ;;  %v394_v41 = vld [vmem:[#allocation2 + $0xc8] sm:$0xff]  ;;  %v8363_v45 = vpack.c.bf16 %v392_v39, %v391_v38 }
  0x36   : > { %7265 = vmatpush3.bf16.msra.mxu1 %v8022_v59  ;;  %7220 = vmatprep.subr.bf16.mxu0 %v8017_v14  ;;  %v8358_v43 = vld [vmem:[%s8241_s20 + $0x30] sm:$0xff]  ;;  %v8036_v44 = vld [vmem:[%s10452_s1 + $0xc8] sm:$0xff]   ;;  %v8366_v46 = vld [vmem:[%s8241_s20 + $0x38] sm:$0xff]  ;;  %v8368_v47 = vpack.c.bf16 %v394_v41, %v393_v40 }
  0x37   : > { %7266 = vmatprep.subr.bf16.mxu1 %v8026_v8  ;;  %v8035_v48 = vld [vmem:[%s10452_s1 + $0x80] sm:$0xff]   ;;  %v395_v50 = vld [vmem:[#allocation2 + $0xd8] sm:$0xff]  ;;  %v397_v52 = vld [vmem:[#allocation2 + $0xf0] sm:$0xff] }
  0x38   : > { %v8037_v49 = vld [vmem:[%s10452_s1 + $0xc0] sm:$0xff]   ;;  %v398_v55 = vld [vmem:[#allocation2 + $0xf8] sm:$0xff]  ;;  %v8391_v61 = vld [vmem:[%s8241_s20 + $0x48] sm:$0xff] }
  0x39   : > { %7187 = vmatmul.mubr.bf16.gmra.mxu1 %v8307_v9  ;;  %7221 = vmatpush3.bf16.msra.mxu0 %v8017_v14  ;;  %v396_v51 = vld [vmem:[#allocation2 + $0xe0] sm:$0xff]  ;;  %v8383_v58 = vld [vmem:[%s10452_s1 + $0x138] sm:$0xff]   ;;  %v8393_v62 = vpack.c.bf16 %v398_v55, %v397_v52  ;;  %v399_v0 = vld [vmem:[#allocation2 + $0x108] sm:$0xff] }
  0x3a   : > { %7190 = vmatprep.mubr.bf16.mxu1 %v8312_v11  ;;  %7267 = vmatpush3.bf16.msra.mxu1 %v8026_v8  ;;  %v8386_v59 = vld [vmem:[%s8241_s20 + $0x40] sm:$0xff]  ;;  %v8388_v60 = vpack.c.bf16 %v396_v51, %v395_v50  ;;  %v8399_v63 = vld [vmem:[%s10452_s1 + $0x178] sm:$0xff]   ;;  %v400_v2 = vld [vmem:[#allocation2 + $0x110] sm:$0xff] }
  0x3b   : > { %7268 = vmatprep.subr.bf16.mxu1 %v8027_v19  ;;  %7222 = vmatprep.subr.bf16.mxu0 %v8020_v22  ;;  %v401_v3 = vld [vmem:[#allocation2 + $0x120] sm:$0xff]  ;;  %v402_v4 = vld [vmem:[#allocation2 + $0x128] sm:$0xff]  ;;  %v8407_v5 = vld [vmem:[%s8241_s20 + $0x50] sm:$0xff]  ;;  %v8409_v6 = vpack.c.bf16 %v400_v2, %v399_v0 }
  0x3c   : > { %7143 = vmatmul.mubr.bf16.gmra.mxu0 %v8331_v26  ;;  %v8412_v7 = vld [vmem:[%s8241_s20 + $0x58] sm:$0xff]  ;;  %v8414_v8 = vpack.c.bf16 %v402_v4, %v401_v3  ;;  %v404_v13 = vld [vmem:[#allocation2 + $0x140] sm:$0xff]  ;;  %v405_v14 = vld [vmem:[#allocation2 + $0x150] sm:$0xff] }
  0x3d   : > { %7146 = vmatprep.mubr.bf16.mxu0 %v8340_v32  ;;  %7223 = vmatpush3.bf16.msra.mxu0 %v8020_v22  ;;  %v403_v12 = vld [vmem:[#allocation2 + $0x138] sm:$0xff]  ;;  %v8422_v17 = vld [vmem:[%s8241_s20 + $0x60] sm:$0xff]  ;;  %v8427_v21 = vld [vmem:[%s8241_s20 + $0x68] sm:$0xff] }
  0x3e   : > { %7269 = vmatpush3.bf16.msra.mxu1 %v8027_v19  ;;  %7224 = vmatprep.subr.bf16.mxu0 %v8025_v36  ;;  %v406_v15 = vld [vmem:[#allocation2 + $0x158] sm:$0xff]  ;;  %v8424_v20 = vpack.c.bf16 %v404_v13, %v403_v12  ;;  %v924_v23 = vld [vmem:[#allocation2 + $0x2] sm:$0xff]  ;;  %v925_v24 = vld [vmem:[#allocation2 + $0xa] sm:$0xff] }
  0x3f   : > { %7270 = vmatprep.subr.bf16.mxu1 %v8031_v27  ;;  %v6670_v16 = vld [vmem:[%s8241_s20 + $0x78] sm:$0xff]   ;;  %v8429_v22 = vpack.c.bf16 %v406_v15, %v405_v14  ;;  %v407_v25 = vld [vmem:[#allocation2 + $0x168] sm:$0xff]  ;;  %v8436_v28 = vld [vmem:[%s8241_s20 + $0x70] sm:$0xff]  ;;  %v956_v30 = vpack.c.bf16 %v925_v24, %v924_v23 }
  0x40   : > { %v6590_v18 = vunpack.c.l.bf16 %v6670_v16  ;;  %v6591_v19 = vunpack.c.h.bf16 %v6670_v16  ;;  %v926_v33 = vld [vmem:[#allocation2 + $0x1a] sm:$0xff]  ;;  %v927_v34 = vld [vmem:[#allocation2 + $0x22] sm:$0xff]  ;;  %v8039_v40 = vld [vmem:[%s10452_s1 + $0x130] sm:$0xff]  }
  0x41   : > { %7191 = vmatmul.mubr.bf16.gmra.mxu1 %v8337_v31  ;;  %7225 = vmatpush3.bf16.msra.mxu0 %v8025_v36  ;;  %v928_v36 = vld [vmem:[#allocation2 + $0x32] sm:$0xff]  ;;  %v8443_v38 = vpack.c.bf16 %v927_v34, %v926_v33  ;;  %v930_v41 = vld [vmem:[#allocation2 + $0x4a] sm:$0xff]  ;;  %v934_v52 = vld [vmem:[#allocation2 + $0x7a] sm:$0xff] }
  0x42   : > { %7194 = vmatprep.mubr.bf16.mxu1 %v8342_v35  ;;  %7271 = vmatpush3.bf16.msra.mxu1 %v8031_v27  ;;  %375 = vst [vmem:[#allocation2 + $0x181] sm:$0xff] %v6590_v18  ;;  %376 = vst [vmem:[#allocation2 + $0x189] sm:$0xff] %v6591_v19  ;;  %v408_v27 = vld [vmem:[#allocation2 + $0x170] sm:$0xff]  ;;  %v8046_v50 = vld [vmem:[%s10452_s1 + $0x168] sm:$0xff]  }
  0x43   : > { %7272 = vmatprep.subr.bf16.mxu1 %v8032_v37  ;;  %7226 = vmatprep.subr.bf16.mxu0 %v8030_v42  ;;  %v8438_v29 = vpack.c.bf16 %v408_v27, %v407_v25  ;;  %v935_v55 = vld [vmem:[#allocation2 + $0x82] sm:$0xff]  ;;  %v936_v0 = vld [vmem:[#allocation2 + $0x92] sm:$0xff]  ;;  %v941_v15 = vld [vmem:[#allocation2 + $0xca] sm:$0xff] }
  0x44   : > { %7147 = vmatmul.mubr.bf16.gmra.mxu0 %v8358_v43  ;;  %v8042_v2 = vld [vmem:[%s10452_s1 + $0x118] sm:$0xff]   ;;  %v8485_v4 = vpack.c.bf16 %v935_v55, %v934_v52  ;;  %v940_v14 = vld [vmem:[#allocation2 + $0xc2] sm:$0xff]  ;;  %v8050_v16 = vld [vmem:[%s10452_s1 + $0x150] sm:$0xff]  }
  0x45   : > { %7150 = vmatprep.mubr.bf16.mxu0 %v8366_v46  ;;  %7227 = vmatpush3.bf16.msra.mxu0 %v8030_v42  ;;  %v8044_v42 = vld [vmem:[%s10452_s1 + $0x170] sm:$0xff]   ;;  %v8049_v3 = vld [vmem:[%s10452_s1 + $0x158] sm:$0xff]   ;;  %v8048_v18 = vld [vmem:[%s10452_s1 + $0x108] sm:$0xff]   ;;  %v8507_v24 = vpack.c.bf16 %v941_v15, %v940_v14 }
  0x46   : > { %7273 = vmatpush3.bf16.msra.mxu1 %v8032_v37  ;;  %7228 = vmatprep.subr.bf16.mxu0 %v8035_v48  ;;  %v929_v37 = vld [vmem:[#allocation2 + $0x3a] sm:$0xff]  ;;  %v939_v13 = vld [vmem:[#allocation2 + $0xb2] sm:$0xff]  ;;  %v8052_v19 = vld [vmem:[%s10452_s1 + $0x148] sm:$0xff]  }
  0x47   : > { %7274 = vmatprep.subr.bf16.mxu1 %v8036_v44  ;;  %v8445_v39 = vpack.c.bf16 %v929_v37, %v928_v36  ;;  %v943_v25 = vld [vmem:[#allocation2 + $0xe2] sm:$0xff]  ;;  %v944_v27 = vld [vmem:[#allocation2 + $0xf2] sm:$0xff]  ;;  %v954_v55 = vld [vmem:[#allocation2 + $0x16a] sm:$0xff] }
  0x48   : > { %v8053_v33 = vld [vmem:[%s10452_s1 + $0x140] sm:$0xff]   ;;  %v8054_v34 = vld [vmem:[%s10452_s1 + $0x1b8] sm:$0xff]   ;;  %v2154_v15 = vld [vmem:[#allocation2 + $0x68] sm:$0xff] }
  0x49   : > { %7195 = vmatmul.mubr.bf16.gmra.mxu1 %v8363_v45  ;;  %7229 = vmatpush3.bf16.msra.mxu0 %v8035_v48  ;;  %v933_v48 = vld [vmem:[#allocation2 + $0x6a] sm:$0xff]  ;;  %v8059_v36 = vld [vmem:[%s10452_s1 + $0x1f8] sm:$0xff]   ;;  %v2153_v14 = vld [vmem:[#allocation2 + $0x60] sm:$0xff] }
  0x4a   : > { %7198 = vmatprep.mubr.bf16.mxu1 %v8368_v47  ;;  %7275 = vmatpush3.bf16.msra.mxu1 %v8036_v44  ;;  %v932_v44 = vld [vmem:[#allocation2 + $0x62] sm:$0xff] }
  0x4b   : > { %7276 = vmatprep.subr.bf16.mxu1 %v8037_v49  ;;  %7310 = vmatprep.subr.bf16.mxu0 %v8383_v58 }
  0x4c   : > { %7151 = vmatmul.mubr.bf16.gmra.mxu0 %v8386_v59 }
  0x4d   : > { %7154 = vmatprep.mubr.bf16.mxu0 %v8391_v61 }
  0x4e   : > { %7277 = vmatpush3.bf16.msra.mxu1 %v8037_v49  ;;  %v8040_v49 = vld [vmem:[%s10452_s1 + $0x128] sm:$0xff]  }
  0x4f   : > { %7358 = vmatprep.subr.bf16.mxu1 %v8399_v63 }
  0x51   : > { %7199 = vmatmul.mubr.bf16.gmra.mxu1 %v8388_v60 }
  0x52   : > { %7202 = vmatprep.mubr.bf16.mxu1 %v8393_v62 }
  0x54   : > { %7155 = vmatmul.mubr.bf16.gmra.mxu0 %v8407_v5 }
  0x55   : > { %7158 = vmatprep.mubr.bf16.mxu0 %v8412_v7 }
  0x59   : > { %7203 = vmatmul.mubr.bf16.gmra.mxu1 %v8409_v6 }
  0x5a   : > { %7206 = vmatprep.mubr.bf16.mxu1 %v8414_v8 }
  0x5c   : > { %7159 = vmatmul.mubr.bf16.gmra.mxu0 %v8422_v17 }
  0x5d   : > { %7162 = vmatprep.mubr.bf16.mxu0 %v8427_v21 }
  0x61   : > { %7207 = vmatmul.mubr.bf16.gmra.mxu1 %v8424_v20 }
  0x62   : > { %7210 = vmatprep.mubr.bf16.mxu1 %v8429_v22 }
  0x64   : > { %7163 = vmatmul.mubr.bf16.gmra.mxu0 %v8436_v28 }
  0x65   : > { %7230 = vmatprep.mubr.bf16.mxu0 %v956_v30  ;;  %v945_v30 = vld [vmem:[#allocation2 + $0xfa] sm:$0xff] }
  0x69   : > { %7211 = vmatmul.mubr.bf16.gmra.mxu1 %v8438_v29 }
  0x6a   : > { %7278 = vmatprep.mubr.bf16.mxu1 %v8276_v54  ;;  %v931_v54 = vld [vmem:[#allocation2 + $0x52] sm:$0xff] }
  0x6b   : > { %v8465_v51 = vpack.c.bf16 %v931_v54, %v930_v41  ;;  %v947_v41 = vld [vmem:[#allocation2 + $0x112] sm:$0xff] }
  0x6c   : > { %7231 = vmatmul.mubr.bf16.vlgmr.msra.gmra.mxu0 %v8443_v38 }
  0x6d   : > { %7311 = vmatpush3.bf16.msra.mxu0 %v8383_v58  ;;  %7234 = vmatprep.mubr.bf16.mxu0 %v8445_v39  ;;  %v8041_v58 = vld [vmem:[%s10452_s1 + $0x120] sm:$0xff]  }
  0x6e   : > { %7312 = vmatprep.subr.bf16.mxu0 %v8039_v40 }
  0x71   : > { %7279 = vmatmul.mubr.bf16.vlgmr.msra.gmra.mxu1 %v8284_v57  ;;  %7313 = vmatpush3.bf16.msra.mxu0 %v8039_v40  ;;  %v8467_v57 = vpack.c.bf16 %v933_v48, %v932_v44  ;;  %v8527_v40 = vpack.c.bf16 %v945_v30, %v944_v27  ;;  %v950_v48 = vld [vmem:[#allocation2 + $0x13a] sm:$0xff] }
  0x72   : > { %7282 = vmatprep.mubr.bf16.mxu1 %v8307_v9  ;;  %7359 = vmatpush3.bf16.msra.mxu1 %v8399_v63  ;;  %v937_v9 = vld [vmem:[#allocation2 + $0x9a] sm:$0xff] }
  0x73   : > { %7360 = vmatprep.subr.bf16.mxu1 %v8044_v42  ;;  %7314 = vmatprep.subr.bf16.mxu0 %v8040_v49  ;;  %v8047_v63 = vld [vmem:[%s10452_s1 + $0x160] sm:$0xff]   ;;  %v8487_v12 = vpack.c.bf16 %v937_v9, %v936_v0  ;;  %v2155_v27 = vld [vmem:[#allocation2 + $0x78] sm:$0xff] }
  0x74   : > { %7235 = vmatmul.mubr.bf16.gmra.mxu0 %v8465_v51  ;;  %v1260_v0 = vld [vmem:[#allocation2 + $0x180] sm:$0xff] }
  0x75   : > { %7238 = vmatprep.mubr.bf16.mxu0 %v8467_v57  ;;  %7315 = vmatpush3.bf16.msra.mxu0 %v8040_v49  ;;  %v951_v49 = vld [vmem:[#allocation2 + $0x142] sm:$0xff] }
  0x76   : > { %7361 = vmatpush3.bf16.msra.mxu1 %v8044_v42  ;;  %7316 = vmatprep.subr.bf16.mxu0 %v8041_v58  ;;  %v949_v42 = vld [vmem:[#allocation2 + $0x12a] sm:$0xff]  ;;  %v8541_v52 = vpack.c.bf16 %v951_v49, %v950_v48 }
  0x77   : > { %7362 = vmatprep.subr.bf16.mxu1 %v8046_v50 }
  0x79   : > { %7283 = vmatmul.mubr.bf16.gmra.mxu1 %v8312_v11  ;;  %7317 = vmatpush3.bf16.msra.mxu0 %v8041_v58  ;;  %v938_v11 = vld [vmem:[#allocation2 + $0xaa] sm:$0xff]  ;;  %v955_v58 = vld [vmem:[#allocation2 + $0x172] sm:$0xff] }
  0x7a   : > { %7286 = vmatprep.mubr.bf16.mxu1 %v8337_v31  ;;  %7363 = vmatpush3.bf16.msra.mxu1 %v8046_v50  ;;  %v8045_v31 = vld [vmem:[%s10452_s1 + $0x110] sm:$0xff]   ;;  %v8505_v23 = vpack.c.bf16 %v939_v13, %v938_v11  ;;  %v8549_v9 = vpack.c.bf16 %v955_v58, %v954_v55 }
  0x7b   : > { %7364 = vmatprep.subr.bf16.mxu1 %v8047_v63  ;;  %7318 = vmatprep.subr.bf16.mxu0 %v8042_v2  ;;  %v952_v50 = vld [vmem:[#allocation2 + $0x152] sm:$0xff]  ;;  %v2457_v13 = vld [vmem:[#allocation2 + $0x49] sm:$0xff] }
  0x7c   : > { %7239 = vmatmul.mubr.bf16.gmra.mxu0 %v8485_v4 }
  0x7d   : > { %7242 = vmatprep.mubr.bf16.mxu0 %v8487_v12  ;;  %7319 = vmatpush3.bf16.msra.mxu0 %v8042_v2  ;;  %v8071_v2 = vld [vmem:[%s10452_s1 + $0x238] sm:$0xff]  }
  0x7e   : > { %7365 = vmatpush3.bf16.msra.mxu1 %v8047_v63  ;;  %7320 = vmatprep.subr.bf16.mxu0 %v8045_v31  ;;  %v8056_v63 = vld [vmem:[%s10452_s1 + $0x1a8] sm:$0xff]  }
  0x7f   : > { %7366 = vmatprep.subr.bf16.mxu1 %v8049_v3 }
  0x81   : > { %7287 = vmatmul.mubr.bf16.gmra.mxu1 %v8342_v35  ;;  %7321 = vmatpush3.bf16.msra.mxu0 %v8045_v31  ;;  %v942_v35 = vld [vmem:[#allocation2 + $0xda] sm:$0xff]  ;;  %v2458_v31 = vld [vmem:[#allocation2 + $0x51] sm:$0xff] }
  0x82   : > { %7290 = vmatprep.mubr.bf16.mxu1 %v8363_v45  ;;  %7367 = vmatpush3.bf16.msra.mxu1 %v8049_v3  ;;  %v8051_v45 = vld [vmem:[%s10452_s1 + $0x100] sm:$0xff]   ;;  %v8525_v37 = vpack.c.bf16 %v943_v25, %v942_v35  ;;  %v2455_v3 = vld [vmem:[#allocation2 + $0x31] sm:$0xff] }
  0x83   : > { %7368 = vmatprep.subr.bf16.mxu1 %v8050_v16  ;;  %7322 = vmatprep.subr.bf16.mxu0 %v8048_v18  ;;  %v8072_v35 = vld [vmem:[%s10452_s1 + $0x230] sm:$0xff]  }
  0x84   : > { %7243 = vmatmul.mubr.bf16.gmra.mxu0 %v8505_v23 }
  0x85   : > { %7246 = vmatprep.mubr.bf16.mxu0 %v8507_v24  ;;  %7323 = vmatpush3.bf16.msra.mxu0 %v8048_v18  ;;  %v2459_v18 = vld [vmem:[#allocation2 + $0x61] sm:$0xff] }
  0x86   : > { %7369 = vmatpush3.bf16.msra.mxu1 %v8050_v16  ;;  %7324 = vmatprep.subr.bf16.mxu0 %v8051_v45 }
  0x87   : > { %7370 = vmatprep.subr.bf16.mxu1 %v8052_v19 }
  0x89   : > { %7291 = vmatmul.mubr.bf16.gmra.mxu1 %v8368_v47  ;;  %7325 = vmatpush3.bf16.msra.mxu0 %v8051_v45  ;;  %v946_v47 = vld [vmem:[#allocation2 + $0x10a] sm:$0xff] }
  0x8a   : > { %7294 = vmatprep.mubr.bf16.mxu1 %v8388_v60  ;;  %7371 = vmatpush3.bf16.msra.mxu1 %v8052_v19  ;;  %v948_v60 = vld [vmem:[#allocation2 + $0x122] sm:$0xff]  ;;  %v8533_v54 = vpack.c.bf16 %v947_v41, %v946_v47  ;;  %v2157_v47 = vld [vmem:[#allocation2 + $0x90] sm:$0xff]  ;;  %v2158_v41 = vld [vmem:[#allocation2 + $0x98] sm:$0xff] }
  0x8b   : > { %7372 = vmatprep.subr.bf16.mxu1 %v8053_v33  ;;  %7406 = vmatprep.subr.bf16.mxu0 %v8054_v34  ;;  %v8535_v44 = vpack.c.bf16 %v949_v42, %v948_v60  ;;  %v2460_v19 = vld [vmem:[#allocation2 + $0x69] sm:$0xff] }
  0x8c   : > { %7247 = vmatmul.mubr.bf16.gmra.mxu0 %v8525_v37  ;;  %v2489_v25 = vpack.c.bf16 %v2460_v19, %v2459_v18  ;;  %v8073_v60 = vld [vmem:[%s10452_s1 + $0x228] sm:$0xff]   ;;  %v2164_v18 = vld [vmem:[#allocation2 + $0xe0] sm:$0xff] }
  0x8d   : > { %7250 = vmatprep.mubr.bf16.mxu0 %v8527_v40  ;;  %v2469_v19 = vld [vmem:[#allocation2 + $0xd9] sm:$0xff] }
  0x8e   : > { %7373 = vmatpush3.bf16.msra.mxu1 %v8053_v33  ;;  %v2156_v33 = vld [vmem:[#allocation2 + $0x80] sm:$0xff] }
  0x8f   : > { %7454 = vmatprep.subr.bf16.mxu1 %v8059_v36 }
  0x91   : > { %7295 = vmatmul.mubr.bf16.gmra.mxu1 %v8393_v62  ;;  %v953_v62 = vld [vmem:[#allocation2 + $0x15a] sm:$0xff] }
  0x92   : > { %7298 = vmatprep.mubr.bf16.mxu1 %v8409_v6  ;;  %v8543_v6 = vpack.c.bf16 %v953_v62, %v952_v50  ;;  %v2184_v50 = vpack.c.bf16 %v2156_v33, %v2155_v27  ;;  %v2472_v33 = vld [vmem:[#allocation2 + $0xf9] sm:$0xff] }
  0x94   : > { %7251 = vmatmul.mubr.bf16.gmra.mxu0 %v8533_v54 }
  0x95   : > { %7254 = vmatprep.mubr.bf16.mxu0 %v8535_v44 }
  0x99   : > { %7299 = vmatmul.mubr.bf16.gmra.mxu1 %v8414_v8  ;;  %v1261_v8 = vld [vmem:[#allocation2 + $0x188] sm:$0xff] }
  0x9a   : > { %7302 = vmatprep.mubr.bf16.mxu1 %v8424_v20  ;;  %v8551_v20 = vpack.c.bf16 %v1261_v8, %v1260_v0 }
  0x9c   : > { %7255 = vmatmul.mubr.bf16.gmra.mxu0 %v8541_v52 }
  0x9d   : > { %7258 = vmatprep.mubr.bf16.mxu0 %v8543_v6 }
  0xa1   : > { %7303 = vmatmul.mubr.bf16.gmra.mxu1 %v8429_v22  ;;  %v8055_v22 = vld [vmem:[%s10452_s1 + $0x1b0] sm:$0xff]  }
  0xa2   : > { %7306 = vmatprep.mubr.bf16.mxu1 %v8438_v29  ;;  %v8060_v29 = vld [vmem:[%s10452_s1 + $0x1f0] sm:$0xff]  }
  0xa4   : > { %7259 = vmatmul.mubr.bf16.gmra.mxu0 %v8549_v9 }
  0xa5   : > { %7326 = vmatprep.mubr.bf16.mxu0 %v8274_v53  ;;  %v8062_v53 = vld [vmem:[%s10452_s1 + $0x1e8] sm:$0xff]  }
  0xa9   : > { %7307 = vmatmul.mubr.bf16.gmra.mxu1 %v8551_v20 }
  0xaa   : > { %7374 = vmatprep.mubr.bf16.mxu1 %v8443_v38  ;;  %v8063_v38 = vld [vmem:[%s10452_s1 + $0x1e0] sm:$0xff]  }
  0xac   : > { %7327 = vmatmul.mubr.bf16.vlgmr.msra.gmra.mxu0 %v8282_v56  ;;  %v8057_v56 = vld [vmem:[%s10452_s1 + $0x1a0] sm:$0xff]  }
  0xad   : > { %7407 = vmatpush3.bf16.msra.mxu0 %v8054_v34  ;;  %7330 = vmatprep.mubr.bf16.mxu0 %v8302_v1  ;;  %v8058_v1 = vld [vmem:[%s10452_s1 + $0x198] sm:$0xff]  }
  0xae   : > { %7408 = vmatprep.subr.bf16.mxu0 %v8055_v22  ;;  %v2461_v34 = vld [vmem:[#allocation2 + $0x79] sm:$0xff] }
  0xb1   : > { %7375 = vmatmul.mubr.bf16.vlgmr.msra.gmra.mxu1 %v8445_v39  ;;  %7409 = vmatpush3.bf16.msra.mxu0 %v8055_v22  ;;  %v8065_v39 = vld [vmem:[%s10452_s1 + $0x1d8] sm:$0xff]  }
  0xb2   : > { %7378 = vmatprep.mubr.bf16.mxu1 %v8465_v51  ;;  %7455 = vmatpush3.bf16.msra.mxu1 %v8059_v36  ;;  %v8064_v51 = vld [vmem:[%s10452_s1 + $0x188] sm:$0xff]  }
  0xb3   : > { %7456 = vmatprep.subr.bf16.mxu1 %v8060_v29  ;;  %7410 = vmatprep.subr.bf16.mxu0 %v8056_v63  ;;  %v2462_v36 = vld [vmem:[#allocation2 + $0x81] sm:$0xff] }
  0xb4   : > { %7331 = vmatmul.mubr.bf16.gmra.mxu0 %v8310_v10  ;;  %v8061_v10 = vld [vmem:[%s10452_s1 + $0x190] sm:$0xff]  }
  0xb5   : > { %7334 = vmatprep.mubr.bf16.mxu0 %v8331_v26  ;;  %7411 = vmatpush3.bf16.msra.mxu0 %v8056_v63  ;;  %v8066_v26 = vld [vmem:[%s10452_s1 + $0x1d0] sm:$0xff]  }
  0xb6   : > { %7457 = vmatpush3.bf16.msra.mxu1 %v8060_v29  ;;  %7412 = vmatprep.subr.bf16.mxu0 %v8057_v56 }
  0xb7   : > { %7458 = vmatprep.subr.bf16.mxu1 %v8062_v53 }
  0xb9   : > { %7379 = vmatmul.mubr.bf16.gmra.mxu1 %v8467_v57  ;;  %7413 = vmatpush3.bf16.msra.mxu0 %v8057_v56  ;;  %v8070_v57 = vld [vmem:[%s10452_s1 + $0x1c0] sm:$0xff]   ;;  %v2160_v56 = vld [vmem:[#allocation2 + $0xb0] sm:$0xff] }
  0xba   : > { %7382 = vmatprep.mubr.bf16.mxu1 %v8485_v4  ;;  %7459 = vmatpush3.bf16.msra.mxu1 %v8062_v53  ;;  %v8631_v4 = vld [vmem:[%s8241_s20 + $0x78] sm:$0xff]  ;;  %v2159_v53 = vld [vmem:[#allocation2 + $0xa8] sm:$0xff] }
  0xbb   : > { %7460 = vmatprep.subr.bf16.mxu1 %v8063_v38  ;;  %7414 = vmatprep.subr.bf16.mxu0 %v8058_v1 }
  0xbc   : > { %7335 = vmatmul.mubr.bf16.gmra.mxu0 %v8340_v32  ;;  %v8069_v32 = vld [vmem:[%s10452_s1 + $0x1c8] sm:$0xff]  }
  0xbd   : > { %7338 = vmatprep.mubr.bf16.mxu0 %v8358_v43  ;;  %7415 = vmatpush3.bf16.msra.mxu0 %v8058_v1  ;;  %v8068_v43 = vld [vmem:[%s10452_s1 + $0x180] sm:$0xff]  }
  0xbe   : > { %7461 = vmatpush3.bf16.msra.mxu1 %v8063_v38  ;;  %7416 = vmatprep.subr.bf16.mxu0 %v8061_v10  ;;  %v2465_v38 = vld [vmem:[#allocation2 + $0xa9] sm:$0xff] }
  0xbf   : > { %7462 = vmatprep.subr.bf16.mxu1 %v8065_v39 }
  0xc1   : > { %7383 = vmatmul.mubr.bf16.gmra.mxu1 %v8487_v12  ;;  %7417 = vmatpush3.bf16.msra.mxu0 %v8061_v10  ;;  %v2466_v10 = vld [vmem:[#allocation2 + $0xb1] sm:$0xff] }
  0xc2   : > { %7386 = vmatprep.mubr.bf16.mxu1 %v8505_v23  ;;  %7463 = vmatpush3.bf16.msra.mxu1 %v8065_v39  ;;  %v2488_v23 = vpack.c.bf16 %v2458_v31, %v2457_v13  ;;  %v8076_v13 = vld [vmem:[%s10452_s1 + $0x210] sm:$0xff]  }
  0xc3   : > { %7464 = vmatprep.subr.bf16.mxu1 %v8066_v26  ;;  %7418 = vmatprep.subr.bf16.mxu0 %v8064_v51 }
  0xc4   : > { %7339 = vmatmul.mubr.bf16.gmra.mxu0 %v8366_v46  ;;  %v1872_v46 = vld [vmem:[#allocation2 + $0x182] sm:$0xff] }
  0xc5   : > { %7342 = vmatprep.mubr.bf16.mxu0 %v8386_v59  ;;  %7419 = vmatpush3.bf16.msra.mxu0 %v8064_v51  ;;  %v1873_v59 = vld [vmem:[#allocation2 + $0x18a] sm:$0xff] }
  0xc6   : > { %7465 = vmatpush3.bf16.msra.mxu1 %v8066_v26  ;;  %7420 = vmatprep.subr.bf16.mxu0 %v8068_v43  ;;  %v8633_v12 = vpack.c.bf16 %v1873_v59, %v1872_v46  ;;  %v2161_v26 = vld [vmem:[#allocation2 + $0xc0] sm:$0xff]  ;;  %v2162_v51 = vld [vmem:[#allocation2 + $0xc8] sm:$0xff] }
  0xc7   : > { %7466 = vmatprep.subr.bf16.mxu1 %v8069_v32 }
  0xc9   : > { %7387 = vmatmul.mubr.bf16.gmra.mxu1 %v8507_v24  ;;  %7421 = vmatpush3.bf16.msra.mxu0 %v8068_v43  ;;  %v2183_v24 = vpack.c.bf16 %v2154_v15, %v2153_v14  ;;  %v2467_v43 = vld [vmem:[#allocation2 + $0xc1] sm:$0xff] }
  0xca   : > { %7390 = vmatprep.mubr.bf16.mxu1 %v8525_v37  ;;  %7467 = vmatpush3.bf16.msra.mxu1 %v8069_v32 }
  0xcb   : > { %7468 = vmatprep.subr.bf16.mxu1 %v8070_v57  ;;  %7502 = vmatprep.subr.bf16.mxu0 %v8071_v2 }
  0xcc   : > { %7343 = vmatmul.mubr.bf16.gmra.mxu0 %v8391_v61  ;;  %v2149_v61 = vld [vmem:[#allocation2 + $0x30] sm:$0xff] }
  0xcd   : > { %7346 = vmatprep.mubr.bf16.mxu0 %v8407_v5  ;;  %v2150_v5 = vld [vmem:[#allocation2 + $0x38] sm:$0xff] }
  0xce   : > { %7469 = vmatpush3.bf16.msra.mxu1 %v8070_v57  ;;  %v2468_v57 = vld [vmem:[#allocation2 + $0xc9] sm:$0xff] }
  0xd1   : > { %7391 = vmatmul.mubr.bf16.gmra.mxu1 %v8527_v40 }
  0xd2   : > { %7394 = vmatprep.mubr.bf16.mxu1 %v8533_v54  ;;  %v2463_v54 = vld [vmem:[#allocation2 + $0x91] sm:$0xff] }
  0xd4   : > { %7347 = vmatmul.mubr.bf16.gmra.mxu0 %v8412_v7  ;;  %v2456_v7 = vld [vmem:[#allocation2 + $0x39] sm:$0xff] }
  0xd5   : > { %7350 = vmatprep.mubr.bf16.mxu0 %v8422_v17  ;;  %v2181_v17 = vpack.c.bf16 %v2150_v5, %v2149_v61  ;;  %v2487_v11 = vpack.c.bf16 %v2456_v7, %v2455_v3  ;;  %v2186_v61 = vpack.c.bf16 %v2160_v56, %v2159_v53  ;;  %v2492_v3 = vpack.c.bf16 %v2466_v10, %v2465_v38  ;;  %v2474_v53 = vld [vmem:[#allocation2 + $0x111] sm:$0xff]  ;;  %v2169_v56 = vld [vmem:[#allocation2 + $0x120] sm:$0xff]  ;;  %v2170_v38 = vld [vmem:[#allocation2 + $0x128] sm:$0xff] }
  0xd6   : > { %v2187_v7 = vpack.c.bf16 %v2162_v51, %v2161_v26  ;;  %v2475_v10 = vld [vmem:[#allocation2 + $0x121] sm:$0xff]  ;;  %v2476_v26 = vld [vmem:[#allocation2 + $0x129] sm:$0xff] }
  0xd9   : > { %7395 = vmatmul.mubr.bf16.gmra.mxu1 %v8535_v44  ;;  %v2464_v44 = vld [vmem:[#allocation2 + $0x99] sm:$0xff] }
  0xda   : > { %7398 = vmatprep.mubr.bf16.mxu1 %v8541_v52  ;;  %v2490_v52 = vpack.c.bf16 %v2462_v36, %v2461_v34  ;;  %v2491_v0 = vpack.c.bf16 %v2464_v44, %v2463_v54  ;;  %v8077_v34 = vld [vmem:[%s10452_s1 + $0x208] sm:$0xff]  }
  0xdc   : > { %7351 = vmatmul.mubr.bf16.gmra.mxu0 %v8427_v21  ;;  %v2151_v21 = vld [vmem:[#allocation2 + $0x48] sm:$0xff] }
  0xdd   : > { %7354 = vmatprep.mubr.bf16.mxu0 %v8436_v28  ;;  %v2152_v28 = vld [vmem:[#allocation2 + $0x50] sm:$0xff] }
  0xde   : > { %v2182_v16 = vpack.c.bf16 %v2152_v28, %v2151_v21  ;;  %v2493_v21 = vpack.c.bf16 %v2468_v57, %v2467_v43 }
  0xe1   : > { %7399 = vmatmul.mubr.bf16.gmra.mxu1 %v8543_v6  ;;  %v2185_v6 = vpack.c.bf16 %v2158_v41, %v2157_v47 }
  0xe2   : > { %7402 = vmatprep.mubr.bf16.mxu1 %v8549_v9  ;;  %v8074_v9 = vld [vmem:[%s10452_s1 + $0x220] sm:$0xff]  }
  0xe4   : > { %7355 = vmatmul.mubr.bf16.gmra.mxu0 %v8631_v4 }
  0xe5   : > { %7422 = vmatprep.mubr.bf16.mxu0 %v2181_v17 }
  0xe9   : > { %7403 = vmatmul.mubr.bf16.gmra.mxu1 %v8633_v12 }
  0xea   : > { %7470 = vmatprep.mubr.bf16.mxu1 %v2487_v11 }
  0xec   : > { %v7136_v45 = vpop.f32.mrf.mxu0  ;;  %7423 = vmatmul.mubr.bf16.vlgmr.msra.gmra.mxu0 %v2182_v16  ;;  %v2163_v16 = vld [vmem:[#allocation2 + $0xd8] sm:$0xff] }
  0xed   : > { %7503 = vmatpush3.bf16.msra.mxu0 %v8071_v2  ;;  %7426 = vmatprep.mubr.bf16.mxu0 %v2183_v24  ;;  %v8075_v2 = vld [vmem:[%s10452_s1 + $0x218] sm:$0xff]   ;;  %v2188_v47 = vpack.c.bf16 %v2164_v18, %v2163_v16 }
  0xee   : > { %v588_v40 = vpop.f32.mrf.mxu0  ;;  %7504 = vmatprep.subr.bf16.mxu0 %v8072_v35 }
  0xf0   : > { %v7137_v49 = vpop.f32.mrf.mxu0 }
  0xf1   : > { %v7184_v30 = vpop.f32.mrf.mxu1  ;;  %7471 = vmatmul.mubr.bf16.vlgmr.msra.gmra.mxu1 %v2488_v23  ;;  %7505 = vmatpush3.bf16.msra.mxu0 %v8072_v35  ;;  %v2470_v35 = vld [vmem:[#allocation2 + $0xe1] sm:$0xff] }
  0xf2   : > { %v8640_v37 = vadd.f32 %v7184_v30, %v7136_v45  ;;  %7474 = vmatprep.mubr.bf16.mxu1 %v2489_v25  ;;  %v591_v58 = vpop.f32.mrf.mxu0  ;;  %7506 = vmatprep.subr.bf16.mxu0 %v8073_v60  ;;  %v2165_v25 = vld [vmem:[#allocation2 + $0xf0] sm:$0xff]  ;;  %v2166_v45 = vld [vmem:[#allocation2 + $0xf8] sm:$0xff] }
  0xf3   : > { %v797_v42 = vpop.f32.mrf.mxu1  ;;  %v2471_v30 = vld [vmem:[#allocation2 + $0xf1] sm:$0xff] }
  0xf4   : > { %v8645_v48 = vadd.f32 %v797_v42, %v588_v40  ;;  %v7140_v29 = vpop.f32.mrf.mxu0  ;;  %7427 = vmatmul.mubr.bf16.gmra.mxu0 %v2184_v50  ;;  %v2189_v42 = vpack.c.bf16 %v2166_v45, %v2165_v25  ;;  %v2479_v45 = vld [vmem:[#allocation2 + $0x151] sm:$0xff] }
  0xf5   : > { %v7185_v62 = vpop.f32.mrf.mxu1  ;;  %7430 = vmatprep.mubr.bf16.mxu0 %v2185_v6  ;;  %7507 = vmatpush3.bf16.msra.mxu0 %v8073_v60  ;;  %v2494_v60 = vpack.c.bf16 %v2470_v35, %v2469_v19  ;;  %v2478_v19 = vld [vmem:[#allocation2 + $0x141] sm:$0xff]  ;;  %v2174_v35 = vld [vmem:[#allocation2 + $0x158] sm:$0xff] }
  0xf6   : > { %v8647_v55 = vadd.f32 %v7185_v62, %v7137_v49  ;;  %v604_v39 = vpop.f32.mrf.mxu0  ;;  %7508 = vmatprep.subr.bf16.mxu0 %v8074_v9  ;;  %v2495_v49 = vpack.c.bf16 %v2472_v33, %v2471_v30  ;;  %v8078_v62 = vld [vmem:[%s10452_s1 + $0x200] sm:$0xff]  }
  0xf7   : > { %v800_v8 = vpop.f32.mrf.mxu1 }
  0xf8   : > { %v8652_v22 = vadd.f32 %v800_v8, %v591_v58  ;;  %v7141_v59 = vpop.f32.mrf.mxu0  ;;  %v2168_v8 = vld [vmem:[#allocation2 + $0x110] sm:$0xff] }
  0xf9   : > { %v7188_v63 = vpop.f32.mrf.mxu1  ;;  %7475 = vmatmul.mubr.bf16.gmra.mxu1 %v2490_v52  ;;  %7509 = vmatpush3.bf16.msra.mxu0 %v8074_v9  ;;  %v2473_v9 = vld [vmem:[#allocation2 + $0x109] sm:$0xff] }
  0xfa   : > { %v8654_v1 = vadd.f32 %v7188_v63, %v7140_v29  ;;  %7478 = vmatprep.mubr.bf16.mxu1 %v2491_v0  ;;  %v607_v11 = vpop.f32.mrf.mxu0  ;;  %7510 = vmatprep.subr.bf16.mxu0 %v8075_v2  ;;  %v2167_v0 = vld [vmem:[#allocation2 + $0x108] sm:$0xff] }
  0xfb   : > { %v813_v32 = vpop.f32.mrf.mxu1  ;;  %v2190_v43 = vpack.c.bf16 %v2168_v8, %v2167_v0 }
  0xfc   : > { %v8659_v46 = vadd.f32 %v813_v32, %v604_v39  ;;  %v7144_v14 = vpop.f32.mrf.mxu0  ;;  %7431 = vmatmul.mubr.bf16.gmra.mxu0 %v2186_v61 }
  0xfd   : > { %v7189_v5 = vpop.f32.mrf.mxu1  ;;  %7434 = vmatprep.mubr.bf16.mxu0 %v2187_v7  ;;  %7511 = vmatpush3.bf16.msra.mxu0 %v8075_v2  ;;  %v2496_v2 = vpack.c.bf16 %v2474_v53, %v2473_v9  ;;  %v2481_v9 = vld [vmem:[#allocation2 + $0x169] sm:$0xff] }
  0xfe   : > { %v8661_v17 = vadd.f32 %v7189_v5, %v7141_v59  ;;  %v620_v24 = vpop.f32.mrf.mxu0  ;;  %7512 = vmatprep.subr.bf16.mxu0 %v8076_v13  ;;  %v2191_v59 = vpack.c.bf16 %v2170_v38, %v2169_v56 }
  0xff   : > { %v816_v28 = vpop.f32.mrf.mxu1 }
 0x100   : > { %v8666_v31 = vadd.f32 %v816_v28, %v607_v11  ;;  %v7145_v40 = vpop.f32.mrf.mxu0 }
 0x101   : > { %v7192_v15 = vpop.f32.mrf.mxu1  ;;  %7479 = vmatmul.mubr.bf16.gmra.mxu1 %v2492_v3  ;;  %7513 = vmatpush3.bf16.msra.mxu0 %v8076_v13  ;;  %v2497_v3 = vpack.c.bf16 %v2476_v26, %v2475_v10  ;;  %v2171_v13 = vld [vmem:[#allocation2 + $0x138] sm:$0xff] }
 0x102   : > { %v8668_v23 = vadd.f32 %v7192_v15, %v7144_v14  ;;  %7482 = vmatprep.mubr.bf16.mxu1 %v2493_v21  ;;  %v623_v44 = vpop.f32.mrf.mxu0  ;;  %7514 = vmatprep.subr.bf16.mxu0 %v8077_v34  ;;  %v2172_v14 = vld [vmem:[#allocation2 + $0x140] sm:$0xff] }
 0x103   : > { %v829_v27 = vpop.f32.mrf.mxu1  ;;  %v2477_v15 = vld [vmem:[#allocation2 + $0x139] sm:$0xff] }
 0x104   : > { %v8673_v36 = vadd.f32 %v829_v27, %v620_v24  ;;  %v7148_v6 = vpop.f32.mrf.mxu0  ;;  %7435 = vmatmul.mubr.bf16.gmra.mxu0 %v2188_v47  ;;  %v2173_v24 = vld [vmem:[#allocation2 + $0x150] sm:$0xff]  ;;  %v2480_v27 = vld [vmem:[#allocation2 + $0x159] sm:$0xff]  ;;  %v2498_v47 = vpack.c.bf16 %v2478_v19, %v2477_v15 }
 0x105   : > { %v7193_v41 = vpop.f32.mrf.mxu1  ;;  %7438 = vmatprep.mubr.bf16.mxu0 %v2189_v42  ;;  %7515 = vmatpush3.bf16.msra.mxu0 %v8077_v34  ;;  %v2192_v34 = vpack.c.bf16 %v2172_v14, %v2171_v13  ;;  %v2762_v13 = vld [vmem:[#allocation2 + $0x3a] sm:$0xff] }
 0x106   : > { %v8675_v54 = vadd.f32 %v7193_v41, %v7145_v40  ;;  %v636_v63 = vpop.f32.mrf.mxu0  ;;  %7516 = vmatprep.subr.bf16.mxu0 %v8078_v62  ;;  %v2193_v41 = vpack.c.bf16 %v2174_v35, %v2173_v24  ;;  %v8151_v19 = vld [vmem:[#allocation2] sm:$0xff] }
 0x107   : > { %v832_v50 = vpop.f32.mrf.mxu1  ;;  %v8716_v24 = vpack.c.bf16 %v8151_v19, %v8151_v19 }
 0x108   : > { %v8680_v52 = vadd.f32 %v832_v50, %v623_v44  ;;  %v7149_v32 = vpop.f32.mrf.mxu0  ;;  %v2499_v44 = vpack.c.bf16 %v2480_v27, %v2479_v45 }
 0x109   : > { %v7196_v58 = vpop.f32.mrf.mxu1  ;;  %7483 = vmatmul.mubr.bf16.gmra.mxu1 %v2494_v60  ;;  %7517 = vmatpush3.bf16.msra.mxu0 %v8078_v62 }
 0x10a   : > { %v8682_v29 = vadd.f32 %v7196_v58, %v7148_v6  ;;  %7486 = vmatprep.mubr.bf16.mxu1 %v2495_v49  ;;  %v639_v5 = vpop.f32.mrf.mxu0  ;;  %v2175_v6 = vld [vmem:[#allocation2 + $0x168] sm:$0xff]  ;;  %v2176_v58 = vld [vmem:[#allocation2 + $0x170] sm:$0xff] }
 0x10b   : > { %v845_v39 = vpop.f32.mrf.mxu1 }
 0x10c   : > { %v8684_v51 = vadd.f32 %v845_v39, %v636_v63  ;;  %v7152_v21 = vpop.f32.mrf.mxu0  ;;  %7439 = vmatmul.mubr.bf16.gmra.mxu0 %v2190_v43  ;;  %v2482_v63 = vld [vmem:[#allocation2 + $0x171] sm:$0xff]  ;;  %v2194_v39 = vpack.c.bf16 %v2176_v58, %v2175_v6 }
 0x10d   : > { %v7197_v57 = vpop.f32.mrf.mxu1  ;;  %7442 = vmatprep.mubr.bf16.mxu0 %v2191_v59  ;;  %v2500_v26 = vpack.c.bf16 %v2482_v63, %v2481_v9 }
 0x10e   : > { %v8686_v61 = vadd.f32 %v7197_v57, %v7149_v32  ;;  %v652_v18 = vpop.f32.mrf.mxu0 }
 0x10f   : > { %v848_v7 = vpop.f32.mrf.mxu1 }
 0x110   : > { %v8688_v11 = vadd.f32 %v848_v7, %v639_v5  ;;  %v7153_v33 = vpop.f32.mrf.mxu0  ;;  %v2485_v5 = vld [vmem:[#allocation2 + $0x199] sm:$0xff] }
 0x111   : > { %v7200_v28 = vpop.f32.mrf.mxu1  ;;  %7487 = vmatmul.mubr.bf16.gmra.mxu1 %v2496_v2 }
 0x112   : > { %v8690_v16 = vadd.f32 %v7200_v28, %v7152_v21  ;;  %7490 = vmatprep.mubr.bf16.mxu1 %v2497_v3  ;;  %v8696_v42 = vpop.f32.mrf.mxu0  ;;  %v2486_v21 = vld [vmem:[#allocation2 + $0x1a1] sm:$0xff]  ;;  %v2761_v28 = vld [vmem:[#allocation2 + $0x32] sm:$0xff] }
 0x113   : > { %v861_v25 = vpop.f32.mrf.mxu1  ;;  %v2793_v45 = vpack.c.bf16 %v2762_v13, %v2761_v28  ;;  %v2769_v28 = vld [vmem:[#allocation2 + $0x92] sm:$0xff]  ;;  %v2770_v13 = vld [vmem:[#allocation2 + $0x9a] sm:$0xff] }
 0x114   : > { %v8692_v30 = vadd.f32 %v861_v25, %v652_v18  ;;  %v7156_v50 = vpop.f32.mrf.mxu0  ;;  %7443 = vmatmul.mubr.bf16.gmra.mxu0 %v2192_v34  ;;  %v2502_v25 = vpack.c.bf16 %v2486_v21, %v2485_v5  ;;  %v2767_v5 = vld [vmem:[#allocation2 + $0x7a] sm:$0xff] }
 0x115   : > { %v7201_v40 = vpop.f32.mrf.mxu1  ;;  %7446 = vmatprep.mubr.bf16.mxu0 %v2193_v41 }
 0x116   : > { %v8694_v60 = vadd.f32 %v7201_v40, %v7153_v33  ;;  %v668_v8 = vpop.f32.mrf.mxu0  ;;  %v2763_v40 = vld [vmem:[#allocation2 + $0x4a] sm:$0xff] }
 0x117   : > { %v8698_v49 = vpop.f32.mrf.mxu1 }
 0x118   : > { %v7157_v38 = vpop.f32.mrf.mxu0 }
 0x119   : > { %v7204_v62 = vpop.f32.mrf.mxu1  ;;  %7491 = vmatmul.mubr.bf16.gmra.mxu1 %v2498_v47  ;;  %v2764_v47 = vld [vmem:[#allocation2 + $0x52] sm:$0xff] }
 0x11a   : > { %v8700_v0 = vadd.f32 %v7204_v62, %v7156_v50  ;;  %7494 = vmatprep.mubr.bf16.mxu1 %v2499_v44  ;;  %v8706_v43 = vpop.f32.mrf.mxu0  ;;  %v2765_v50 = vld [vmem:[#allocation2 + $0x62] sm:$0xff]  ;;  %v2766_v62 = vld [vmem:[#allocation2 + $0x6a] sm:$0xff]  ;;  %v2794_v9 = vpack.c.bf16 %v2764_v47, %v2763_v40 }
 0x11b   : > { %v877_v53 = vpop.f32.mrf.mxu1 }
 0x11c   : > { %v8702_v56 = vadd.f32 %v877_v53, %v668_v8  ;;  %v7160_v2 = vpop.f32.mrf.mxu0  ;;  %7447 = vmatmul.mubr.bf16.gmra.mxu0 %v2194_v39  ;;  %v2795_v53 = vpack.c.bf16 %v2766_v62, %v2765_v50 }
 0x11d   : > { %v7205_v10 = vpop.f32.mrf.mxu1  ;;  %7450 = vmatprep.mubr.bf16.mxu0 %v8551_v20 }
 0x11e   : > { %v8704_v32 = vadd.f32 %v7205_v10, %v7157_v38  ;;  %v684_v7 = vpop.f32.mrf.mxu0 }
 0x11f   : > { %v8708_v57 = vpop.f32.mrf.mxu1 }
 0x120   : > { %v7161_v18 = vpop.f32.mrf.mxu0 }
 0x121   : > { %v7208_v59 = vpop.f32.mrf.mxu1  ;;  %7495 = vmatmul.mubr.bf16.gmra.mxu1 %v2500_v26 }
 0x122   : > { %v8711_v3 = vadd.f32 %v7208_v59, %v7160_v2  ;;  %7498 = vmatprep.mubr.bf16.mxu1 %v8631_v4  ;;  %v8720_v27 = vpop.f32.mrf.mxu0 }
 0x123   : > { %v893_v14 = vpop.f32.mrf.mxu1 }
 0x124   : > { %v8714_v15 = vadd.f32 %v893_v14, %v684_v7  ;;  %v7164_v4 = vpop.f32.mrf.mxu0  ;;  %7451 = vmatmul.mubr.bf16.gmra.mxu0 %v8716_v24  ;;  %v2768_v7 = vld [vmem:[#allocation2 + $0x82] sm:$0xff] }
 0x125   : > { %v7209_v35 = vpop.f32.mrf.mxu1  ;;  %7518 = vmatprep.mubr.bf16.mxu0 %v2793_v45 }
 0x126   : > { %v8718_v20 = vadd.f32 %v7209_v35, %v7161_v18  ;;  %v700_v44 = vpop.f32.mrf.mxu0 }
 0x127   : > { %v8722_v33 = vpop.f32.mrf.mxu1 }
 0x128   : > { %v7165_v8 = vpop.f32.mrf.mxu0 }
 0x129   : > { %v7212_v34 = vpop.f32.mrf.mxu1  ;;  %7499 = vmatmul.mubr.bf16.gmra.mxu1 %v2502_v25  ;;  %v2796_v25 = vpack.c.bf16 %v2768_v7, %v2767_v5 }
 0x12a   : > { %v8725_v41 = vadd.f32 %v7212_v34, %v7164_v4  ;;  %v8731_v39 = vpop.f32.mrf.mxu0 }
 0x12b   : > { %v909_v6 = vpop.f32.mrf.mxu1 }
 0x12c   : > { %v8727_v58 = vadd.f32 %v909_v6, %v700_v44  ;;  %v7232_v26 = vpop.f32.mrf.mxu0  ;;  %7519 = vmatmul.mubr.bf16.vlgmr.msra.gmra.mxu0 %v2794_v9 }
 0x12d   : > { %v7213_v63 = vpop.f32.mrf.mxu1  ;;  %v1200_v2 = vadd.f32 %v7232_v26, %v8640_v37  ;;  %7522 = vmatprep.mubr.bf16.mxu0 %v2795_v53  ;;  %v2797_v37 = vpack.c.bf16 %v2770_v13, %v2769_v28  ;;  %v2774_v53 = vld [vmem:[#allocation2 + $0xca] sm:$0xff] }
 0x12e   : > { %v8729_v38 = vadd.f32 %v7213_v63, %v7165_v8  ;;  %v1071_v21 = vpop.f32.mrf.mxu0  ;;  %v2771_v8 = vld [vmem:[#allocation2 + $0xaa] sm:$0xff]  ;;  %v2773_v63 = vld [vmem:[#allocation2 + $0xc2] sm:$0xff] }
 0x12f   : > { %v8733_v10 = vpop.f32.mrf.mxu1  ;;  %v1198_v14 = vadd.f32 %v1071_v21, %v8645_v48 }
 0x130   : > { %v7233_v35 = vpop.f32.mrf.mxu0 }
 0x131   : > { %v7280_v59 = vpop.f32.mrf.mxu1  ;;  %v1201_v45 = vadd.f32 %v7233_v35, %v8647_v55  ;;  %v2772_v55 = vld [vmem:[#allocation2 + $0xb2] sm:$0xff] }
 0x132   : > { %v8737_v18 = vadd.f32 %v7280_v59, %v1200_v2  ;;  %v1074_v40 = vpop.f32.mrf.mxu0  ;;  %v2798_v5 = vpack.c.bf16 %v2772_v55, %v2771_v8 }
 0x133   : > { %v1377_v19 = vpop.f32.mrf.mxu1  ;;  %v8743_v47 = vadd.f32 %v1074_v40, %v8652_v22  ;;  %v2777_v40 = vld [vmem:[#allocation2 + $0xf2] sm:$0xff] }
 0x134   : > { %v8740_v4 = vadd.f32 %v1377_v19, %v1198_v14  ;;  %v7236_v48 = vpop.f32.mrf.mxu0  ;;  %7523 = vmatmul.mubr.bf16.gmra.mxu0 %v2796_v25 }
 0x135   : > { %v7281_v34 = vpop.f32.mrf.mxu1  ;;  %v1204_v62 = vadd.f32 %v7236_v48, %v8654_v1  ;;  %7526 = vmatprep.mubr.bf16.mxu0 %v2797_v37  ;;  %v2799_v1 = vpack.c.bf16 %v2774_v53, %v2773_v63  ;;  %v2778_v48 = vld [vmem:[#allocation2 + $0xfa] sm:$0xff] }
 0x136   : > { %v8745_v44 = vadd.f32 %v7281_v34, %v1201_v45  ;;  %v1087_v9 = vpop.f32.mrf.mxu0  ;;  %v2775_v34 = vld [vmem:[#allocation2 + $0xda] sm:$0xff] }
 0x137   : > { %v8747_v50 = vpop.f32.mrf.mxu1  ;;  %v1202_v26 = vadd.f32 %v1087_v9, %v8659_v46 }
 0x138   : > { %v7237_v59 = vpop.f32.mrf.mxu0 }
 0x139   : > { %v7284_v6 = vpop.f32.mrf.mxu1  ;;  %v1205_v7 = vadd.f32 %v7237_v59, %v8661_v17  ;;  %v2776_v17 = vld [vmem:[#allocation2 + $0xe2] sm:$0xff] }
 0x13a   : > { %v8751_v2 = vadd.f32 %v7284_v6, %v1204_v62  ;;  %v1090_v13 = vpop.f32.mrf.mxu0  ;;  %v2800_v55 = vpack.c.bf16 %v2776_v17, %v2775_v34 }
 0x13b   : > { %v1393_v22 = vpop.f32.mrf.mxu1  ;;  %v8757_v14 = vadd.f32 %v1090_v13, %v8666_v31  ;;  %v2780_v13 = vld [vmem:[#allocation2 + $0x112] sm:$0xff] }
 0x13c   : > { %v8754_v21 = vadd.f32 %v1393_v22, %v1202_v26  ;;  %v7240_v46 = vpop.f32.mrf.mxu0  ;;  %7527 = vmatmul.mubr.bf16.gmra.mxu0 %v2798_v5 }
 0x13d   : > { %v7285_v28 = vpop.f32.mrf.mxu1  ;;  %v1208_v25 = vadd.f32 %v7240_v46, %v8668_v23  ;;  %7530 = vmatprep.mubr.bf16.mxu0 %v2799_v1  ;;  %v2801_v23 = vpack.c.bf16 %v2778_v48, %v2777_v40  ;;  %v2779_v1 = vld [vmem:[#allocation2 + $0x10a] sm:$0xff] }
 0x13e   : > { %v8759_v19 = vadd.f32 %v7285_v28, %v1205_v7  ;;  %v1103_v37 = vpop.f32.mrf.mxu0  ;;  %v2802_v40 = vpack.c.bf16 %v2780_v13, %v2779_v1 }
 0x13f   : > { %v8761_v35 = vpop.f32.mrf.mxu1  ;;  %v1206_v62 = vadd.f32 %v1103_v37, %v8673_v36  ;;  %v8079_v36 = vld [vmem:[%s10454_s3 + $0x78] sm:$0xff]  }
 0x140   : > { %v7241_v8 = vpop.f32.mrf.mxu0  ;;  %7550 = vmatprep.subr.bf16.mxu1 %v8079_v36 }
 0x141   : > { %v7288_v45 = vpop.f32.mrf.mxu1  ;;  %v1209_v9 = vadd.f32 %v7241_v8, %v8675_v54  ;;  %7551 = vmatpush3.bf16.msra.mxu1 %v8079_v36  ;;  %v2783_v36 = vld [vmem:[#allocation2 + $0x13a] sm:$0xff] }
 0x142   : > { %v8765_v6 = vadd.f32 %v7288_v45, %v1208_v25  ;;  %v1106_v26 = vpop.f32.mrf.mxu0  ;;  %v2782_v25 = vld [vmem:[#allocation2 + $0x12a] sm:$0xff] }
 0x143   : > { %v1409_v31 = vpop.f32.mrf.mxu1  ;;  %v8771_v22 = vadd.f32 %v1106_v26, %v8680_v52  ;;  %v2781_v52 = vld [vmem:[#allocation2 + $0x122] sm:$0xff] }
 0x144   : > { %v8768_v63 = vadd.f32 %v1409_v31, %v1206_v62  ;;  %v7244_v7 = vpop.f32.mrf.mxu0  ;;  %7531 = vmatmul.mubr.bf16.gmra.mxu0 %v2800_v55  ;;  %v2803_v31 = vpack.c.bf16 %v2782_v25, %v2781_v52 }
 0x145   : > { %v7289_v53 = vpop.f32.mrf.mxu1  ;;  %v1212_v54 = vadd.f32 %v7244_v7, %v8682_v29  ;;  %7534 = vmatprep.mubr.bf16.mxu0 %v2801_v23  ;;  %v2784_v7 = vld [vmem:[#allocation2 + $0x142] sm:$0xff] }
 0x146   : > { %v8773_v59 = vadd.f32 %v7289_v53, %v1209_v9  ;;  %v1119_v46 = vpop.f32.mrf.mxu0  ;;  %v2804_v25 = vpack.c.bf16 %v2784_v7, %v2783_v36 }
 0x147   : > { %v8775_v5 = vpop.f32.mrf.mxu1  ;;  %v1210_v45 = vadd.f32 %v1119_v46, %v8684_v51  ;;  %v8080_v51 = vld [vmem:[%s10454_s3 + $0x70] sm:$0xff]  }
 0x148   : > { %v7245_v37 = vpop.f32.mrf.mxu0  ;;  %7552 = vmatprep.subr.bf16.mxu1 %v8080_v51 }
 0x149   : > { %v7292_v28 = vpop.f32.mrf.mxu1  ;;  %v1213_v48 = vadd.f32 %v7245_v37, %v8686_v61  ;;  %7553 = vmatpush3.bf16.msra.mxu1 %v8080_v51 }
 0x14a   : > { %v8782_v34 = vadd.f32 %v7292_v28, %v1212_v54  ;;  %v1122_v8 = vpop.f32.mrf.mxu0  ;;  %v2786_v28 = vld [vmem:[#allocation2 + $0x15a] sm:$0xff] }
 0x14b   : > { %v1425_v17 = vpop.f32.mrf.mxu1  ;;  %v8788_v55 = vadd.f32 %v1122_v8, %v8688_v11  ;;  %v2785_v11 = vld [vmem:[#allocation2 + $0x152] sm:$0xff] }
 0x14c   : > { %v8785_v62 = vadd.f32 %v1425_v17, %v1210_v45  ;;  %v7248_v23 = vpop.f32.mrf.mxu0  ;;  %7535 = vmatmul.mubr.bf16.gmra.mxu0 %v2802_v40  ;;  %v2805_v37 = vpack.c.bf16 %v2786_v28, %v2785_v11 }
 0x14d   : > { %v7293_v29 = vpop.f32.mrf.mxu1  ;;  %v1216_v61 = vadd.f32 %v7248_v23, %v8690_v16  ;;  %7538 = vmatprep.mubr.bf16.mxu0 %v2803_v31  ;;  %v2788_v23 = vld [vmem:[#allocation2 + $0x172] sm:$0xff] }
 0x14e   : > { %v8790_v9 = vadd.f32 %v7293_v29, %v1213_v48  ;;  %v1135_v54 = vpop.f32.mrf.mxu0 }
 0x14f   : > { %v8792_v53 = vpop.f32.mrf.mxu1  ;;  %v1214_v1 = vadd.f32 %v1135_v54, %v8692_v30  ;;  %v8081_v30 = vld [vmem:[%s10454_s3 + $0x68] sm:$0xff]  }
 0x150   : > { %v7249_v52 = vpop.f32.mrf.mxu0  ;;  %7554 = vmatprep.subr.bf16.mxu1 %v8081_v30 }
 0x151   : > { %v7296_v26 = vpop.f32.mrf.mxu1  ;;  %v1217_v45 = vadd.f32 %v7249_v52, %v8694_v60  ;;  %v2787_v60 = vld [vmem:[#allocation2 + $0x16a] sm:$0xff]  ;;  %7555 = vmatpush3.bf16.msra.mxu1 %v8081_v30  ;;  %v2792_v30 = vld [vmem:[#allocation2 + $0x1a2] sm:$0xff] }
 0x152   : > { %v8799_v13 = vadd.f32 %v7296_v26, %v1216_v61  ;;  %v8804_v40 = vpop.f32.mrf.mxu0  ;;  %v2806_v11 = vpack.c.bf16 %v2788_v23, %v2787_v60 }
 0x153   : > { %v1441_v46 = vpop.f32.mrf.mxu1 }
 0x154   : > { %v8802_v17 = vadd.f32 %v1441_v46, %v1214_v1  ;;  %v7252_v31 = vpop.f32.mrf.mxu0  ;;  %7539 = vmatmul.mubr.bf16.gmra.mxu0 %v2804_v25 }
 0x155   : > { %v7297_v16 = vpop.f32.mrf.mxu1  ;;  %v1220_v8 = vadd.f32 %v7252_v31, %v8700_v0  ;;  %7542 = vmatprep.mubr.bf16.mxu0 %v2805_v37 }
 0x156   : > { %v8806_v48 = vadd.f32 %v7297_v16, %v1217_v45  ;;  %v1151_v61 = vpop.f32.mrf.mxu0 }
 0x157   : > { %v8808_v29 = vpop.f32.mrf.mxu1  ;;  %v1218_v26 = vadd.f32 %v1151_v61, %v8702_v56  ;;  %v8082_v56 = vld [vmem:[%s10454_s3 + $0x60] sm:$0xff]  }
 0x158   : > { %10459 = vst [vmem:[#allocation3_spill] sm:$0xff] %v8808_v29  ;;  %v7253_v54 = vpop.f32.mrf.mxu0  ;;  %7556 = vmatprep.subr.bf16.mxu1 %v8082_v56 }
 0x159   : > { %v7300_v51 = vpop.f32.mrf.mxu1  ;;  %v1221_v28 = vadd.f32 %v7253_v54, %v8704_v32  ;;  %v2791_v32 = vld [vmem:[#allocation2 + $0x19a] sm:$0xff]  ;;  %7557 = vmatpush3.bf16.msra.mxu1 %v8082_v56 }
 0x15a   : > { %v8815_v36 = vadd.f32 %v7300_v51, %v1220_v8  ;;  %v8820_v0 = vpop.f32.mrf.mxu0  ;;  %v2808_v61 = vpack.c.bf16 %v2792_v30, %v2791_v32 }
 0x15b   : > { %v1457_v7 = vpop.f32.mrf.mxu1 }
 0x15c   : > { %v8818_v1 = vadd.f32 %v1457_v7, %v1218_v26  ;;  %v7256_v45 = vpop.f32.mrf.mxu0  ;;  %7543 = vmatmul.mubr.bf16.gmra.mxu0 %v2806_v11 }
 0x15d   : > { %v7301_v46 = vpop.f32.mrf.mxu1  ;;  %v1224_v16 = vadd.f32 %v7256_v45, %v8711_v3  ;;  %7546 = vmatprep.mubr.bf16.mxu0 %v8633_v12  ;;  %v8084_v12 = vld [vmem:[%s10454_s3 + $0x38] sm:$0xff]  }
 0x15e   : > { %v8822_v52 = vadd.f32 %v7301_v46, %v1221_v28  ;;  %v1167_v31 = vpop.f32.mrf.mxu0  ;;  %7598 = vmatprep.subr.bf16.mxu0 %v8084_v12 }
 0x15f   : > { %v8824_v25 = vpop.f32.mrf.mxu1  ;;  %v1222_v8 = vadd.f32 %v1167_v31, %v8714_v15  ;;  %v8083_v15 = vld [vmem:[%s10454_s3 + $0x58] sm:$0xff]   ;;  %7599 = vmatpush3.bf16.msra.mxu0 %v8084_v12 }
 0x160   : > { %10460 = vst [vmem:[#allocation4_spill] sm:$0xff] %v8824_v25  ;;  %v7257_v23 = vpop.f32.mrf.mxu0  ;;  %7558 = vmatprep.subr.bf16.mxu1 %v8083_v15 }
 0x161   : > { %v7304_v37 = vpop.f32.mrf.mxu1  ;;  %v1225_v26 = vadd.f32 %v7257_v23, %v8718_v20  ;;  %7559 = vmatpush3.bf16.msra.mxu1 %v8083_v15 }
 0x162   : > { %v8832_v51 = vadd.f32 %v7304_v37, %v1224_v16  ;;  %v8837_v54 = vpop.f32.mrf.mxu0  ;;  %v8085_v16 = vld [vmem:[%s10454_s3 + $0x30] sm:$0xff]  }
 0x163   : > { %v1473_v60 = vpop.f32.mrf.mxu1  ;;  %10461 = vst [vmem:[#allocation5_spill] sm:$0xff] %v8837_v54  ;;  %7600 = vmatprep.subr.bf16.mxu0 %v8085_v16 }
 0x164   : > { %v8835_v7 = vadd.f32 %v1473_v60, %v1222_v8  ;;  %v7260_v46 = vpop.f32.mrf.mxu0  ;;  %7547 = vmatmul.mubr.bf16.gmra.mxu0 %v2808_v61  ;;  %v8087_v61 = vld [vmem:[%s10454_s3 + $0x28] sm:$0xff]  }
 0x165   : > { %v7305_v3 = vpop.f32.mrf.mxu1  ;;  %v1228_v20 = vadd.f32 %v7260_v46, %v8725_v41  ;;  %7601 = vmatpush3.bf16.msra.mxu0 %v8085_v16  ;;  %7614 = vmatprep.mubr.bf16.mxu0 %v8716_v24  ;;  %v8968_v24 = vld [vmem:[%s10454_s3 + $0xb8] sm:$0xff]  }
 0x166   : > { %v8842_v11 = vadd.f32 %v7305_v3, %v1225_v26  ;;  %v1183_v45 = vpop.f32.mrf.mxu0  ;;  %v8086_v3 = vld [vmem:[%s10454_s3 + $0x50] sm:$0xff]   ;;  %7602 = vmatprep.subr.bf16.mxu0 %v8087_v61  ;;  %10476 = vst [vmem:[#allocation20_spill] sm:$0xff] %v8968_v24 }
 0x167   : > { %v8844_v28 = vpop.f32.mrf.mxu1  ;;  %v1226_v37 = vadd.f32 %v1183_v45, %v8727_v58  ;;  %7560 = vmatprep.subr.bf16.mxu1 %v8086_v3 }
 0x168   : > { %10462 = vst [vmem:[#allocation6_spill] sm:$0xff] %v8844_v28  ;;  %v7261_v31 = vpop.f32.mrf.mxu0  ;;  %7561 = vmatpush3.bf16.msra.mxu1 %v8086_v3 }
 0x169   : > { %v7308_v56 = vpop.f32.mrf.mxu1  ;;  %v1229_v8 = vadd.f32 %v7261_v31, %v8729_v38  ;;  %7603 = vmatpush3.bf16.msra.mxu0 %v8087_v61  ;;  %v8089_v31 = vld [vmem:[%s10454_s3 + $0x48] sm:$0xff]  }
 0x16a   : > { %v8854_v32 = vadd.f32 %v7308_v56, %v1228_v20  ;;  %v8859_v23 = vpop.f32.mrf.mxu0  ;;  %v8088_v20 = vld [vmem:[%s10454_s3 + $0x20] sm:$0xff]   ;;  %7562 = vmatprep.subr.bf16.mxu1 %v8089_v31 }
 0x16b   : > { %v1489_v30 = vpop.f32.mrf.mxu1  ;;  %10463 = vst [vmem:[#allocation7_spill] sm:$0xff] %v8859_v23  ;;  %7604 = vmatprep.subr.bf16.mxu0 %v8088_v20 }
 0x16c   : > { %v8857_v60 = vadd.f32 %v1489_v30, %v1226_v37  ;;  %v7328_v12 = vpop.f32.mrf.mxu0  ;;  %7563 = vmatpush3.bf16.msra.mxu1 %v8089_v31  ;;  %v3235_v31 = vld [vmem:[#allocation2 + $0x9] sm:$0xff] }
 0x16d   : > { %v7309_v41 = vpop.f32.mrf.mxu1  ;;  %v8872_v38 = vadd.f32 %v7328_v12, %v8737_v18  ;;  %7605 = vmatpush3.bf16.msra.mxu0 %v8088_v20  ;;  %v8091_v12 = vld [vmem:[%s10454_s3 + $0x10] sm:$0xff]  }
 0x16e   : > { %v8864_v26 = vadd.f32 %v7309_v41, %v1229_v8  ;;  %v1683_v46 = vpop.f32.mrf.mxu0 }
 0x16f   : > { %v8866_v58 = vpop.f32.mrf.mxu1  ;;  %v8880_v56 = vadd.f32 %v1683_v46, %v8740_v4  ;;  %v8090_v4 = vld [vmem:[%s10454_s3 + $0x18] sm:$0xff]   ;;  %v8092_v46 = vld [vmem:[%s10454_s3 + $0x40] sm:$0xff]  }
 0x170   : > { %10464 = vst [vmem:[#allocation8_spill] sm:$0xff] %v8866_v58  ;;  %v7329_v16 = vpop.f32.mrf.mxu0  ;;  %7606 = vmatprep.subr.bf16.mxu0 %v8090_v4  ;;  %7564 = vmatprep.subr.bf16.mxu1 %v8092_v46 }
 0x171   : > { %v8874_v15 = vpop.f32.mrf.mxu1  ;;  %v8885_v18 = vadd.f32 %v7329_v16, %v8745_v44  ;;  %7607 = vmatpush3.bf16.msra.mxu0 %v8090_v4  ;;  %7565 = vmatpush3.bf16.msra.mxu1 %v8092_v46  ;;  %v8094_v46 = vld [vmem:[%s10454_s3] sm:$0xff]  }
 0x172   : > { %v8889_v30 = vpop.f32.mrf.mxu0  ;;  %7608 = vmatprep.subr.bf16.mxu0 %v8091_v12  ;;  %7646 = vmatprep.subr.bf16.mxu1 %v8968_v24 }
 0x173   : > { %v8882_v45 = vpop.f32.mrf.mxu1 }
 0x174   : > { %v7332_v41 = vpop.f32.mrf.mxu0 }
 0x175   : > { %v8887_v37 = vpop.f32.mrf.mxu1  ;;  %v8900_v44 = vadd.f32 %v7332_v41, %v8751_v2  ;;  %v3234_v41 = vld [vmem:[#allocation2 + $0x1] sm:$0xff]  ;;  %7609 = vmatpush3.bf16.msra.mxu0 %v8091_v12 }
 0x176   : > { %v1699_v3 = vpop.f32.mrf.mxu0  ;;  %v3266_v23 = vpack.c.bf16 %v3235_v31, %v3234_v41 }
 0x177   : > { %v8897_v8 = vpop.f32.mrf.mxu1  ;;  %v8911_v20 = vadd.f32 %v1699_v3, %v8754_v21  ;;  %v8093_v21 = vld [vmem:[%s10454_s3 + $0x8] sm:$0xff]  }
 0x178   : > { %v7333_v2 = vpop.f32.mrf.mxu0  ;;  %7566 = vmatprep.mubr.bf16.mxu1 %v3266_v23  ;;  %7610 = vmatprep.subr.bf16.mxu0 %v8093_v21 }
 0x179   : > { %v8902_v61 = vpop.f32.mrf.mxu1  ;;  %v8916_v4 = vadd.f32 %v7333_v2, %v8759_v19  ;;  %7611 = vmatpush3.bf16.msra.mxu0 %v8093_v21 }
 0x17a   : > { %v8920_v28 = vpop.f32.mrf.mxu0  ;;  %7612 = vmatprep.subr.bf16.mxu0 %v8094_v46 }
 0x17b   : > { %v8913_v16 = vpop.f32.mrf.mxu1 }
 0x17c   : > { %v7336_v25 = vpop.f32.mrf.mxu0 }
 0x17d   : > { %v8918_v58 = vpop.f32.mrf.mxu1  ;;  %v8928_v29 = vadd.f32 %v7336_v25, %v8765_v6  ;;  %7613 = vmatpush3.bf16.msra.mxu0 %v8094_v46 }
 0x17e   : > { %v1715_v12 = vpop.f32.mrf.mxu0 }
 0x17f   : > { %v8925_v3 = vpop.f32.mrf.mxu1  ;;  %v8936_v2 = vadd.f32 %v1715_v12, %v8768_v63 }
 0x180   : > { %v7337_v31 = vpop.f32.mrf.mxu0 }
 0x181   : > { %v8930_v19 = vpop.f32.mrf.mxu1  ;;  %10465 = vst [vmem:[#allocation9_spill] sm:$0xff] %v8936_v2  ;;  %v8941_v23 = vadd.f32 %v7337_v31, %v8773_v59 }
 0x182   : > { %v8945_v25 = vpop.f32.mrf.mxu0 }
 0x183   : > { %v8938_v41 = vpop.f32.mrf.mxu1  ;;  %10467 = vst [vmem:[#allocation11_spill] sm:$0xff] %v8941_v23 }
 0x184   : > { %10466 = vst [vmem:[#allocation10_spill] sm:$0xff] %v8938_v41  ;;  %v7340_v54 = vpop.f32.mrf.mxu0 }
 0x185   : > { %v8943_v6 = vpop.f32.mrf.mxu1  ;;  %v8951_v63 = vadd.f32 %v7340_v54, %v8782_v34 }
 0x186   : > { %10468 = vst [vmem:[#allocation12_spill] sm:$0xff] %v8943_v6  ;;  %v1731_v41 = vpop.f32.mrf.mxu0 }
 0x187   : > { %v8947_v21 = vpop.f32.mrf.mxu1  ;;  %10470 = vst [vmem:[#allocation14_spill] sm:$0xff] %v8951_v63  ;;  %v8956_v2 = vadd.f32 %v1731_v41, %v8785_v62 }
 0x188   : > { %10469 = vst [vmem:[#allocation13_spill] sm:$0xff] %v8947_v21  ;;  %v7341_v31 = vpop.f32.mrf.mxu0 }
 0x189   : > { %v8953_v12 = vpop.f32.mrf.mxu1  ;;  %10472 = vst [vmem:[#allocation16_spill] sm:$0xff] %v8956_v2  ;;  %v8961_v46 = vadd.f32 %v7341_v31, %v8790_v9 }
 0x18a   : > { %10471 = vst [vmem:[#allocation15_spill] sm:$0xff] %v8953_v12  ;;  %v8970_v34 = vpop.f32.mrf.mxu0 }
 0x18b   : > { %v8958_v59 = vpop.f32.mrf.mxu1  ;;  %10474 = vst [vmem:[#allocation18_spill] sm:$0xff] %v8961_v46  ;;  %10477 = vst [vmem:[#allocation21_spill] sm:$0xff] %v8970_v34 }
 0x18c   : > { %10473 = vst [vmem:[#allocation17_spill] sm:$0xff] %v8958_v59  ;;  %v7344_v62 = vpop.f32.mrf.mxu0 }
 0x18d   : > { %v8963_v6 = vpop.f32.mrf.mxu1  ;;  %v8976_v41 = vadd.f32 %v7344_v62, %v8799_v13 }
 0x18e   : > { %10475 = vst [vmem:[#allocation19_spill] sm:$0xff] %v8963_v6  ;;  %v1747_v9 = vpop.f32.mrf.mxu0 }
 0x18f   : > { %v8972_v54 = vpop.f32.mrf.mxu1  ;;  %10479 = vst [vmem:[#allocation23_spill] sm:$0xff] %v8976_v41  ;;  %v8981_v31 = vadd.f32 %v1747_v9, %v8802_v17 }
 0x190   : > { %10478 = vst [vmem:[#allocation22_spill] sm:$0xff] %v8972_v54  ;;  %v7345_v46 = vpop.f32.mrf.mxu0 }
 0x191   : > { %v8978_v59 = vpop.f32.mrf.mxu1  ;;  %10481 = vst [vmem:[#allocation25_spill] sm:$0xff] %v8981_v31  ;;  %v8986_v2 = vadd.f32 %v7345_v46, %v8806_v48 }
 0x192   : > { %10480 = vst [vmem:[#allocation24_spill] sm:$0xff] %v8978_v59  ;;  %v8990_v54 = vpop.f32.mrf.mxu0 }
 0x193   : > { %v8983_v6 = vpop.f32.mrf.mxu1  ;;  %10483 = vst [vmem:[#allocation27_spill] sm:$0xff] %v8986_v2  ;;  %10485 = vst [vmem:[#allocation29_spill] sm:$0xff] %v8990_v54 }
 0x194   : > { %10482 = vst [vmem:[#allocation26_spill] sm:$0xff] %v8983_v6  ;;  %v7348_v13 = vpop.f32.mrf.mxu0 }
 0x195   : > { %v8988_v34 = vpop.f32.mrf.mxu1  ;;  %v8995_v62 = vadd.f32 %v7348_v13, %v8815_v36 }
 0x196   : > { %10484 = vst [vmem:[#allocation28_spill] sm:$0xff] %v8988_v34  ;;  %v1763_v17 = vpop.f32.mrf.mxu0 }
 0x197   : > { %v8992_v24 = vpop.f32.mrf.mxu1  ;;  %10487 = vst [vmem:[#allocation31_spill] sm:$0xff] %v8995_v62  ;;  %v9000_v9 = vadd.f32 %v1763_v17, %v8818_v1 }
 0x198   : > { %10486 = vst [vmem:[#allocation30_spill] sm:$0xff] %v8992_v24  ;;  %v7349_v48 = vpop.f32.mrf.mxu0 }
 0x199   : > { %v8997_v59 = vpop.f32.mrf.mxu1  ;;  %10489 = vst [vmem:[#allocation33_spill] sm:$0xff] %v9000_v9  ;;  %v9005_v46 = vadd.f32 %v7349_v48, %v8822_v52 }
 0x19a   : > { %10488 = vst [vmem:[#allocation32_spill] sm:$0xff] %v8997_v59  ;;  %v9009_v2 = vpop.f32.mrf.mxu0 }
 0x19b   : > { %v9002_v6 = vpop.f32.mrf.mxu1  ;;  %10491 = vst [vmem:[#allocation35_spill] sm:$0xff] %v9005_v46  ;;  %10493 = vst [vmem:[#allocation37_spill] sm:$0xff] %v9009_v2 }
 0x19c   : > { %10490 = vst [vmem:[#allocation34_spill] sm:$0xff] %v9002_v6  ;;  %v7352_v36 = vpop.f32.mrf.mxu0 }
 0x19d   : > { %v9007_v34 = vpop.f32.mrf.mxu1  ;;  %v9014_v13 = vadd.f32 %v7352_v36, %v8832_v51  ;;  %v9033_v51 = vld [vmem:[%s10454_s3 + $0xf8] sm:$0xff]  }
 0x19e   : > { %10492 = vst [vmem:[#allocation36_spill] sm:$0xff] %v9007_v34  ;;  %v1779_v1 = vpop.f32.mrf.mxu0  ;;  %10502 = vst [vmem:[#allocation46_spill] sm:$0xff] %v9033_v51  ;;  %7694 = vmatprep.subr.bf16.mxu0 %v9033_v51 }
 0x19f   : > { %v9011_v24 = vpop.f32.mrf.mxu1  ;;  %10495 = vst [vmem:[#allocation39_spill] sm:$0xff] %v9014_v13  ;;  %v9019_v17 = vadd.f32 %v1779_v1, %v8835_v7 }
 0x1a0   : > { %10494 = vst [vmem:[#allocation38_spill] sm:$0xff] %v9011_v24  ;;  %v7353_v52 = vpop.f32.mrf.mxu0 }
 0x1a1   : > { %v9016_v59 = vpop.f32.mrf.mxu1  ;;  %10497 = vst [vmem:[#allocation41_spill] sm:$0xff] %v9019_v17  ;;  %v9024_v48 = vadd.f32 %v7353_v52, %v8842_v11 }
 0x1a2   : > { %10496 = vst [vmem:[#allocation40_spill] sm:$0xff] %v9016_v59  ;;  %v9028_v46 = vpop.f32.mrf.mxu0 }
 0x1a3   : > { %v9021_v6 = vpop.f32.mrf.mxu1  ;;  %10499 = vst [vmem:[#allocation43_spill] sm:$0xff] %v9024_v48  ;;  %10501 = vst [vmem:[#allocation45_spill] sm:$0xff] %v9028_v46 }
 0x1a4   : > { %10498 = vst [vmem:[#allocation42_spill] sm:$0xff] %v9021_v6  ;;  %v7356_v59 = vpop.f32.mrf.mxu0 }
 0x1a5   : > { %v9026_v34 = vpop.f32.mrf.mxu1  ;;  %v9039_v7 = vadd.f32 %v7356_v59, %v8854_v32 }
 0x1a6   : > { %10500 = vst [vmem:[#allocation44_spill] sm:$0xff] %v9026_v34  ;;  %v1795_v11 = vpop.f32.mrf.mxu0 }
 0x1a7   : > { %v9035_v36 = vpop.f32.mrf.mxu1  ;;  %10504 = vst [vmem:[#allocation48_spill] sm:$0xff] %v9039_v7  ;;  %v9044_v52 = vadd.f32 %v1795_v11, %v8857_v60 }
 0x1a8   : > { %10503 = vst [vmem:[#allocation47_spill] sm:$0xff] %v9035_v36  ;;  %v7357_v48 = vpop.f32.mrf.mxu0 }
 0x1a9   : > { %v9041_v1 = vpop.f32.mrf.mxu1  ;;  %10506 = vst [vmem:[#allocation50_spill] sm:$0xff] %v9044_v52  ;;  %v9049_v6 = vadd.f32 %v7357_v48, %v8864_v26 }
 0x1aa   : > { %10505 = vst [vmem:[#allocation49_spill] sm:$0xff] %v9041_v1  ;;  %v9053_v36 = vpop.f32.mrf.mxu0 }
 0x1ab   : > { %v9046_v34 = vpop.f32.mrf.mxu1  ;;  %10508 = vst [vmem:[#allocation52_spill] sm:$0xff] %v9049_v6  ;;  %10510 = vst [vmem:[#allocation54_spill] sm:$0xff] %v9053_v36 }
 0x1ac   : > { %10507 = vst [vmem:[#allocation51_spill] sm:$0xff] %v9046_v34  ;;  %v7424_v32 = vpop.f32.mrf.mxu0 }
 0x1ad   : > { %v9051_v17 = vpop.f32.mrf.mxu1 }
 0x1ae   : > { %10509 = vst [vmem:[#allocation53_spill] sm:$0xff] %v9051_v17  ;;  %v2296_v7 = vpop.f32.mrf.mxu0 }
 0x1af   : > { %v9055_v46 = vpop.f32.mrf.mxu1 }
 0x1b0   : > { %10511 = vst [vmem:[#allocation55_spill] sm:$0xff] %v9055_v46  ;;  %v7425_v13 = vpop.f32.mrf.mxu0 }
 0x1b1   : > { %v7472_v59 = vpop.f32.mrf.mxu1 }
 0x1b2   : > { %v2299_v60 = vpop.f32.mrf.mxu0 }
 0x1b3   : > { %v2602_v1 = vpop.f32.mrf.mxu1 }
 0x1b4   : > { %v9059_v11 = vpop.f32.mrf.mxu0 }
 0x1b5   : > { %v9057_v24 = vpop.f32.mrf.mxu1 }
 0x1b6   : > { %v9063_v26 = vpop.f32.mrf.mxu0 }
 0x1b7   : > { %v9061_v34 = vpop.f32.mrf.mxu1 }
 0x1b8   : > { %v9065_v48 = vpop.f32.mrf.mxu0 }
 0x1b9   : > { %v9067_v17 = vpop.f32.mrf.mxu1 }
 0x1ba   : > { %v9069_v6 = vpop.f32.mrf.mxu0 }
 0x1bb   : > { %v9073_v36 = vpop.f32.mrf.mxu1 }
 0x1bc   : > { %v9071_v46 = vpop.f32.mrf.mxu0 }
 0x1bd   : > { %v9079_v2 = vpop.f32.mrf.mxu1 }
 0x1be   : > { %v9075_v52 = vpop.f32.mrf.mxu0 }
 0x1bf   : > { %10512 = vst [vmem:[#allocation56_spill] sm:$0xff] %v9075_v52  ;;  %v9085_v31 = vpop.f32.mrf.mxu1 }
 0x1c0   : > { %v9077_v9 = vpop.f32.mrf.mxu0  ;;  %10516 = vst [vmem:[#allocation60_spill] sm:$0xff] %v9085_v31 }
 0x1c1   : > { %10513 = vst [vmem:[#allocation57_spill] sm:$0xff] %v9077_v9  ;;  %v9091_v12 = vpop.f32.mrf.mxu1 }
 0x1c2   : > { %v9081_v62 = vpop.f32.mrf.mxu0  ;;  %10519 = vst [vmem:[#allocation63_spill] sm:$0xff] %v9091_v12 }
 0x1c3   : > { %10514 = vst [vmem:[#allocation58_spill] sm:$0xff] %v9081_v62  ;;  %v9097_v52 = vpop.f32.mrf.mxu1 }
 0x1c4   : > { %v9083_v51 = vpop.f32.mrf.mxu0  ;;  %10522 = vst [vmem:[#allocation66_spill] sm:$0xff] %v9097_v52 }
 0x1c5   : > { %10515 = vst [vmem:[#allocation59_spill] sm:$0xff] %v9083_v51  ;;  %v9103_v62 = vpop.f32.mrf.mxu1 }
 0x1c6   : > { %v9087_v54 = vpop.f32.mrf.mxu0  ;;  %10525 = vst [vmem:[#allocation69_spill] sm:$0xff] %v9103_v62 }
 0x1c7   : > { %10517 = vst [vmem:[#allocation61_spill] sm:$0xff] %v9087_v54  ;;  %v9109_v54 = vpop.f32.mrf.mxu1 }
 0x1c8   : > { %v9089_v41 = vpop.f32.mrf.mxu0 }
 0x1c9   : > { %10518 = vst [vmem:[#allocation62_spill] sm:$0xff] %v9089_v41 }
 0x1ca   : > { %v9093_v63 = vpop.f32.mrf.mxu0 }
 0x1cb   : > { %10520 = vst [vmem:[#allocation64_spill] sm:$0xff] %v9093_v63  ;;  %v9115_v63 = vpop.f32.mrf.mxu1 }
 0x1cc   : > { %v9095_v21 = vpop.f32.mrf.mxu0  ;;  %10530 = vst [vmem:[#allocation74_spill] sm:$0xff] %v9115_v63 }
 0x1cd   : > { %10521 = vst [vmem:[#allocation65_spill] sm:$0xff] %v9095_v21 }
 0x1ce   : > { %v9099_v9 = vpop.f32.mrf.mxu0 }
 0x1cf   : > { %10523 = vst [vmem:[#allocation67_spill] sm:$0xff] %v9099_v9  ;;  %v9121_v9 = vpop.f32.mrf.mxu1 }
 0x1d0   : > { %v9101_v23 = vpop.f32.mrf.mxu0  ;;  %10533 = vst [vmem:[#allocation77_spill] sm:$0xff] %v9121_v9 }
 0x1d1   : > { %10524 = vst [vmem:[#allocation68_spill] sm:$0xff] %v9101_v23 }
 0x1d2   : > { %v9105_v51 = vpop.f32.mrf.mxu0 }
 0x1d3   : > { %10526 = vst [vmem:[#allocation70_spill] sm:$0xff] %v9105_v51  ;;  %v9127_v51 = vpop.f32.mrf.mxu1 }
 0x1d4   : > { %v9107_v31 = vpop.f32.mrf.mxu0  ;;  %10536 = vst [vmem:[#allocation80_spill] sm:$0xff] %v9127_v51 }
 0x1d5   : > { %10527 = vst [vmem:[#allocation71_spill] sm:$0xff] %v9107_v31  ;;  %v9137_v63 = vpop.f32.mrf.mxu1 }
 0x1d6   : > { %v9111_v41 = vpop.f32.mrf.mxu0 }
 0x1d7   : > { %10528 = vst [vmem:[#allocation72_spill] sm:$0xff] %v9111_v41  ;;  %v1505_v41 = vadd.f32 %v8747_v50, %v8743_v47  ;;  %v2119_v47 = vadd.f32 %v8887_v37, %v8885_v18  ;;  %v2122_v18 = vadd.f32 %v8902_v61, %v8900_v44 }
 0x1d8   : > { %v9113_v12 = vpop.f32.mrf.mxu0 }
 0x1d9   : > { %10529 = vst [vmem:[#allocation73_spill] sm:$0xff] %v9113_v12  ;;  %v2429_v44 = vadd.f32 %v9059_v11, %v2122_v18  ;;  %v10543_v18 = vld [vmem:[#allocation11_spill] sm:$0xff] }
 0x1da   : > { %v9117_v21 = vpop.f32.mrf.mxu0 }
 0x1db   : > { %10531 = vst [vmem:[#allocation75_spill] sm:$0xff] %v9117_v21  ;;  %v2118_v21 = vadd.f32 %v8874_v15, %v8872_v38 }
 0x1dc   : > { %v9119_v52 = vpop.f32.mrf.mxu0 }
 0x1dd   : > { %10532 = vst [vmem:[#allocation76_spill] sm:$0xff] %v9119_v52  ;;  %v1811_v52 = vadd.f32 %v8889_v30, %v1505_v41  ;;  %v2426_v30 = vadd.f32 %v7425_v13, %v2119_v47  ;;  %v1509_v41 = vadd.f32 %v8761_v35, %v8757_v14  ;;  %v881_v14 = vadd.f32 %v8708_v57, %v8706_v43  ;;  %v10541_v47 = vld [vmem:[#allocation10_spill] sm:$0xff] }
 0x1de   : > { %v9123_v23 = vpop.f32.mrf.mxu0  ;;  %v2120_v35 = vadd.f32 %v8913_v16, %v8911_v20 }
 0x1df   : > { %10534 = vst [vmem:[#allocation78_spill] sm:$0xff] %v9123_v23  ;;  %v2425_v23 = vadd.f32 %v7424_v32, %v2118_v21  ;;  %v2117_v38 = vadd.f32 %v8897_v8, %v1811_v52 }
 0x1e0   : > { %v9125_v62 = vpop.f32.mrf.mxu0 }
 0x1e1   : > { %10535 = vst [vmem:[#allocation79_spill] sm:$0xff] %v9125_v62  ;;  %v2116_v62 = vadd.f32 %v8882_v45, %v8880_v56  ;;  %v9158_v45 = vld [vmem:[%s10453_s2] ss:$0 sm:$0xff] }
 0x1e2   : > { %v9129_v31 = vpop.f32.mrf.mxu0 }
 0x1e3   : > { %10537 = vst [vmem:[#allocation81_spill] sm:$0xff] %v9129_v31  ;;  %v2423_v50 = vadd.f32 %v2296_v7, %v2116_v62  ;;  %v2731_v31 = vadd.f32 %v7472_v59, %v2425_v23  ;;  %v865_v23 = vadd.f32 %v8698_v49, %v8696_v42  ;;  %v1815_v62 = vadd.f32 %v8920_v28, %v1509_v41  ;;  %v10542_v41 = vld [vmem:[#allocation5_spill] sm:$0xff] }
 0x1e4   : > { %v9133_v12 = vpop.f32.mrf.mxu0  ;;  %v2732_v7 = vadd.f32 %v9057_v24, %v2426_v30  ;;  %v9178_v42 = vadd.f32 %v8733_v10, %v8731_v39  ;;  %v2123_v49 = vadd.f32 %v8918_v58, %v8916_v4  ;;  %v2427_v28 = vadd.f32 %v9063_v26, %v2120_v35  ;;  %v10546_v35 = vld [vmem:[#allocation56_spill] sm:$0xff] }
 0x1e5   : > { %10538 = vst [vmem:[#allocation82_spill] sm:$0xff] %v9133_v12  ;;  %v9148_v12 = vpop.f32.mrf.mxu1  ;;  %v2729_v37 = vadd.f32 %v2602_v1, %v2423_v50  ;;  %v2121_v39 = vadd.f32 %v8925_v3, %v1815_v62  ;;  %v2735_v4 = vadd.f32 %v9067_v17, %v2429_v44  ;;  %v1215_v59 = vadd.f32 %v8804_v40, %v865_v23  ;;  %v10545_v23 = vld [vmem:[#allocation60_spill] sm:$0xff] }
 0x1e6   : > { %v9140_v9 = vpop.f32.mrf.mxu0  ;;  %v2430_v10 = vadd.f32 %v9065_v48, %v2123_v49  ;;  %v2733_v3 = vadd.f32 %v9073_v36, %v2427_v28  ;;  %v10540_v48 = vld [vmem:[#allocation9_spill] sm:$0xff]  ;;  %v10548_v49 = vld [vmem:[#allocation4_spill] sm:$0xff] }
 0x1e7   : > { %10539 = vst [vmem:[#allocation83_spill] sm:$0xff] %v9140_v9  ;;  %v2424_v9 = vadd.f32 %v2299_v60, %v2117_v38  ;;  %v9162_v21 = vpop.f32.mrf.mxu1  ;;  %v2124_v40 = vadd.f32 %v10541_v47, %v10540_v48 }
 0x1e8   : > { %v9144_v51 = vpop.f32.mrf.mxu0  ;;  %v2736_v50 = vadd.f32 %v9079_v2, %v2430_v10 }
 0x1e9   : > { %v2730_v43 = vadd.f32 %v9061_v34, %v2424_v9  ;;  %v9184_v20 = vpop.f32.mrf.mxu1 }
 0x1ea   : > { %v9151_v15 = vpop.f32.mrf.mxu0 }
 0x1eb   : > { %v9203_v60 = vpop.f32.mrf.mxu1 }
 0x1ec   : > { %v7520_v56 = vpop.f32.mrf.mxu0 }
 0x1ed   : > { %v3037_v8 = vadd.f32 %v7520_v56, %v2731_v31  ;;  %v897_v31 = vadd.f32 %v8722_v33, %v8720_v27  ;;  %v1513_v27 = vadd.f32 %v8775_v5, %v8771_v22  ;;  %v9191_v33 = vadd.f32 %v8792_v53, %v8788_v55  ;;  %v9217_v2 = vpop.f32.mrf.mxu1 }
 0x1ee   : > { %v2908_v13 = vpop.f32.mrf.mxu0  ;;  %v1219_v22 = vadd.f32 %v8820_v0, %v881_v14  ;;  %v2126_v5 = vadd.f32 %v8930_v19, %v8928_v29  ;;  %v2428_v55 = vadd.f32 %v9069_v6, %v2121_v39 }
 0x1ef   : > { %v3076_v61 = vadd.f32 %v9158_v45, %v3037_v8  ;;  %v3035_v1 = vadd.f32 %v2908_v13, %v2729_v37  ;;  %v1819_v0 = vadd.f32 %v8945_v25, %v1513_v27  ;;  %v1223_v56 = vadd.f32 %v10542_v41, %v897_v31  ;;  %v10544_v37 = vld [vmem:[#allocation12_spill] sm:$0xff]  ;;  %v10551_v27 = vld [vmem:[#allocation57_spill] sm:$0xff]  ;;  %v10562_v41 = vld [vmem:[#allocation59_spill] sm:$0xff] }
 0x1f0   : > { %v7521_v57 = vpop.f32.mrf.mxu0  ;;  %v2433_v29 = vadd.f32 %v9071_v46, %v2126_v5  ;;  %v2127_v8 = vadd.f32 %v10544_v37, %v10543_v18  ;;  %v2734_v14 = vadd.f32 %v10545_v23, %v2428_v55  ;;  %v2431_v25 = vadd.f32 %v10546_v35, %v2124_v40  ;;  %v10555_v5 = vld [vmem:[#allocation58_spill] sm:$0xff]  ;;  %v10563_v37 = vld [vmem:[#allocation69_spill] sm:$0xff] }
 0x1f1   : > { %v3108_v16 = vmax.f32 %v3076_v61, 0.0  ;;  %v3074_v24 = vadd.f32 %v9158_v45, %v3035_v1  ;;  %v3038_v52 = vadd.f32 %v7521_v57, %v2732_v7  ;;  %v8096_v61 = vld [vmem:[%s10454_s3 + $0xb0] sm:$0xff]   ;;  %v10549_v57 = vld [vmem:[#allocation13_spill] sm:$0xff] }
 0x1f2   : > { %v2911_v58 = vpop.f32.mrf.mxu0  ;;  %v10547_v1 = vld [vmem:[#allocation3_spill] sm:$0xff]  ;;  %v2125_v28 = vadd.f32 %v10549_v57, %v1819_v0  ;;  %v2434_v39 = vadd.f32 %v10551_v27, %v2127_v8  ;;  %v8097_v0 = vld [vmem:[%s10454_s3 + $0xa8] sm:$0xff]  }
 0x1f3   : > { %3140 = vst [vmem:[#allocation2 + $0x31] sm:$0xff] %v3108_v16  ;;  %v3106_v34 = vmax.f32 %v3074_v24, 0.0  ;;  %v3077_v9 = vadd.f32 %v9158_v45, %v3038_v52  ;;  %v3036_v32 = vadd.f32 %v2911_v58, %v2730_v43  ;;  %v9224_v31 = vadd.f32 %v10547_v1, %v1215_v59  ;;  %v10554_v59 = vld [vmem:[#allocation15_spill] sm:$0xff] }
 0x1f4   : > { %v7524_v53 = vpop.f32.mrf.mxu0  ;;  %v9227_v43 = vadd.f32 %v10548_v49, %v1219_v22  ;;  %v2432_v55 = vadd.f32 %v10555_v5, %v2125_v28  ;;  %v2740_v8 = vadd.f32 %v10563_v37, %v2434_v39  ;;  %v10569_v5 = vld [vmem:[#allocation62_spill] sm:$0xff] }
 0x1f5   : > { %3138 = vst [vmem:[#allocation2 + $0x19] sm:$0xff] %v3106_v34  ;;  %v3109_v17 = vmax.f32 %v3077_v9, 0.0  ;;  %v3075_v11 = vadd.f32 %v9158_v45, %v3036_v32  ;;  %v3041_v26 = vadd.f32 %v7524_v53, %v2735_v4  ;;  %v10553_v32 = vld [vmem:[#allocation14_spill] sm:$0xff] }
 0x1f6   : > { %v2924_v19 = vpop.f32.mrf.mxu0  ;;  %v2130_v22 = vadd.f32 %v10554_v59, %v10553_v32 }
 0x1f7   : > { %3141 = vst [vmem:[#allocation2 + $0x39] sm:$0xff] %v3109_v17  ;;  %v3107_v6 = vmax.f32 %v3075_v11, 0.0  ;;  %v3080_v36 = vadd.f32 %v9158_v45, %v3041_v26  ;;  %v3039_v38 = vadd.f32 %v2924_v19, %v2733_v3  ;;  %v3268_v30 = vpack.c.bf16 %v3109_v17, %v3108_v16  ;;  %v10550_v16 = vld [vmem:[#allocation63_spill] sm:$0xff]  ;;  %v10556_v3 = vld [vmem:[#allocation20_spill] sm:$0xff]  ;;  %v10557_v17 = vld [vmem:[#allocation66_spill] sm:$0xff]  ;;  %v9241_v26 = vpop.f32.mrf.mxu1 }
 0x1f8   : > { %v7525_v62 = vpop.f32.mrf.mxu0  ;;  %v2739_v24 = vadd.f32 %v10550_v16, %v2433_v29  ;;  %v2737_v11 = vadd.f32 %v10557_v17, %v2431_v25  ;;  %v10559_v19 = vld [vmem:[#allocation16_spill] sm:$0xff] }
 0x1f9   : > { %3139 = vst [vmem:[#allocation2 + $0x21] sm:$0xff] %v3107_v6  ;;  %v3112_v46 = vmax.f32 %v3080_v36, 0.0  ;;  %v3078_v13 = vadd.f32 %v9158_v45, %v3039_v38  ;;  %v3042_v7 = vadd.f32 %v7525_v62, %v2736_v50  ;;  %v3267_v44 = vpack.c.bf16 %v3107_v6, %v3106_v34  ;;  %v10552_v34 = vld [vmem:[#allocation6_spill] sm:$0xff]  ;;  %v10558_v50 = vld [vmem:[#allocation7_spill] sm:$0xff]  ;;  %v10560_v6 = vld [vmem:[#allocation17_spill] sm:$0xff]  ;;  %v9264_v16 = vpop.f32.mrf.mxu1 }
 0x1fa   : > { %v2927_v52 = vpop.f32.mrf.mxu0  ;;  %v9234_v9 = vadd.f32 %v10552_v34, %v1223_v56  ;;  %v9249_v29 = vadd.f32 %v10558_v50, %v9178_v42  ;;  %v2128_v36 = vadd.f32 %v10560_v6, %v10559_v19  ;;  %v10561_v38 = vld [vmem:[#allocation21_spill] sm:$0xff]  ;;  %v2437_v56 = vadd.f32 %v10562_v41, %v2130_v22  ;;  %v10564_v42 = vld [vmem:[#allocation18_spill] sm:$0xff]  ;;  %v10565_v62 = vld [vmem:[#allocation19_spill] sm:$0xff] }
 0x1fb   : > { %3144 = vst [vmem:[#allocation2 + $0x61] sm:$0xff] %v3112_v46  ;;  %v3110_v10 = vmax.f32 %v3078_v13, 0.0  ;;  %v3081_v58 = vadd.f32 %v9158_v45, %v3042_v7  ;;  %v3040_v4 = vadd.f32 %v2927_v52, %v2734_v14  ;;  %7567 = vmatmul.mubr.bf16.vlgmr.msra.gmra.mxu1 %v3267_v44  ;;  %v2131_v13 = vadd.f32 %v10565_v62, %v10564_v42  ;;  %v10566_v44 = vld [vmem:[#allocation61_spill] sm:$0xff]  ;;  %v10568_v34 = vld [vmem:[#allocation74_spill] sm:$0xff]  ;;  %v10573_v19 = vld [vmem:[#allocation64_spill] sm:$0xff]  ;;  %v9293_v41 = vpop.f32.mrf.mxu1 }
 0x1fc   : > { %v7528_v53 = vpop.f32.mrf.mxu0  ;;  %7570 = vmatprep.mubr.bf16.mxu1 %v3268_v30  ;;  %7647 = vmatpush3.bf16.msra.mxu1 %v10556_v3  ;;  %v1823_v30 = vadd.f32 %v10561_v38, %v9191_v33  ;;  %v2738_v7 = vadd.f32 %v9109_v54, %v2432_v55  ;;  %v2435_v1 = vadd.f32 %v10566_v44, %v2128_v36  ;;  %v3172_v49 = vld [vmem:[#allocation2 + $0x18] sm:$0xff]  ;;  %v10567_v54 = vld [vmem:[#allocation22_spill] sm:$0xff]  ;;  %v8098_v22 = vld [vmem:[%s10454_s3 + $0xa0] sm:$0xff]  }
 0x1fd   : > { %3142 = vst [vmem:[#allocation2 + $0x49] sm:$0xff] %v3110_v10  ;;  %v3113_v48 = vmax.f32 %v3081_v58, 0.0  ;;  %v3079_v47 = vadd.f32 %v9158_v45, %v3040_v4  ;;  %v3045_v40 = vadd.f32 %v7528_v53, %v2739_v24  ;;  %7648 = vmatprep.subr.bf16.mxu1 %v8096_v61  ;;  %v3174_v58 = vld [vmem:[#allocation2 + $0x30] sm:$0xff]  ;;  %v2743_v32 = vadd.f32 %v10568_v34, %v2437_v56  ;;  %v10574_v38 = vld [vmem:[#allocation77_spill] sm:$0xff]  ;;  %v10580_v44 = vld [vmem:[#allocation46_spill] sm:$0xff] }
 0x1fe   : > { %v2940_v18 = vpop.f32.mrf.mxu0  ;;  %v3175_v25 = vld [vmem:[#allocation2 + $0x38] sm:$0xff]  ;;  %v2129_v4 = vadd.f32 %v10567_v54, %v1823_v30  ;;  %v2438_v55 = vadd.f32 %v10569_v5, %v2131_v13  ;;  %v2741_v30 = vadd.f32 %v10574_v38, %v2435_v1  ;;  %v10579_v42 = vld [vmem:[#allocation65_spill] sm:$0xff] }
 0x1ff   : > { %3145 = vst [vmem:[#allocation2 + $0x69] sm:$0xff] %v3113_v48  ;;  %v3111_v23 = vmax.f32 %v3079_v47, 0.0  ;;  %v9258_v14 = vadd.f32 %v9158_v45, %v3045_v40  ;;  %v3043_v35 = vadd.f32 %v2940_v18, %v2737_v11  ;;  %v3270_v28 = vpack.c.bf16 %v3113_v48, %v3112_v46  ;;  %v8101_v11 = vld [vmem:[%s10454_s3 + $0xf0] sm:$0xff]   ;;  %v10572_v40 = vld [vmem:[#allocation29_spill] sm:$0xff]  ;;  %v10581_v1 = vld [vmem:[#allocation80_spill] sm:$0xff] }
 0x200   : > { %v7529_v33 = vpop.f32.mrf.mxu0  ;;  %v3173_v57 = vld [vmem:[#allocation2 + $0x20] sm:$0xff]  ;;  %7649 = vmatpush3.bf16.msra.mxu1 %v8096_v61  ;;  %v9274_v46 = vpack.c.bf16 %v3175_v25, %v3174_v58  ;;  %v10570_v48 = vld [vmem:[#allocation23_spill] sm:$0xff]  ;;  %v1827_v50 = vadd.f32 %v10572_v40, %v9224_v31  ;;  %v2436_v6 = vadd.f32 %v10573_v19, %v2129_v4 }
 0x201   : > { %3143 = vst [vmem:[#allocation2 + $0x51] sm:$0xff] %v3111_v23  ;;  %v3116_v24 = vmax.f32 %v9258_v14, 0.0  ;;  %v9268_v52 = vadd.f32 %v9158_v45, %v3043_v35  ;;  %v3046_v27 = vadd.f32 %v7529_v33, %v2740_v8  ;;  %v9270_v39 = vpack.c.bf16 %v3173_v57, %v3172_v49  ;;  %7650 = vmatprep.subr.bf16.mxu1 %v8097_v0  ;;  %v10575_v8 = vld [vmem:[#allocation25_spill] sm:$0xff]  ;;  %v10577_v14 = vld [vmem:[#allocation27_spill] sm:$0xff]  ;;  %v10578_v35 = vld [vmem:[#allocation28_spill] sm:$0xff] }
 0x202   : > { %v2943_v59 = vpop.f32.mrf.mxu0  ;;  %v3269_v61 = vpack.c.bf16 %v3111_v23, %v3110_v10  ;;  %v10571_v10 = vld [vmem:[#allocation24_spill] sm:$0xff]  ;;  %v10576_v23 = vld [vmem:[#allocation26_spill] sm:$0xff]  ;;  %v2135_v25 = vadd.f32 %v10578_v35, %v10577_v14  ;;  %v2744_v33 = vadd.f32 %v10581_v1, %v2438_v55  ;;  %v2742_v54 = vadd.f32 %v9137_v63, %v2436_v6  ;;  %v10583_v4 = vld [vmem:[#allocation67_spill] sm:$0xff]  ;;  %v9315_v55 = vpop.f32.mrf.mxu1 }
 0x203   : > { %3148 = vst [vmem:[#allocation2 + $0x91] sm:$0xff] %v3116_v24  ;;  %v3114_v53 = vmax.f32 %v9268_v52, 0.0  ;;  %v3085_v3 = vadd.f32 %v9158_v45, %v3046_v27  ;;  %v3044_v17 = vadd.f32 %v2943_v59, %v2738_v7  ;;  %7615 = vmatmul.mubr.bf16.vlgmr.msra.gmra.mxu0 %v9270_v39  ;;  %v2134_v47 = vadd.f32 %v10571_v10, %v10570_v48  ;;  %v8099_v7 = vld [vmem:[%s10454_s3 + $0x98] sm:$0xff]   ;;  %v8103_v52 = vld [vmem:[%s10454_s3 + $0xe8] sm:$0xff]   ;;  %v10591_v1 = vld [vmem:[#allocation35_spill] sm:$0xff] }
 0x204   : > { %v7532_v36 = vpop.f32.mrf.mxu0  ;;  %7618 = vmatprep.mubr.bf16.mxu0 %v9274_v46  ;;  %7571 = vmatmul.mubr.bf16.gmra.mxu1 %v3269_v61  ;;  %v2132_v31 = vadd.f32 %v10576_v23, %v10575_v8  ;;  %v10582_v27 = vld [vmem:[#allocation30_spill] sm:$0xff]  ;;  %v10584_v6 = vld [vmem:[#allocation68_spill] sm:$0xff]  ;;  %v9343_v35 = vpop.f32.mrf.mxu1 }
 0x205   : > { %3146 = vst [vmem:[#allocation2 + $0x79] sm:$0xff] %v3114_v53  ;;  %v3117_v56 = vmax.f32 %v3085_v3, 0.0  ;;  %v3083_v18 = vadd.f32 %v9158_v45, %v3044_v17  ;;  %v3049_v37 = vadd.f32 %v7532_v36, %v2743_v32  ;;  %7574 = vmatprep.mubr.bf16.mxu1 %v3270_v28  ;;  %7651 = vmatpush3.bf16.msra.mxu1 %v8097_v0  ;;  %v3176_v59 = vld [vmem:[#allocation2 + $0x48] sm:$0xff] }
 0x206   : > { %v2441_v62 = vadd.f32 %v10579_v42, %v2134_v47  ;;  %v2956_v13 = vpop.f32.mrf.mxu0  ;;  %7652 = vmatprep.subr.bf16.mxu1 %v8098_v22  ;;  %7695 = vmatpush3.bf16.msra.mxu0 %v10580_v44  ;;  %v3179_v28 = vld [vmem:[#allocation2 + $0x68] sm:$0xff]  ;;  %v2133_v58 = vadd.f32 %v10582_v27, %v1827_v50  ;;  %v2439_v34 = vadd.f32 %v10583_v4, %v2132_v31  ;;  %v3178_v47 = vld [vmem:[#allocation2 + $0x60] sm:$0xff] }
 0x207   : > { %3149 = vst [vmem:[#allocation2 + $0x99] sm:$0xff] %v3117_v56  ;;  %v3115_v0 = vmax.f32 %v3083_v18, 0.0  ;;  %v9307_v49 = vadd.f32 %v9158_v45, %v3049_v37  ;;  %v3047_v57 = vadd.f32 %v2956_v13, %v2741_v30  ;;  %7696 = vmatprep.subr.bf16.mxu0 %v8101_v11  ;;  %v3272_v5 = vpack.c.bf16 %v3117_v56, %v3116_v24  ;;  %v8102_v24 = vld [vmem:[%s10454_s3 + $0x90] sm:$0xff]   ;;  %v10587_v18 = vld [vmem:[#allocation37_spill] sm:$0xff]  ;;  %v10588_v8 = vld [vmem:[#allocation70_spill] sm:$0xff] }
 0x208   : > { %v7533_v32 = vpop.f32.mrf.mxu0  ;;  %v3177_v61 = vld [vmem:[#allocation2 + $0x50] sm:$0xff]  ;;  %v2747_v63 = vadd.f32 %v9148_v12, %v2441_v62  ;;  %v9324_v50 = vpack.c.bf16 %v3179_v28, %v3178_v47  ;;  %v2442_v36 = vadd.f32 %v10584_v6, %v2135_v25  ;;  %v8104_v12 = vld [vmem:[%s10454_s3 + $0xe0] sm:$0xff]   ;;  %v1831_v37 = vadd.f32 %v10587_v18, %v9227_v43  ;;  %v10590_v44 = vld [vmem:[#allocation34_spill] sm:$0xff] }
 0x209   : > { %3147 = vst [vmem:[#allocation2 + $0x81] sm:$0xff] %v3115_v0  ;;  %v3120_v3 = vmax.f32 %v9307_v49, 0.0  ;;  %v9319_v17 = vadd.f32 %v9158_v45, %v3047_v57  ;;  %v3050_v48 = vadd.f32 %v7533_v32, %v2744_v33  ;;  %v9321_v10 = vpack.c.bf16 %v3177_v61, %v3176_v59  ;;  %7653 = vmatpush3.bf16.msra.mxu1 %v8098_v22  ;;  %v10589_v13 = vld [vmem:[#allocation33_spill] sm:$0xff]  ;;  %v10592_v33 = vld [vmem:[#allocation36_spill] sm:$0xff]  ;;  %v10593_v49 = vld [vmem:[#allocation71_spill] sm:$0xff] }
 0x20a   : > { %v2959_v40 = vpop.f32.mrf.mxu0  ;;  %v3271_v19 = vpack.c.bf16 %v3115_v0, %v3114_v53  ;;  %7654 = vmatprep.subr.bf16.mxu1 %v8099_v7  ;;  %7697 = vmatpush3.bf16.msra.mxu0 %v8101_v11  ;;  %v10585_v53 = vld [vmem:[#allocation31_spill] sm:$0xff]  ;;  %v10586_v11 = vld [vmem:[#allocation32_spill] sm:$0xff]  ;;  %v2440_v23 = vadd.f32 %v10588_v8, %v2133_v58  ;;  %v2745_v14 = vadd.f32 %v9162_v21, %v2439_v34  ;;  %v8105_v21 = vld [vmem:[%s10454_s3 + $0x88] sm:$0xff]  }
 0x20b   : > { %3152 = vst [vmem:[#allocation2 + $0xc1] sm:$0xff] %v3120_v3  ;;  %v3118_v38 = vmax.f32 %v9319_v17, 0.0  ;;  %v3089_v30 = vadd.f32 %v9158_v45, %v3050_v48  ;;  %v3048_v22 = vadd.f32 %v2959_v40, %v2742_v54  ;;  %7619 = vmatmul.mubr.bf16.gmra.mxu0 %v9321_v10  ;;  %7698 = vmatprep.subr.bf16.mxu0 %v8103_v52  ;;  %v8106_v34 = vld [vmem:[%s10454_s3 + $0xd8] sm:$0xff]   ;;  %v10594_v32 = vld [vmem:[#allocation38_spill] sm:$0xff] }
 0x20c   : > { %v2138_v56 = vadd.f32 %v10586_v11, %v10585_v53  ;;  %v7536_v31 = vpop.f32.mrf.mxu0  ;;  %7622 = vmatprep.mubr.bf16.mxu0 %v9324_v50  ;;  %7575 = vmatmul.mubr.bf16.gmra.mxu1 %v3271_v19  ;;  %v2136_v43 = vadd.f32 %v10590_v44, %v10589_v13  ;;  %v2139_v0 = vadd.f32 %v10592_v33, %v10591_v1  ;;  %v10595_v61 = vld [vmem:[#allocation72_spill] sm:$0xff] }
 0x20d   : > { %3150 = vst [vmem:[#allocation2 + $0xa9] sm:$0xff] %v3118_v38  ;;  %v3121_v25 = vmax.f32 %v3089_v30, 0.0  ;;  %v3087_v42 = vadd.f32 %v9158_v45, %v3048_v22  ;;  %v3053_v62 = vadd.f32 %v7536_v31, %v2747_v63  ;;  %7578 = vmatprep.mubr.bf16.mxu1 %v3272_v5  ;;  %7655 = vmatpush3.bf16.msra.mxu1 %v8099_v7  ;;  %v9364_v63 = vpop.f32.mrf.mxu1  ;;  %v3182_v30 = vld [vmem:[#allocation2 + $0x90] sm:$0xff]  ;;  %v10599_v31 = vld [vmem:[#allocation45_spill] sm:$0xff] }
 0x20e   : > { %v2445_v57 = vadd.f32 %v10593_v49, %v2138_v56  ;;  %v2972_v28 = vpop.f32.mrf.mxu0  ;;  %7656 = vmatprep.subr.bf16.mxu1 %v8102_v24  ;;  %7699 = vmatpush3.bf16.msra.mxu0 %v8103_v52  ;;  %v2748_v27 = vadd.f32 %v9184_v20, %v2442_v36  ;;  %v3183_v4 = vld [vmem:[#allocation2 + $0x98] sm:$0xff]  ;;  %v2137_v52 = vadd.f32 %v10594_v32, %v1831_v37  ;;  %v10596_v56 = vld [vmem:[#allocation73_spill] sm:$0xff]  ;;  %v10602_v49 = vld [vmem:[#allocation42_spill] sm:$0xff] }
 0x20f   : > { %3153 = vst [vmem:[#allocation2 + $0xc9] sm:$0xff] %v3121_v25  ;;  %v3119_v58 = vmax.f32 %v3087_v42, 0.0  ;;  %v9356_v7 = vadd.f32 %v9158_v45, %v3053_v62  ;;  %v3051_v54 = vadd.f32 %v2972_v28, %v2745_v14  ;;  %7700 = vmatprep.subr.bf16.mxu0 %v8104_v12  ;;  %v2746_v59 = vadd.f32 %v9203_v60, %v2440_v23  ;;  %v3180_v20 = vld [vmem:[#allocation2 + $0x78] sm:$0xff]  ;;  %v9392_v44 = vpop.f32.mrf.mxu1 }
 0x210   : > { %v2443_v5 = vadd.f32 %v10595_v61, %v2136_v43  ;;  %v7537_v17 = vpop.f32.mrf.mxu0  ;;  %v3181_v48 = vld [vmem:[#allocation2 + $0x80] sm:$0xff]  ;;  %v3274_v47 = vpack.c.bf16 %v3121_v25, %v3120_v3  ;;  %v2751_v60 = vadd.f32 %v9217_v2, %v2445_v57  ;;  %v9373_v53 = vpack.c.bf16 %v3183_v4, %v3182_v30  ;;  %v8107_v2 = vld [vmem:[%s10454_s3 + $0xd0] sm:$0xff]   ;;  %v10604_v28 = vld [vmem:[#allocation44_spill] sm:$0xff] }
 0x211   : > { %3151 = vst [vmem:[#allocation2 + $0xb1] sm:$0xff] %v3119_v58  ;;  %v3124_v40 = vmax.f32 %v9356_v7, 0.0  ;;  %v9368_v19 = vadd.f32 %v9158_v45, %v3051_v54  ;;  %v3054_v6 = vadd.f32 %v7537_v17, %v2748_v27  ;;  %v9370_v36 = vpack.c.bf16 %v3181_v48, %v3180_v20  ;;  %7657 = vmatpush3.bf16.msra.mxu1 %v8102_v24  ;;  %v8108_v3 = vld [vmem:[%s10454_s3 + $0x80] sm:$0xff]   ;;  %v10600_v25 = vld [vmem:[#allocation75_spill] sm:$0xff]  ;;  %v10607_v20 = vld [vmem:[#allocation78_spill] sm:$0xff]  ;;  %v9417_v30 = vpop.f32.mrf.mxu1 }
 0x212   : > { %v2975_v22 = vpop.f32.mrf.mxu0  ;;  %v3273_v11 = vpack.c.bf16 %v3119_v58, %v3118_v38  ;;  %7701 = vmatpush3.bf16.msra.mxu0 %v8104_v12  ;;  %7658 = vmatprep.subr.bf16.mxu1 %v8105_v21  ;;  %v2446_v18 = vadd.f32 %v10596_v56, %v2139_v0  ;;  %v10597_v38 = vld [vmem:[#allocation39_spill] sm:$0xff]  ;;  %v10598_v12 = vld [vmem:[#allocation40_spill] sm:$0xff]  ;;  %v1835_v14 = vadd.f32 %v10599_v31, %v9234_v9  ;;  %v10601_v0 = vld [vmem:[#allocation41_spill] sm:$0xff] }
 0x213   : > { %3156 = vst [vmem:[#allocation2 + $0xf1] sm:$0xff] %v3124_v40  ;;  %v3122_v37 = vmax.f32 %v9368_v19, 0.0  ;;  %v3093_v8 = vadd.f32 %v9158_v45, %v3054_v6  ;;  %v3052_v24 = vadd.f32 %v2975_v22, %v2746_v59  ;;  %7623 = vmatmul.mubr.bf16.gmra.mxu0 %v9370_v36  ;;  %7702 = vmatprep.subr.bf16.mxu0 %v8106_v34  ;;  %v10603_v57 = vld [vmem:[#allocation43_spill] sm:$0xff]  ;;  %v10605_v58 = vld [vmem:[#allocation76_spill] sm:$0xff] }
 0x214   : > { %v2142_v23 = vadd.f32 %v10598_v12, %v10597_v38  ;;  %v2444_v42 = vadd.f32 %v10600_v25, %v2137_v52  ;;  %v7540_v62 = vpop.f32.mrf.mxu0  ;;  %7626 = vmatprep.mubr.bf16.mxu0 %v9373_v53  ;;  %7579 = vmatmul.mubr.bf16.gmra.mxu1 %v3273_v11  ;;  %v2749_v13 = vadd.f32 %v9241_v26, %v2443_v5  ;;  %v9403_v26 = vld [vmem:[%s10454_s3 + $0x138] sm:$0xff]   ;;  %v10606_v61 = vld [vmem:[#allocation47_spill] sm:$0xff]  ;;  %v10611_v25 = vld [vmem:[#allocation49_spill] sm:$0xff] }
 0x215   : > { %3154 = vst [vmem:[#allocation2 + $0xd9] sm:$0xff] %v3122_v37  ;;  %v3125_v43 = vmax.f32 %v3093_v8, 0.0  ;;  %v3091_v1 = vadd.f32 %v9158_v45, %v3052_v24  ;;  %v3057_v33 = vadd.f32 %v7540_v62, %v2751_v60  ;;  %7582 = vmatprep.mubr.bf16.mxu1 %v3274_v47  ;;  %7659 = vmatpush3.bf16.msra.mxu1 %v8105_v21  ;;  %v3184_v47 = vld [vmem:[#allocation2 + $0xa8] sm:$0xff]  ;;  %v10608_v38 = vld [vmem:[#allocation79_spill] sm:$0xff]  ;;  %v10612_v62 = vld [vmem:[#allocation81_spill] sm:$0xff] }
 0x216   : > { %v2140_v9 = vadd.f32 %v10602_v49, %v10601_v0  ;;  %v2143_v27 = vadd.f32 %v10604_v28, %v10603_v57  ;;  %v2449_v7 = vadd.f32 %v10605_v58, %v2142_v23  ;;  %v2988_v54 = vpop.f32.mrf.mxu0  ;;  %7703 = vmatpush3.bf16.msra.mxu0 %v8106_v34  ;;  %7660 = vmatprep.subr.bf16.mxu1 %v8108_v3  ;;  %v3187_v59 = vld [vmem:[#allocation2 + $0xc8] sm:$0xff] }
 0x217   : > { %v2752_v4 = vadd.f32 %v9264_v16, %v2446_v18  ;;  %3157 = vst [vmem:[#allocation2 + $0xf9] sm:$0xff] %v3125_v43  ;;  %v9406_v21 = vmax.f32 %v3091_v1, 0.0  ;;  %v9409_v32 = vadd.f32 %v9158_v45, %v3057_v33  ;;  %v3055_v52 = vadd.f32 %v2988_v54, %v2749_v13  ;;  %7704 = vmatprep.subr.bf16.mxu0 %v8107_v2  ;;  %v8109_v34 = vld [vmem:[%s10454_s3 + $0xc8] sm:$0xff]   ;;  %v3186_v18 = vld [vmem:[#allocation2 + $0xc0] sm:$0xff]  ;;  %v2714_v33 = vpop.f32.mrf.mxu1 }
 0x218   : > { %v2141_v5 = vadd.f32 %v10606_v61, %v1835_v14  ;;  %v2750_v17 = vadd.f32 %v9293_v41, %v2444_v42  ;;  %v2447_v48 = vadd.f32 %v10607_v20, %v2140_v9  ;;  %v7541_v16 = vpop.f32.mrf.mxu0  ;;  %v3185_v19 = vld [vmem:[#allocation2 + $0xb0] sm:$0xff]  ;;  %v3276_v6 = vpack.c.bf16 %v3125_v43, %v3124_v40  ;;  %v10613_v57 = vld [vmem:[#allocation50_spill] sm:$0xff]  ;;  %v10618_v20 = vld [vmem:[#allocation53_spill] sm:$0xff] }
 0x219   : > { %3155 = vst [vmem:[#allocation2 + $0xe1] sm:$0xff] %v9406_v21  ;;  %v3128_v60 = vmax.f32 %v9409_v32, 0.0  ;;  %v9422_v22 = vadd.f32 %v9158_v45, %v3055_v52  ;;  %v3058_v11 = vadd.f32 %v7541_v16, %v2752_v4  ;;  %v9424_v56 = vpack.c.bf16 %v3185_v19, %v3184_v47  ;;  %7661 = vmatpush3.bf16.msra.mxu1 %v8108_v3  ;;  %v10609_v3 = vld [vmem:[#allocation8_spill] sm:$0xff] }
 0x21a   : > { %v2755_v41 = vadd.f32 %v9315_v55, %v2449_v7  ;;  %v2991_v8 = vpop.f32.mrf.mxu0  ;;  %v9427_v24 = vpack.c.bf16 %v3187_v59, %v3186_v18  ;;  %v3275_v40 = vpack.c.bf16 %v9406_v21, %v3122_v37  ;;  %7705 = vmatpush3.bf16.msra.mxu0 %v8107_v2  ;;  %7742 = vmatprep.subr.bf16.mxu1 %v9403_v26  ;;  %v8110_v55 = vld [vmem:[%s10454_s3 + $0xc0] sm:$0xff]   ;;  %v10610_v2 = vld [vmem:[#allocation48_spill] sm:$0xff]  ;;  %v10616_v7 = vld [vmem:[#allocation82_spill] sm:$0xff] }
 0x21b   : > { %v2450_v12 = vadd.f32 %v10608_v38, %v2143_v27  ;;  %3160 = vst [vmem:[#allocation2 + $0x121] sm:$0xff] %v3128_v60  ;;  %v3126_v23 = vmax.f32 %v9422_v22, 0.0  ;;  %v3097_v31 = vadd.f32 %v9158_v45, %v3058_v11  ;;  %v3056_v14 = vadd.f32 %v2991_v8, %v2750_v17  ;;  %7627 = vmatmul.mubr.bf16.gmra.mxu0 %v9424_v56  ;;  %v10615_v27 = vld [vmem:[#allocation54_spill] sm:$0xff]  ;;  %v10617_v17 = vld [vmem:[#allocation52_spill] sm:$0xff]  ;;  %v7501_v11 = vpop.f32.mrf.mxu1  ;;  %v3190_v38 = vld [vmem:[#allocation2 + $0xf0] sm:$0xff] }
 0x21c   : > { %7706 = vmatprep.subr.bf16.mxu0 %v8109_v34  ;;  %v1533_v37 = vadd.f32 %v10609_v3, %v9249_v29  ;;  %v2146_v42 = vadd.f32 %v10611_v25, %v10610_v2  ;;  %v2448_v13 = vadd.f32 %v10612_v62, %v2141_v5  ;;  %v7544_v43 = vpop.f32.mrf.mxu0  ;;  %7630 = vmatprep.mubr.bf16.mxu0 %v9427_v24  ;;  %v10614_v29 = vld [vmem:[#allocation51_spill] sm:$0xff]  ;;  %v9455_v5 = vld [vmem:[%s10454_s3 + $0x178] sm:$0xff]  }
 0x21d   : > { %7583 = vmatmul.mubr.bf16.gmra.mxu1 %v3275_v40  ;;  %v2753_v1 = vadd.f32 %v9343_v35, %v2447_v48  ;;  %3158 = vst [vmem:[#allocation2 + $0x109] sm:$0xff] %v3126_v23  ;;  %v3129_v0 = vmax.f32 %v3097_v31, 0.0  ;;  %v3095_v49 = vadd.f32 %v9158_v45, %v3056_v14  ;;  %v3061_v9 = vadd.f32 %v7544_v43, %v2755_v41  ;;  %v3188_v19 = vld [vmem:[#allocation2 + $0xd8] sm:$0xff] }
 0x21e   : > { %7586 = vmatprep.mubr.bf16.mxu1 %v3276_v6  ;;  %v2144_v28 = vadd.f32 %v10614_v29, %v10613_v57  ;;  %v1839_v58 = vadd.f32 %v10615_v27, %v1533_v37  ;;  %v2453_v54 = vadd.f32 %v10616_v7, %v2146_v42  ;;  %v3004_v4 = vpop.f32.mrf.mxu0  ;;  %7707 = vmatpush3.bf16.msra.mxu0 %v8109_v34  ;;  %v3191_v61 = vld [vmem:[#allocation2 + $0xf8] sm:$0xff]  ;;  %v10619_v34 = vld [vmem:[#allocation83_spill] sm:$0xff] }
 0x21f   : > { %v2756_v32 = vadd.f32 %v9364_v63, %v2450_v12  ;;  %3161 = vst [vmem:[#allocation2 + $0x129] sm:$0xff] %v3129_v0  ;;  %v3127_v35 = vmax.f32 %v3095_v49, 0.0  ;;  %v3100_v52 = vadd.f32 %v9158_v45, %v3061_v9  ;;  %v3059_v59 = vadd.f32 %v3004_v4, %v2753_v1  ;;  %7708 = vmatprep.subr.bf16.mxu0 %v8110_v55  ;;  %v10620_v12 = vld [vmem:[#allocation55_spill] sm:$0xff] }
 0x220   : > { %v2147_v48 = vadd.f32 %v10618_v20, %v10617_v17  ;;  %v2754_v16 = vadd.f32 %v9392_v44, %v2448_v13  ;;  %v2451_v47 = vadd.f32 %v10619_v34, %v2144_v28  ;;  %v7545_v63 = vpop.f32.mrf.mxu0  ;;  %v3189_v6 = vld [vmem:[#allocation2 + $0xe0] sm:$0xff]  ;;  %v3278_v22 = vpack.c.bf16 %v3129_v0, %v3128_v60 }
 0x221   : > { %3159 = vst [vmem:[#allocation2 + $0x111] sm:$0xff] %v3127_v35  ;;  %v3132_v18 = vmax.f32 %v3100_v52, 0.0  ;;  %v3098_v41 = vadd.f32 %v9158_v45, %v3059_v59  ;;  %v3062_v8 = vadd.f32 %v7545_v63, %v2756_v32  ;;  %v9462_v40 = vpack.c.bf16 %v3189_v6, %v3188_v19  ;;  %v3718_v63 = vld [vmem:[#allocation2 + $0xa] sm:$0xff] }
 0x222   : > { %v2145_v31 = vadd.f32 %v10620_v12, %v1839_v58  ;;  %v2759_v14 = vadd.f32 %v9417_v30, %v2453_v54  ;;  %v3007_v44 = vpop.f32.mrf.mxu0  ;;  %v9466_v3 = vpack.c.bf16 %v3191_v61, %v3190_v38  ;;  %v9468_v37 = vpack.c.bf16 %v3127_v35, %v3126_v23  ;;  %7709 = vmatpush3.bf16.msra.mxu0 %v8110_v55  ;;  %v2717_v55 = vpop.f32.mrf.mxu1  ;;  %v3194_v35 = vld [vmem:[#allocation2 + $0x120] sm:$0xff] }
 0x223   : > { %v2454_v60 = vadd.f32 %v9144_v51, %v2147_v48  ;;  %3164 = vst [vmem:[#allocation2 + $0x151] sm:$0xff] %v3132_v18  ;;  %v3130_v2 = vmax.f32 %v3098_v41, 0.0  ;;  %v3101_v25 = vadd.f32 %v9158_v45, %v3062_v8  ;;  %v3060_v42 = vadd.f32 %v3007_v44, %v2754_v16  ;;  %7631 = vmatmul.mubr.bf16.gmra.mxu0 %v9462_v40  ;;  %v3721_v44 = vld [vmem:[#allocation2 + $0x32] sm:$0xff] }
 0x224   : > { %7790 = vmatprep.subr.bf16.mxu0 %v9455_v5  ;;  %v2452_v62 = vadd.f32 %v9151_v15, %v2145_v31  ;;  %v7548_v30 = vpop.f32.mrf.mxu0  ;;  %7634 = vmatprep.mubr.bf16.mxu0 %v9466_v3  ;;  %v2757_v23 = vadd.f32 %v2714_v33, %v2451_v47  ;;  %v3192_v33 = vld [vmem:[#allocation2 + $0x108] sm:$0xff] }
 0x225   : > { %7587 = vmatmul.mubr.bf16.gmra.mxu1 %v9468_v37  ;;  %3162 = vst [vmem:[#allocation2 + $0x139] sm:$0xff] %v3130_v2  ;;  %v9477_v51 = vmax.f32 %v3101_v25, 0.0  ;;  %v3099_v13 = vadd.f32 %v9158_v45, %v3060_v42  ;;  %v3065_v43 = vadd.f32 %v7548_v30, %v2759_v14  ;;  %v2760_v0 = vadd.f32 %v7501_v11, %v2454_v60  ;;  %v3717_v47 = vld [vmem:[#allocation2 + $0x2] sm:$0xff]  ;;  %v3722_v25 = vld [vmem:[#allocation2 + $0x3a] sm:$0xff]  ;;  %v8112_v30 = vld [vmem:[%s10454_s3 + $0x130] sm:$0xff]  }
 0x226   : > { %7590 = vmatprep.mubr.bf16.mxu1 %v3278_v22  ;;  %v3020_v1 = vpop.f32.mrf.mxu0  ;;  %v3195_v57 = vld [vmem:[#allocation2 + $0x128] sm:$0xff]  ;;  %v2758_v29 = vadd.f32 %v2717_v55, %v2452_v62  ;;  %v3749_v12 = vpack.c.bf16 %v3718_v63, %v3717_v47  ;;  %v3738_v63 = vld [vmem:[#allocation2 + $0xfa] sm:$0xff] }
 0x227   : > { %3165 = vst [vmem:[#allocation2 + $0x159] sm:$0xff] %v9477_v51  ;;  %v3131_v49 = vmax.f32 %v3099_v13, 0.0  ;;  %v3104_v15 = vadd.f32 %v9158_v45, %v3065_v43  ;;  %v3063_v9 = vadd.f32 %v3020_v1, %v2757_v23  ;;  %v3280_v58 = vpack.c.bf16 %v9477_v51, %v3132_v18  ;;  %v3720_v14 = vld [vmem:[#allocation2 + $0x22] sm:$0xff]  ;;  %v3723_v13 = vld [vmem:[#allocation2 + $0x4a] sm:$0xff]  ;;  %v3724_v43 = vld [vmem:[#allocation2 + $0x52] sm:$0xff] }
 0x228   : > { %v7549_v28 = vpop.f32.mrf.mxu0  ;;  %v3193_v27 = vld [vmem:[#allocation2 + $0x110] sm:$0xff]  ;;  %v9486_v59 = vpack.c.bf16 %v3195_v57, %v3194_v35  ;;  %v9514_v23 = vpack.c.bf16 %v3722_v25, %v3721_v44  ;;  %v8113_v55 = vld [vmem:[%s10454_s3 + $0x128] sm:$0xff]  }
 0x229   : > { %3163 = vst [vmem:[#allocation2 + $0x141] sm:$0xff] %v3131_v49  ;;  %v3136_v7 = vmax.f32 %v3104_v15, 0.0  ;;  %v3102_v54 = vadd.f32 %v9158_v45, %v3063_v9  ;;  %v3066_v4 = vadd.f32 %v7549_v28, %v2760_v0  ;;  %v9484_v32 = vpack.c.bf16 %v3193_v27, %v3192_v33  ;;  %v3725_v1 = vld [vmem:[#allocation2 + $0x62] sm:$0xff]  ;;  %v3726_v0 = vld [vmem:[#allocation2 + $0x6a] sm:$0xff]  ;;  %v8115_v9 = vld [vmem:[%s10454_s3 + $0x118] sm:$0xff]  }
 0x22a   : > { %v3023_v52 = vpop.f32.mrf.mxu0  ;;  %v9488_v61 = vpack.c.bf16 %v3131_v49, %v3130_v2  ;;  %v3198_v8 = vld [vmem:[#allocation2 + $0x150] sm:$0xff]  ;;  %v9523_v49 = vpack.c.bf16 %v3724_v43, %v3723_v13  ;;  %v3728_v57 = vld [vmem:[#allocation2 + $0x82] sm:$0xff]  ;;  %v3730_v28 = vld [vmem:[#allocation2 + $0x9a] sm:$0xff] }
 0x22b   : > { %3168 = vst [vmem:[#allocation2 + $0x181] sm:$0xff] %v3136_v7  ;;  %v3134_v17 = vmax.f32 %v3102_v54, 0.0  ;;  %v3105_v20 = vadd.f32 %v9158_v45, %v3066_v4  ;;  %v3064_v48 = vadd.f32 %v3023_v52, %v2758_v29  ;;  %7635 = vmatmul.mubr.bf16.gmra.mxu0 %v9484_v32  ;;  %v8117_v15 = vld [vmem:[%s10454_s3 + $0x170] sm:$0xff]   ;;  %v8119_v29 = vld [vmem:[%s10454_s3 + $0x168] sm:$0xff]   ;;  %v8122_v4 = vld [vmem:[%s10454_s3 + $0x158] sm:$0xff]  }
 0x22c   : > { %7638 = vmatprep.mubr.bf16.mxu0 %v9486_v59  ;;  %v3196_v11 = vld [vmem:[#allocation2 + $0x138] sm:$0xff]  ;;  %v8118_v27 = vld [vmem:[%s10454_s3 + $0x110] sm:$0xff]   ;;  %v3733_v35 = vld [vmem:[#allocation2 + $0xc2] sm:$0xff] }
 0x22d   : > { %7591 = vmatmul.mubr.bf16.gmra.mxu1 %v9488_v61  ;;  %3166 = vst [vmem:[#allocation2 + $0x169] sm:$0xff] %v3134_v17  ;;  %v3137_v16 = vmax.f32 %v3105_v20, 0.0  ;;  %v3103_v34 = vadd.f32 %v9158_v45, %v3064_v48  ;;  %v3719_v45 = vld [vmem:[#allocation2 + $0x1a] sm:$0xff]  ;;  %v3732_v54 = vld [vmem:[#allocation2 + $0xb2] sm:$0xff]  ;;  %v8125_v47 = vld [vmem:[%s10454_s3 + $0x148] sm:$0xff]  }
 0x22e   : > { %7594 = vmatprep.mubr.bf16.mxu1 %v3280_v58  ;;  %v3199_v6 = vld [vmem:[#allocation2 + $0x158] sm:$0xff]  ;;  %v9508_v62 = vpack.c.bf16 %v3720_v14, %v3719_v45  ;;  %v8120_v58 = vld [vmem:[%s10454_s3 + $0x160] sm:$0xff]   ;;  %v8123_v48 = vld [vmem:[%s10454_s3 + $0x150] sm:$0xff]  }
 0x22f   : > { %3169 = vst [vmem:[#allocation2 + $0x189] sm:$0xff] %v3137_v16  ;;  %v3135_v19 = vmax.f32 %v3103_v34, 0.0  ;;  %v9495_v22 = vpack.c.bf16 %v3137_v16, %v3136_v7  ;;  %v9501_v31 = vpack.c.bf16 %v3199_v6, %v3198_v8  ;;  %v3731_v7 = vld [vmem:[#allocation2 + $0xaa] sm:$0xff]  ;;  %v3735_v16 = vld [vmem:[#allocation2 + $0xda] sm:$0xff]  ;;  %v3736_v34 = vld [vmem:[#allocation2 + $0xe2] sm:$0xff] }
 0x230   : > { %v3197_v18 = vld [vmem:[#allocation2 + $0x140] sm:$0xff]  ;;  %v9564_v52 = vpack.c.bf16 %v3732_v54, %v3731_v7  ;;  %v3740_v8 = vld [vmem:[#allocation2 + $0x112] sm:$0xff]  ;;  %v3742_v45 = vld [vmem:[#allocation2 + $0x12a] sm:$0xff] }
 0x231   : > { %3167 = vst [vmem:[#allocation2 + $0x171] sm:$0xff] %v3135_v19  ;;  %v9497_v41 = vpack.c.bf16 %v3197_v18, %v3196_v11  ;;  %v9499_v38 = vpack.c.bf16 %v3135_v19, %v3134_v17  ;;  %v8124_v17 = vld [vmem:[%s10454_s3 + $0x100] sm:$0xff]   ;;  %v9586_v19 = vpack.c.bf16 %v3736_v34, %v3735_v16  ;;  %v3739_v18 = vld [vmem:[#allocation2 + $0x10a] sm:$0xff] }
 0x232   : > { %v8126_v11 = vld [vmem:[%s10454_s3 + $0x140] sm:$0xff]   ;;  %v9603_v14 = vpack.c.bf16 %v3740_v8, %v3739_v18  ;;  %v8134_v16 = vld [vmem:[%s10454_s3 + $0x190] sm:$0xff]  }
 0x233   : > { %7639 = vmatmul.mubr.bf16.gmra.mxu0 %v9497_v41  ;;  %v3743_v44 = vld [vmem:[#allocation2 + $0x13a] sm:$0xff] }
 0x234   : > { %7642 = vmatprep.mubr.bf16.mxu0 %v9501_v31  ;;  %v3200_v60 = vld [vmem:[#allocation2 + $0x168] sm:$0xff]  ;;  %v3746_v25 = vld [vmem:[#allocation2 + $0x15a] sm:$0xff] }
 0x235   : > { %7595 = vmatmul.mubr.bf16.gmra.mxu1 %v9499_v38  ;;  %v4330_v13 = vld [vmem:[#allocation2 + $0x21] sm:$0xff]  ;;  %v4337_v7 = vld [vmem:[#allocation2 + $0x79] sm:$0xff] }
 0x236   : > { %7662 = vmatprep.mubr.bf16.mxu1 %v3749_v12  ;;  %v3741_v12 = vld [vmem:[#allocation2 + $0x122] sm:$0xff] }
 0x237   : > { %v8140_v8 = vld [vmem:[%s10454_s3 + $0x180] sm:$0xff]  }
 0x238   : > { %v3201_v2 = vld [vmem:[#allocation2 + $0x170] sm:$0xff] }
 0x239   : > { %v9506_v42 = vpack.c.bf16 %v3201_v2, %v3200_v60  ;;  %v3744_v60 = vld [vmem:[#allocation2 + $0x142] sm:$0xff]  ;;  %v3745_v2 = vld [vmem:[#allocation2 + $0x152] sm:$0xff] }
 0x23b   : > { %7643 = vmatmul.mubr.bf16.gmra.mxu0 %v9506_v42 }
 0x23c   : > { %7710 = vmatprep.mubr.bf16.mxu0 %v9270_v39  ;;  %v8114_v39 = vld [vmem:[%s10454_s3 + $0x120] sm:$0xff]  }
 0x23d   : > { %7663 = vmatmul.mubr.bf16.vlgmr.msra.gmra.mxu1 %v9508_v62 }
 0x23e   : > { %7666 = vmatprep.mubr.bf16.mxu1 %v9514_v23  ;;  %7743 = vmatpush3.bf16.msra.mxu1 %v9403_v26  ;;  %v9529_v26 = vpack.c.bf16 %v3726_v0, %v3725_v1  ;;  %v4329_v1 = vld [vmem:[#allocation2 + $0x19] sm:$0xff] }
 0x23f   : > { %7744 = vmatprep.subr.bf16.mxu1 %v8112_v30  ;;  %v4361_v0 = vpack.c.bf16 %v4330_v13, %v4329_v1  ;;  %v4946_v13 = vld [vmem:[#allocation2 + $0x68] sm:$0xff] }
 0x242   : > { %7745 = vmatpush3.bf16.msra.mxu1 %v8112_v30  ;;  %v9612_v30 = vpack.c.bf16 %v3744_v60, %v3743_v44  ;;  %v4347_v44 = vld [vmem:[#allocation2 + $0xf1] sm:$0xff] }
 0x243   : > { %7746 = vmatprep.subr.bf16.mxu1 %v8113_v55  ;;  %7711 = vmatmul.mubr.bf16.vlgmr.msra.gmra.mxu0 %v9274_v46  ;;  %v3727_v46 = vld [vmem:[#allocation2 + $0x7a] sm:$0xff] }
 0x244   : > { %7714 = vmatprep.mubr.bf16.mxu0 %v9321_v10  ;;  %7791 = vmatpush3.bf16.msra.mxu0 %v9455_v5  ;;  %v3729_v10 = vld [vmem:[#allocation2 + $0x92] sm:$0xff]  ;;  %v9544_v33 = vpack.c.bf16 %v3728_v57, %v3727_v46 }
 0x245   : > { %7667 = vmatmul.mubr.bf16.gmra.mxu1 %v9523_v49  ;;  %7792 = vmatprep.subr.bf16.mxu0 %v8117_v15  ;;  %v9550_v5 = vpack.c.bf16 %v3730_v28, %v3729_v10  ;;  %v4331_v46 = vld [vmem:[#allocation2 + $0x31] sm:$0xff]  ;;  %v8129_v10 = vld [vmem:[%s10454_s3 + $0x1a8] sm:$0xff]  }
 0x246   : > { %7670 = vmatprep.mubr.bf16.mxu1 %v9529_v26  ;;  %7747 = vmatpush3.bf16.msra.mxu1 %v8113_v55  ;;  %v9615_v55 = vpack.c.bf16 %v3746_v25, %v3745_v2  ;;  %v4336_v28 = vld [vmem:[#allocation2 + $0x69] sm:$0xff]  ;;  %v4351_v25 = vld [vmem:[#allocation2 + $0x121] sm:$0xff] }
 0x247   : > { %7748 = vmatprep.subr.bf16.mxu1 %v8114_v39  ;;  %v4352_v2 = vld [vmem:[#allocation2 + $0x129] sm:$0xff] }
 0x248   : > { %7793 = vmatpush3.bf16.msra.mxu0 %v8117_v15  ;;  %v4334_v15 = vld [vmem:[#allocation2 + $0x51] sm:$0xff] }
 0x249   : > { %7794 = vmatprep.subr.bf16.mxu0 %v8119_v29 }
 0x24a   : > { %7749 = vmatpush3.bf16.msra.mxu1 %v8114_v39  ;;  %v4053_v39 = vld [vmem:[#allocation2 + $0x180] sm:$0xff] }
 0x24b   : > { %7750 = vmatprep.subr.bf16.mxu1 %v8115_v9  ;;  %7715 = vmatmul.mubr.bf16.gmra.mxu0 %v9324_v50  ;;  %v8121_v50 = vld [vmem:[%s10454_s3 + $0x108] sm:$0xff]  }
 0x24c   : > { %7718 = vmatprep.mubr.bf16.mxu0 %v9370_v36  ;;  %7795 = vmatpush3.bf16.msra.mxu0 %v8119_v29  ;;  %v3734_v36 = vld [vmem:[#allocation2 + $0xca] sm:$0xff] }
 0x24d   : > { %7671 = vmatmul.mubr.bf16.gmra.mxu1 %v9544_v33  ;;  %7796 = vmatprep.subr.bf16.mxu0 %v8120_v58  ;;  %v9570_v20 = vpack.c.bf16 %v3734_v36, %v3733_v35  ;;  %v4333_v29 = vld [vmem:[#allocation2 + $0x49] sm:$0xff]  ;;  %v8131_v35 = vld [vmem:[%s10454_s3 + $0x198] sm:$0xff]  }
 0x24e   : > { %7674 = vmatprep.mubr.bf16.mxu1 %v9550_v5  ;;  %7751 = vmatpush3.bf16.msra.mxu1 %v8115_v9  ;;  %v8135_v36 = vld [vmem:[%s10454_s3 + $0x1e8] sm:$0xff]  }
 0x24f   : > { %7752 = vmatprep.subr.bf16.mxu1 %v8118_v27 }
 0x250   : > { %7797 = vmatpush3.bf16.msra.mxu0 %v8120_v58  ;;  %v4335_v58 = vld [vmem:[#allocation2 + $0x61] sm:$0xff] }
 0x251   : > { %7798 = vmatprep.subr.bf16.mxu0 %v8122_v4 }
 0x252   : > { %7753 = vmatpush3.bf16.msra.mxu1 %v8118_v27  ;;  %v4338_v27 = vld [vmem:[#allocation2 + $0x81] sm:$0xff] }
 0x253   : > { %7754 = vmatprep.subr.bf16.mxu1 %v8121_v50  ;;  %7719 = vmatmul.mubr.bf16.gmra.mxu0 %v9373_v53  ;;  %v9581_v53 = vld [vmem:[%s10454_s3 + $0x1b8] sm:$0xff]   ;;  %v9648_v54 = vpack.c.bf16 %v4338_v27, %v4337_v7 }
 0x254   : > { %7722 = vmatprep.mubr.bf16.mxu0 %v9424_v56  ;;  %7799 = vmatpush3.bf16.msra.mxu0 %v8122_v4  ;;  %v3737_v56 = vld [vmem:[#allocation2 + $0xf2] sm:$0xff] }
 0x255   : > { %7675 = vmatmul.mubr.bf16.gmra.mxu1 %v9564_v52  ;;  %7800 = vmatprep.subr.bf16.mxu0 %v8123_v48  ;;  %v9590_v6 = vpack.c.bf16 %v3738_v63, %v3737_v56  ;;  %v8133_v4 = vld [vmem:[%s10454_s3 + $0x1f0] sm:$0xff]   ;;  %v8138_v63 = vld [vmem:[%s10454_s3 + $0x1d8] sm:$0xff]  }
 0x256   : > { %7678 = vmatprep.mubr.bf16.mxu1 %v9570_v20  ;;  %7755 = vmatpush3.bf16.msra.mxu1 %v8121_v50  ;;  %v9642_v50 = vpack.c.bf16 %v4336_v28, %v4335_v58  ;;  %v4344_v56 = vld [vmem:[#allocation2 + $0xc9] sm:$0xff] }
 0x257   : > { %7756 = vmatprep.subr.bf16.mxu1 %v8124_v17 }
 0x258   : > { %7801 = vmatpush3.bf16.msra.mxu0 %v8123_v48 }
 0x259   : > { %7802 = vmatprep.subr.bf16.mxu0 %v8125_v47 }
 0x25a   : > { %7757 = vmatpush3.bf16.msra.mxu1 %v8124_v17  ;;  %v4342_v17 = vld [vmem:[#allocation2 + $0xb1] sm:$0xff] }
 0x25b   : > { %7838 = vmatprep.subr.bf16.mxu1 %v9581_v53  ;;  %7723 = vmatmul.mubr.bf16.gmra.mxu0 %v9427_v24  ;;  %v9601_v24 = vld [vmem:[%s10454_s3 + $0x1f8] sm:$0xff]  }
 0x25c   : > { %7726 = vmatprep.mubr.bf16.mxu0 %v9462_v40  ;;  %7803 = vmatpush3.bf16.msra.mxu0 %v8125_v47  ;;  %v9606_v40 = vpack.c.bf16 %v3742_v45, %v3741_v12  ;;  %v8136_v47 = vld [vmem:[%s10454_s3 + $0x1e0] sm:$0xff]   ;;  %v8139_v12 = vld [vmem:[%s10454_s3 + $0x1d0] sm:$0xff]  }
 0x25d   : > { %7679 = vmatmul.mubr.bf16.gmra.mxu1 %v9586_v19  ;;  %7804 = vmatprep.subr.bf16.mxu0 %v8126_v11  ;;  %v4348_v45 = vld [vmem:[#allocation2 + $0xf9] sm:$0xff] }
 0x25e   : > { %7682 = vmatprep.mubr.bf16.mxu1 %v9590_v6  ;;  %v9704_v60 = vpack.c.bf16 %v4348_v45, %v4347_v44 }
 0x260   : > { %7805 = vmatpush3.bf16.msra.mxu0 %v8126_v11  ;;  %v9683_v11 = vld [vmem:[#allocation2 + $0xd9] sm:$0xff] }
 0x261   : > { %7886 = vmatprep.subr.bf16.mxu0 %v9601_v24 }
 0x263   : > { %7727 = vmatmul.mubr.bf16.gmra.mxu0 %v9466_v3  ;;  %v3747_v3 = vld [vmem:[#allocation2 + $0x16a] sm:$0xff] }
 0x264   : > { %7730 = vmatprep.mubr.bf16.mxu0 %v9484_v32  ;;  %v3748_v32 = vld [vmem:[#allocation2 + $0x172] sm:$0xff] }
 0x265   : > { %7683 = vmatmul.mubr.bf16.gmra.mxu1 %v9603_v14  ;;  %v9620_v43 = vpack.c.bf16 %v3748_v32, %v3747_v3  ;;  %v9713_v3 = vpack.c.bf16 %v4352_v2, %v4351_v25  ;;  %v4666_v32 = vld [vmem:[#allocation2 + $0x18a] sm:$0xff] }
 0x266   : > { %7686 = vmatprep.mubr.bf16.mxu1 %v9606_v40 }
 0x26b   : > { %7731 = vmatmul.mubr.bf16.gmra.mxu0 %v9486_v59  ;;  %v4054_v59 = vld [vmem:[#allocation2 + $0x188] sm:$0xff] }
 0x26c   : > { %7734 = vmatprep.mubr.bf16.mxu0 %v9497_v41  ;;  %v4332_v41 = vld [vmem:[#allocation2 + $0x39] sm:$0xff]  ;;  %v9625_v9 = vpack.c.bf16 %v4054_v59, %v4053_v39  ;;  %v8145_v59 = vld [vmem:[%s10454_s3 + $0x228] sm:$0xff]  }
 0x26d   : > { %7687 = vmatmul.mubr.bf16.gmra.mxu1 %v9612_v30  ;;  %v9627_v57 = vpack.c.bf16 %v4332_v41, %v4331_v46  ;;  %v4948_v39 = vld [vmem:[#allocation2 + $0x80] sm:$0xff] }
 0x26e   : > { %7690 = vmatprep.mubr.bf16.mxu1 %v9615_v55 }
 0x273   : > { %7735 = vmatmul.mubr.bf16.gmra.mxu0 %v9501_v31  ;;  %v8128_v31 = vld [vmem:[%s10454_s3 + $0x1b0] sm:$0xff]  }
 0x274   : > { %7738 = vmatprep.mubr.bf16.mxu0 %v9506_v42  ;;  %v9633_v42 = vpack.c.bf16 %v4334_v15, %v4333_v29  ;;  %v4950_v15 = vld [vmem:[#allocation2 + $0x98] sm:$0xff] }
 0x275   : > { %7691 = vmatmul.mubr.bf16.gmra.mxu1 %v9620_v43  ;;  %v4947_v29 = vld [vmem:[#allocation2 + $0x78] sm:$0xff] }
 0x276   : > { %7758 = vmatprep.mubr.bf16.mxu1 %v4361_v0  ;;  %v4945_v0 = vld [vmem:[#allocation2 + $0x60] sm:$0xff] }
 0x27b   : > { %7739 = vmatmul.mubr.bf16.gmra.mxu0 %v9625_v9 }
 0x27c   : > { %7806 = vmatprep.mubr.bf16.mxu0 %v9508_v62  ;;  %v8130_v62 = vld [vmem:[%s10454_s3 + $0x1a0] sm:$0xff]  }
 0x27d   : > { %7759 = vmatmul.mubr.bf16.vlgmr.msra.gmra.mxu1 %v9627_v57 }
 0x27e   : > { %7762 = vmatprep.mubr.bf16.mxu1 %v9633_v42  ;;  %7839 = vmatpush3.bf16.msra.mxu1 %v9581_v53  ;;  %v4341_v53 = vld [vmem:[#allocation2 + $0xa9] sm:$0xff] }
 0x27f   : > { %7840 = vmatprep.subr.bf16.mxu1 %v8128_v31  ;;  %v9669_v34 = vpack.c.bf16 %v4342_v17, %v4341_v53  ;;  %v4954_v53 = vld [vmem:[#allocation2 + $0xc8] sm:$0xff] }
 0x282   : > { %7841 = vmatpush3.bf16.msra.mxu1 %v8128_v31  ;;  %v4976_v31 = vpack.c.bf16 %v4948_v39, %v4947_v29  ;;  %v4960_v39 = vld [vmem:[#allocation2 + $0x110] sm:$0xff] }
 0x283   : > { %7842 = vmatprep.subr.bf16.mxu1 %v8129_v10  ;;  %7807 = vmatmul.mubr.bf16.vlgmr.msra.gmra.mxu0 %v9514_v23  ;;  %v4340_v23 = vld [vmem:[#allocation2 + $0x99] sm:$0xff] }
 0x284   : > { %7810 = vmatprep.mubr.bf16.mxu0 %v9523_v49  ;;  %7887 = vmatpush3.bf16.msra.mxu0 %v9601_v24  ;;  %v4339_v49 = vld [vmem:[#allocation2 + $0x91] sm:$0xff]  ;;  %v4369_v24 = vpack.c.bf16 %v9406_v21, %v9683_v11  ;;  %v8141_v21 = vld [vmem:[%s10454_s3 + $0x1c8] sm:$0xff]  }
 0x285   : > { %7763 = vmatmul.mubr.bf16.gmra.mxu1 %v9642_v50  ;;  %7888 = vmatprep.subr.bf16.mxu0 %v8133_v4  ;;  %v9663_v48 = vpack.c.bf16 %v4340_v23, %v4339_v49  ;;  %v8147_v23 = vld [vmem:[%s10454_s3 + $0x218] sm:$0xff]  }
 0x286   : > { %7766 = vmatprep.mubr.bf16.mxu1 %v9648_v54  ;;  %7843 = vmatpush3.bf16.msra.mxu1 %v8129_v10  ;;  %v4949_v10 = vld [vmem:[#allocation2 + $0x90] sm:$0xff] }
 0x287   : > { %7844 = vmatprep.subr.bf16.mxu1 %v8130_v62  ;;  %v4977_v27 = vpack.c.bf16 %v4950_v15, %v4949_v10 }
 0x288   : > { %7889 = vmatpush3.bf16.msra.mxu0 %v8133_v4 }
 0x289   : > { %7890 = vmatprep.subr.bf16.mxu0 %v8135_v36 }
 0x28a   : > { %7845 = vmatpush3.bf16.msra.mxu1 %v8130_v62 }
 0x28b   : > { %7846 = vmatprep.subr.bf16.mxu1 %v8131_v35  ;;  %7811 = vmatmul.mubr.bf16.gmra.mxu0 %v9529_v26  ;;  %v8137_v26 = vld [vmem:[%s10454_s3 + $0x188] sm:$0xff]  }
 0x28c   : > { %7814 = vmatprep.mubr.bf16.mxu0 %v9544_v33  ;;  %7891 = vmatpush3.bf16.msra.mxu0 %v8135_v36  ;;  %v4343_v33 = vld [vmem:[#allocation2 + $0xc1] sm:$0xff] }
 0x28d   : > { %7767 = vmatmul.mubr.bf16.gmra.mxu1 %v9663_v48  ;;  %7892 = vmatprep.subr.bf16.mxu0 %v8136_v47  ;;  %v9685_v18 = vpack.c.bf16 %v4344_v56, %v4343_v33  ;;  %v8148_v33 = vld [vmem:[%s10454_s3 + $0x210] sm:$0xff]  }
 0x28e   : > { %7770 = vmatprep.mubr.bf16.mxu1 %v9669_v34  ;;  %7847 = vmatpush3.bf16.msra.mxu1 %v8131_v35 }
 0x28f   : > { %7848 = vmatprep.subr.bf16.mxu1 %v8134_v16 }
 0x290   : > { %7893 = vmatpush3.bf16.msra.mxu0 %v8136_v47 }
 0x291   : > { %7894 = vmatprep.subr.bf16.mxu0 %v8138_v63 }
 0x292   : > { %7849 = vmatpush3.bf16.msra.mxu1 %v8134_v16  ;;  %v4951_v16 = vld [vmem:[#allocation2 + $0xa8] sm:$0xff] }
 0x293   : > { %7850 = vmatprep.subr.bf16.mxu1 %v8137_v26  ;;  %7815 = vmatmul.mubr.bf16.gmra.mxu0 %v9550_v5  ;;  %v8143_v5 = vld [vmem:[%s10454_s3 + $0x238] sm:$0xff]  }
 0x294   : > { %7818 = vmatprep.mubr.bf16.mxu0 %v9564_v52  ;;  %7895 = vmatpush3.bf16.msra.mxu0 %v8138_v63  ;;  %v8142_v52 = vld [vmem:[%s10454_s3 + $0x1c0] sm:$0xff]  }
 0x295   : > { %7771 = vmatmul.mubr.bf16.gmra.mxu1 %v9685_v18  ;;  %7896 = vmatprep.subr.bf16.mxu0 %v8139_v12  ;;  %v4953_v63 = vld [vmem:[#allocation2 + $0xc0] sm:$0xff] }
 0x296   : > { %7774 = vmatprep.mubr.bf16.mxu1 %v4369_v24  ;;  %7851 = vmatpush3.bf16.msra.mxu1 %v8137_v26  ;;  %v4979_v24 = vpack.c.bf16 %v4954_v53, %v4953_v63  ;;  %v4966_v63 = vld [vmem:[#allocation2 + $0x158] sm:$0xff] }
 0x297   : > { %7852 = vmatprep.subr.bf16.mxu1 %v8140_v8 }
 0x298   : > { %7897 = vmatpush3.bf16.msra.mxu0 %v8139_v12 }
 0x299   : > { %7898 = vmatprep.subr.bf16.mxu0 %v8141_v21 }
 0x29a   : > { %7853 = vmatpush3.bf16.msra.mxu1 %v8140_v8 }
 0x29b   : > { %7934 = vmatprep.subr.bf16.mxu1 %v8143_v5  ;;  %7819 = vmatmul.mubr.bf16.gmra.mxu0 %v9570_v20  ;;  %v9719_v20 = vld [vmem:[#allocation2 + $0x151] sm:$0xff] }
 0x29c   : > { %7822 = vmatprep.mubr.bf16.mxu0 %v9586_v19  ;;  %7899 = vmatpush3.bf16.msra.mxu0 %v8141_v21  ;;  %v4942_v19 = vld [vmem:[#allocation2 + $0x38] sm:$0xff] }
 0x29d   : > { %7775 = vmatmul.mubr.bf16.gmra.mxu1 %v9704_v60  ;;  %7900 = vmatprep.subr.bf16.mxu0 %v8142_v52 }
 0x29e   : > { %7778 = vmatprep.mubr.bf16.mxu1 %v9468_v37  ;;  %v4374_v37 = vpack.c.bf16 %v9477_v51, %v9719_v20  ;;  %v4944_v51 = vld [vmem:[#allocation2 + $0x50] sm:$0xff] }
 0x2a0   : > { %7901 = vmatpush3.bf16.msra.mxu0 %v8142_v52  ;;  %v8149_v52 = vld [vmem:[%s10454_s3 + $0x208] sm:$0xff]  }
 0x2a3   : > { %7823 = vmatmul.mubr.bf16.gmra.mxu0 %v9590_v6  ;;  %v4941_v6 = vld [vmem:[#allocation2 + $0x30] sm:$0xff] }
 0x2a4   : > { %7826 = vmatprep.mubr.bf16.mxu0 %v9603_v14  ;;  %v4973_v14 = vpack.c.bf16 %v4942_v19, %v4941_v6  ;;  %v4958_v19 = vld [vmem:[#allocation2 + $0xf8] sm:$0xff] }
 0x2a5   : > { %7779 = vmatmul.mubr.bf16.gmra.mxu1 %v9713_v3  ;;  %v4955_v6 = vld [vmem:[#allocation2 + $0xd8] sm:$0xff] }
 0x2a6   : > { %7782 = vmatprep.mubr.bf16.mxu1 %v9488_v61  ;;  %v4665_v61 = vld [vmem:[#allocation2 + $0x182] sm:$0xff] }
 0x2ab   : > { %7827 = vmatmul.mubr.bf16.gmra.mxu0 %v9606_v40  ;;  %v9729_v40 = vpack.c.bf16 %v4666_v32, %v4665_v61 }
 0x2ac   : > { %7830 = vmatprep.mubr.bf16.mxu0 %v9612_v30  ;;  %v4943_v30 = vld [vmem:[#allocation2 + $0x48] sm:$0xff] }
 0x2ad   : > { %7783 = vmatmul.mubr.bf16.gmra.mxu1 %v4374_v37  ;;  %v4974_v1 = vpack.c.bf16 %v4944_v51, %v4943_v30  ;;  %v4957_v51 = vld [vmem:[#allocation2 + $0xf0] sm:$0xff] }
 0x2ae   : > { %7786 = vmatprep.mubr.bf16.mxu1 %v9499_v38  ;;  %v8144_v38 = vld [vmem:[%s10454_s3 + $0x230] sm:$0xff]  }
 0x2b3   : > { %7831 = vmatmul.mubr.bf16.gmra.mxu0 %v9615_v55 }
 0x2b4   : > { %7834 = vmatprep.mubr.bf16.mxu0 %v9620_v43  ;;  %v4975_v43 = vpack.c.bf16 %v4946_v13, %v4945_v0  ;;  %v8150_v13 = vld [vmem:[%s10454_s3 + $0x200] sm:$0xff]  }
 0x2b5   : > { %7787 = vmatmul.mubr.bf16.gmra.mxu1 %v9495_v22 }
 0x2b6   : > { %7854 = vmatprep.mubr.bf16.mxu1 %v4973_v14 }
 0x2bb   : > { %7835 = vmatmul.mubr.bf16.gmra.mxu0 %v9729_v40  ;;  %v7568_v55 = vpop.f32.mrf.mxu1 }
 0x2bc   : > { %7902 = vmatprep.mubr.bf16.mxu0 %v9627_v57  ;;  %v8146_v57 = vld [vmem:[%s10454_s3 + $0x220] sm:$0xff]  }
 0x2bd   : > { %7855 = vmatmul.mubr.bf16.vlgmr.msra.gmra.mxu1 %v4974_v1  ;;  %v3381_v22 = vpop.f32.mrf.mxu1  ;;  %v4981_v1 = vpack.c.bf16 %v4958_v19, %v4957_v51  ;;  %v5272_v51 = vld [vmem:[#allocation2 + $0x159] sm:$0xff] }
 0x2be   : > { %7858 = vmatprep.mubr.bf16.mxu1 %v4975_v43  ;;  %7935 = vmatpush3.bf16.msra.mxu1 %v8143_v5 }
 0x2bf   : > { %7936 = vmatprep.subr.bf16.mxu1 %v8144_v38  ;;  %v7569_v41 = vpop.f32.mrf.mxu1 }
 0x2c1   : > { %v3384_v46 = vpop.f32.mrf.mxu1 }
 0x2c2   : > { %7937 = vmatpush3.bf16.msra.mxu1 %v8144_v38 }
 0x2c3   : > { %7938 = vmatprep.subr.bf16.mxu1 %v8145_v59  ;;  %v7616_v28 = vpop.f32.mrf.mxu0  ;;  %7903 = vmatmul.mubr.bf16.vlgmr.msra.gmra.mxu0 %v9633_v42  ;;  %v4952_v42 = vld [vmem:[#allocation2 + $0xb0] sm:$0xff] }
 0x2c4   : > { %v9743_v58 = vadd.f32 %v7616_v28, %v7568_v55  ;;  %7906 = vmatprep.mubr.bf16.mxu0 %v9642_v50  ;;  %v7572_v7 = vpop.f32.mrf.mxu1  ;;  %v4978_v56 = vpack.c.bf16 %v4952_v42, %v4951_v16 }
 0x2c5   : > { %7859 = vmatmul.mubr.bf16.gmra.mxu1 %v4976_v31  ;;  %v3590_v62 = vpop.f32.mrf.mxu0 }
 0x2c6   : > { %7862 = vmatprep.mubr.bf16.mxu1 %v4977_v27  ;;  %7939 = vmatpush3.bf16.msra.mxu1 %v8145_v59  ;;  %v9746_v4 = vadd.f32 %v3590_v62, %v3381_v22  ;;  %v3397_v35 = vpop.f32.mrf.mxu1  ;;  %v5262_v22 = vld [vmem:[#allocation2 + $0xe1] sm:$0xff] }
 0x2c7   : > { %7940 = vmatprep.subr.bf16.mxu1 %v8146_v57  ;;  %v7617_v36 = vpop.f32.mrf.mxu0  ;;  %v5286_v31 = vpack.c.bf16 %v5262_v22, %v9683_v11  ;;  %v4961_v27 = vld [vmem:[#allocation2 + $0x120] sm:$0xff]  ;;  %v5266_v11 = vld [vmem:[#allocation2 + $0x111] sm:$0xff] }
 0x2c8   : > { %v9751_v17 = vadd.f32 %v7617_v36, %v7569_v41  ;;  %v7573_v49 = vpop.f32.mrf.mxu1 }
 0x2c9   : > { %v3593_v50 = vpop.f32.mrf.mxu0 }
 0x2ca   : > { %7941 = vmatpush3.bf16.msra.mxu1 %v8146_v57  ;;  %v9753_v47 = vadd.f32 %v3593_v50, %v3384_v46  ;;  %v3400_v26 = vpop.f32.mrf.mxu1  ;;  %v4962_v46 = vld [vmem:[#allocation2 + $0x128] sm:$0xff]  ;;  %v4964_v50 = vld [vmem:[#allocation2 + $0x140] sm:$0xff] }
 0x2cb   : > { %7942 = vmatprep.subr.bf16.mxu1 %v8147_v23  ;;  %v7620_v8 = vpop.f32.mrf.mxu0  ;;  %7907 = vmatmul.mubr.bf16.gmra.mxu0 %v9648_v54  ;;  %v4956_v54 = vld [vmem:[#allocation2 + $0xe0] sm:$0xff]  ;;  %v4983_v62 = vpack.c.bf16 %v4962_v46, %v4961_v27 }
 0x2cc   : > { %v9759_v12 = vadd.f32 %v7620_v8, %v7572_v7  ;;  %7910 = vmatprep.mubr.bf16.mxu0 %v9663_v48  ;;  %v7576_v5 = vpop.f32.mrf.mxu1  ;;  %v4980_v32 = vpack.c.bf16 %v4956_v54, %v4955_v6  ;;  %v5270_v6 = vld [vmem:[#allocation2 + $0x141] sm:$0xff] }
 0x2cd   : > { %7863 = vmatmul.mubr.bf16.gmra.mxu1 %v4978_v56  ;;  %v3606_v45 = vpop.f32.mrf.mxu0 }
 0x2ce   : > { %7866 = vmatprep.mubr.bf16.mxu1 %v4979_v24  ;;  %7943 = vmatpush3.bf16.msra.mxu1 %v8147_v23  ;;  %v9762_v21 = vadd.f32 %v3606_v45, %v3397_v35  ;;  %v3413_v44 = vpop.f32.mrf.mxu1  ;;  %v4963_v24 = vld [vmem:[#allocation2 + $0x138] sm:$0xff] }
 0x2cf   : > { %7944 = vmatprep.subr.bf16.mxu1 %v8148_v33  ;;  %v7621_v2 = vpop.f32.mrf.mxu0  ;;  %v4984_v45 = vpack.c.bf16 %v4964_v50, %v4963_v24  ;;  %v5554_v50 = vld [vmem:[#allocation2 + $0x3a] sm:$0xff] }
 0x2d0   : > { %v9767_v25 = vadd.f32 %v7621_v2, %v7573_v49  ;;  %v7577_v37 = vpop.f32.mrf.mxu1 }
 0x2d1   : > { %v3609_v48 = vpop.f32.mrf.mxu0 }
 0x2d2   : > { %7945 = vmatpush3.bf16.msra.mxu1 %v8148_v33  ;;  %v9769_v14 = vadd.f32 %v3609_v48, %v3400_v26  ;;  %v3416_v61 = vpop.f32.mrf.mxu1  ;;  %v5265_v26 = vld [vmem:[#allocation2 + $0x109] sm:$0xff] }
 0x2d3   : > { %7946 = vmatprep.subr.bf16.mxu1 %v8149_v52  ;;  %v7624_v30 = vpop.f32.mrf.mxu0  ;;  %7911 = vmatmul.mubr.bf16.gmra.mxu0 %v9669_v34  ;;  %v5288_v8 = vpack.c.bf16 %v5266_v11, %v5265_v26  ;;  %v8152_v11 = vld [vmem:[#allocation2] sm:$0xff] }
 0x2d4   : > { %v9775_v0 = vadd.f32 %v7624_v30, %v7576_v5  ;;  %7914 = vmatprep.mubr.bf16.mxu0 %v9685_v18  ;;  %v7580_v38 = vpop.f32.mrf.mxu1  ;;  %v4959_v18 = vld [vmem:[#allocation2 + $0x108] sm:$0xff] }
 0x2d5   : > { %7867 = vmatmul.mubr.bf16.gmra.mxu1 %v4980_v32  ;;  %v3622_v55 = vpop.f32.mrf.mxu0  ;;  %v4982_v28 = vpack.c.bf16 %v4960_v39, %v4959_v18 }
 0x2d6   : > { %7870 = vmatprep.mubr.bf16.mxu1 %v4981_v1  ;;  %7947 = vmatpush3.bf16.msra.mxu1 %v8149_v52  ;;  %v9778_v43 = vadd.f32 %v3622_v55, %v3413_v44  ;;  %v3429_v59 = vpop.f32.mrf.mxu1  ;;  %v4965_v44 = vld [vmem:[#allocation2 + $0x150] sm:$0xff]  ;;  %v5269_v1 = vld [vmem:[#allocation2 + $0x139] sm:$0xff] }
 0x2d7   : > { %7948 = vmatprep.subr.bf16.mxu1 %v8150_v13  ;;  %v7625_v41 = vpop.f32.mrf.mxu0  ;;  %v4985_v2 = vpack.c.bf16 %v4966_v63, %v4965_v44  ;;  %v5290_v22 = vpack.c.bf16 %v5270_v6, %v5269_v1  ;;  %v5275_v63 = vld [vmem:[#allocation2 + $0x181] sm:$0xff] }
 0x2d8   : > { %v9780_v15 = vadd.f32 %v7625_v41, %v7577_v37  ;;  %v7581_v34 = vpop.f32.mrf.mxu1 }
 0x2d9   : > { %v3625_v29 = vpop.f32.mrf.mxu0 }
 0x2da   : > { %7949 = vmatpush3.bf16.msra.mxu1 %v8150_v13  ;;  %v9783_v10 = vadd.f32 %v3625_v29, %v3416_v61  ;;  %v3432_v57 = vpop.f32.mrf.mxu1  ;;  %v4968_v13 = vld [vmem:[#allocation2 + $0x170] sm:$0xff] }
 0x2db   : > { %v7628_v7 = vpop.f32.mrf.mxu0  ;;  %7915 = vmatmul.mubr.bf16.gmra.mxu0 %v5286_v31 }
 0x2dc   : > { %v9785_v35 = vadd.f32 %v7628_v7, %v7580_v38  ;;  %7918 = vmatprep.mubr.bf16.mxu0 %v9704_v60 }
 0x2dd   : > { %v7584_v23 = vpop.f32.mrf.mxu1  ;;  %7871 = vmatmul.mubr.bf16.gmra.mxu1 %v4982_v28  ;;  %v3638_v36 = vpop.f32.mrf.mxu0  ;;  %v5274_v28 = vld [vmem:[#allocation2 + $0x171] sm:$0xff] }
 0x2de   : > { %7874 = vmatprep.mubr.bf16.mxu1 %v4983_v62  ;;  %v9788_v42 = vadd.f32 %v3638_v36, %v3429_v59  ;;  %v4967_v59 = vld [vmem:[#allocation2 + $0x168] sm:$0xff] }
 0x2df   : > { %v3445_v49 = vpop.f32.mrf.mxu1  ;;  %v7629_v53 = vpop.f32.mrf.mxu0  ;;  %v5276_v62 = vld [vmem:[#allocation2 + $0x189] sm:$0xff] }
 0x2e0   : > { %v9790_v16 = vadd.f32 %v7629_v53, %v7581_v34  ;;  %v4986_v34 = vpack.c.bf16 %v4968_v13, %v4967_v59  ;;  %v5553_v53 = vld [vmem:[#allocation2 + $0x32] sm:$0xff] }
 0x2e1   : > { %v7585_v56 = vpop.f32.mrf.mxu1  ;;  %v3641_v33 = vpop.f32.mrf.mxu0  ;;  %v5556_v13 = vld [vmem:[#allocation2 + $0x52] sm:$0xff] }
 0x2e2   : > { %v9792_v5 = vadd.f32 %v3641_v33, %v3432_v57 }
 0x2e3   : > { %v3448_v60 = vpop.f32.mrf.mxu1  ;;  %v7632_v52 = vpop.f32.mrf.mxu0  ;;  %7919 = vmatmul.mubr.bf16.gmra.mxu0 %v5288_v8 }
 0x2e4   : > { %v9794_v54 = vadd.f32 %v7632_v52, %v7584_v23  ;;  %7922 = vmatprep.mubr.bf16.mxu0 %v9713_v3  ;;  %v5291_v3 = vpack.c.bf16 %v5272_v51, %v9719_v20  ;;  %v5273_v20 = vld [vmem:[#allocation2 + $0x169] sm:$0xff]  ;;  %v5277_v52 = vld [vmem:[#allocation2 + $0x199] sm:$0xff] }
 0x2e5   : > { %v7588_v37 = vpop.f32.mrf.mxu1  ;;  %7875 = vmatmul.mubr.bf16.gmra.mxu1 %v4984_v45  ;;  %v3654_v19 = vpop.f32.mrf.mxu0  ;;  %v5555_v51 = vld [vmem:[#allocation2 + $0x4a] sm:$0xff] }
 0x2e6   : > { %7878 = vmatprep.mubr.bf16.mxu1 %v4985_v2  ;;  %v9797_v48 = vadd.f32 %v3654_v19, %v3445_v49  ;;  %v4988_v49 = vpack.c.bf16 %v8152_v11, %v8152_v11  ;;  %v5278_v2 = vld [vmem:[#allocation2 + $0x1a1] sm:$0xff] }
 0x2e7   : > { %v3461_v61 = vpop.f32.mrf.mxu1  ;;  %v7633_v32 = vpop.f32.mrf.mxu0 }
 0x2e8   : > { %v9799_v30 = vadd.f32 %v7633_v32, %v7585_v56  ;;  %v5292_v56 = vpack.c.bf16 %v5274_v28, %v5273_v20  ;;  %v5294_v32 = vpack.c.bf16 %v5278_v2, %v5277_v52 }
 0x2e9   : > { %v7589_v38 = vpop.f32.mrf.mxu1  ;;  %v3657_v55 = vpop.f32.mrf.mxu0 }
 0x2ea   : > { %v9801_v41 = vadd.f32 %v3657_v55, %v3448_v60  ;;  %v5585_v60 = vpack.c.bf16 %v5554_v50, %v5553_v53  ;;  %v5557_v55 = vld [vmem:[#allocation2 + $0x62] sm:$0xff] }
 0x2eb   : > { %v3464_v39 = vpop.f32.mrf.mxu1  ;;  %v7636_v46 = vpop.f32.mrf.mxu0  ;;  %7923 = vmatmul.mubr.bf16.gmra.mxu0 %v5290_v22  ;;  %v5558_v22 = vld [vmem:[#allocation2 + $0x6a] sm:$0xff]  ;;  %v5560_v53 = vld [vmem:[#allocation2 + $0x82] sm:$0xff] }
 0x2ec   : > { %v9804_v29 = vadd.f32 %v7636_v46, %v7588_v37  ;;  %7926 = vmatprep.mubr.bf16.mxu0 %v5291_v3 }
 0x2ed   : > { %v7592_v31 = vpop.f32.mrf.mxu1  ;;  %7879 = vmatmul.mubr.bf16.gmra.mxu1 %v4986_v34  ;;  %v3670_v18 = vpop.f32.mrf.mxu0  ;;  %v5586_v34 = vpack.c.bf16 %v5556_v13, %v5555_v51 }
 0x2ee   : > { %7882 = vmatprep.mubr.bf16.mxu1 %v9625_v9  ;;  %v9807_v57 = vadd.f32 %v3670_v18, %v3461_v61  ;;  %v5293_v9 = vpack.c.bf16 %v5276_v62, %v5275_v63  ;;  %v5562_v63 = vld [vmem:[#allocation2 + $0x9a] sm:$0xff] }
 0x2ef   : > { %v3477_v27 = vpop.f32.mrf.mxu1  ;;  %v7637_v7 = vpop.f32.mrf.mxu0 }
 0x2f0   : > { %v9809_v23 = vadd.f32 %v7637_v7, %v7589_v38 }
 0x2f1   : > { %v7593_v36 = vpop.f32.mrf.mxu1  ;;  %v3673_v26 = vpop.f32.mrf.mxu0 }
 0x2f2   : > { %v9811_v33 = vadd.f32 %v3673_v26, %v3464_v39 }
 0x2f3   : > { %v3480_v8 = vpop.f32.mrf.mxu1  ;;  %v7640_v24 = vpop.f32.mrf.mxu0  ;;  %7927 = vmatmul.mubr.bf16.gmra.mxu0 %v5292_v56  ;;  %v5561_v56 = vld [vmem:[#allocation2 + $0x92] sm:$0xff] }
 0x2f4   : > { %v9813_v45 = vadd.f32 %v7640_v24, %v7592_v31  ;;  %7930 = vmatprep.mubr.bf16.mxu0 %v5293_v9  ;;  %v5587_v31 = vpack.c.bf16 %v5558_v22, %v5557_v55  ;;  %v5589_v2 = vpack.c.bf16 %v5562_v63, %v5561_v56  ;;  %v5564_v55 = vld [vmem:[#allocation2 + $0xb2] sm:$0xff]  ;;  %v5567_v63 = vld [vmem:[#allocation2 + $0xda] sm:$0xff] }
 0x2f5   : > { %v7596_v44 = vpop.f32.mrf.mxu1  ;;  %7883 = vmatmul.mubr.bf16.gmra.mxu1 %v4988_v49  ;;  %v3686_v37 = vpop.f32.mrf.mxu0  ;;  %v5559_v49 = vld [vmem:[#allocation2 + $0x7a] sm:$0xff] }
 0x2f6   : > { %7950 = vmatprep.mubr.bf16.mxu1 %v5585_v60  ;;  %v9815_v19 = vadd.f32 %v3686_v37, %v3477_v27  ;;  %v5588_v60 = vpack.c.bf16 %v5560_v53, %v5559_v49 }
 0x2f7   : > { %v3493_v6 = vpop.f32.mrf.mxu1  ;;  %v7641_v61 = vpop.f32.mrf.mxu0 }
 0x2f8   : > { %v9817_v1 = vadd.f32 %v7641_v61, %v7593_v36 }
 0x2f9   : > { %v7597_v38 = vpop.f32.mrf.mxu1  ;;  %v3689_v59 = vpop.f32.mrf.mxu0 }
 0x2fa   : > { %v9819_v3 = vadd.f32 %v3689_v59, %v3480_v8  ;;  %v5565_v59 = vld [vmem:[#allocation2 + $0xc2] sm:$0xff] }
 0x2fb   : > { %v3496_v39 = vpop.f32.mrf.mxu1  ;;  %v7644_v46 = vpop.f32.mrf.mxu0  ;;  %7931 = vmatmul.mubr.bf16.gmra.mxu0 %v5294_v32 }
 0x2fc   : > { %v9821_v18 = vadd.f32 %v7644_v46, %v7596_v44 }
 0x2fd   : > { %v7664_v28 = vpop.f32.mrf.mxu1  ;;  %7951 = vmatmul.mubr.bf16.vlgmr.msra.gmra.mxu1 %v5586_v34  ;;  %v3702_v27 = vpop.f32.mrf.mxu0 }
 0x2fe   : > { %v3993_v7 = vadd.f32 %v7664_v28, %v9743_v58  ;;  %7954 = vmatprep.mubr.bf16.mxu1 %v5587_v31  ;;  %v9824_v62 = vadd.f32 %v3702_v27, %v3493_v6 }
 0x2ff   : > { %v3864_v20 = vpop.f32.mrf.mxu1  ;;  %v7645_v36 = vpop.f32.mrf.mxu0 }
 0x300   : > { %v3991_v11 = vadd.f32 %v3864_v20, %v9746_v4  ;;  %v9827_v50 = vadd.f32 %v7645_v36, %v7597_v38  ;;  %v5563_v38 = vld [vmem:[#allocation2 + $0xaa] sm:$0xff] }
 0x301   : > { %v7665_v26 = vpop.f32.mrf.mxu1  ;;  %v3705_v9 = vpop.f32.mrf.mxu0  ;;  %v5590_v28 = vpack.c.bf16 %v5564_v55, %v5563_v38 }
 0x302   : > { %v3994_v8 = vadd.f32 %v7665_v26, %v9751_v17  ;;  %v9830_v24 = vadd.f32 %v3705_v9, %v3496_v39  ;;  %v5566_v39 = vld [vmem:[#allocation2 + $0xca] sm:$0xff]  ;;  %v5568_v9 = vld [vmem:[#allocation2 + $0xe2] sm:$0xff] }
 0x303   : > { %v3867_v58 = vpop.f32.mrf.mxu1  ;;  %v7712_v44 = vpop.f32.mrf.mxu0  ;;  %v5591_v20 = vpack.c.bf16 %v5566_v39, %v5565_v59  ;;  %v5571_v39 = vld [vmem:[#allocation2 + $0x10a] sm:$0xff] }
 0x304   : > { %v3992_v52 = vadd.f32 %v3867_v58, %v9753_v47  ;;  %v9833_v37 = vadd.f32 %v7712_v44, %v3993_v7  ;;  %v5569_v58 = vld [vmem:[#allocation2 + $0xf2] sm:$0xff] }
 0x305   : > { %v7668_v4 = vpop.f32.mrf.mxu1  ;;  %7955 = vmatmul.mubr.bf16.gmra.mxu1 %v5588_v60  ;;  %v4170_v6 = vpop.f32.mrf.mxu0  ;;  %v5570_v60 = vld [vmem:[#allocation2 + $0xfa] sm:$0xff] }
 0x306   : > { %v3997_v61 = vadd.f32 %v7668_v4, %v9759_v12  ;;  %7958 = vmatprep.mubr.bf16.mxu1 %v5589_v2  ;;  %v9836_v32 = vadd.f32 %v4170_v6, %v3991_v11  ;;  %v5592_v4 = vpack.c.bf16 %v5568_v9, %v5567_v63 }
 0x307   : > { %v3880_v51 = vpop.f32.mrf.mxu1  ;;  %v7713_v17 = vpop.f32.mrf.mxu0 }
 0x308   : > { %v3995_v13 = vadd.f32 %v3880_v51, %v9762_v21  ;;  %v9839_v22 = vadd.f32 %v7713_v17, %v3994_v8  ;;  %v5593_v51 = vpack.c.bf16 %v5570_v60, %v5569_v58  ;;  %v5575_v60 = vld [vmem:[#allocation2 + $0x13a] sm:$0xff] }
 0x309   : > { %v7669_v47 = vpop.f32.mrf.mxu1  ;;  %v4173_v34 = vpop.f32.mrf.mxu0 }
 0x30a   : > { %v3998_v46 = vadd.f32 %v7669_v47, %v9767_v25  ;;  %v9842_v31 = vadd.f32 %v4173_v34, %v3992_v52  ;;  %v5572_v34 = vld [vmem:[#allocation2 + $0x112] sm:$0xff] }
 0x30b   : > { %v3883_v12 = vpop.f32.mrf.mxu1  ;;  %v7716_v27 = vpop.f32.mrf.mxu0 }
 0x30c   : > { %v3996_v7 = vadd.f32 %v3883_v12, %v9769_v14  ;;  %v9845_v36 = vadd.f32 %v7716_v27, %v3997_v61  ;;  %v5573_v12 = vld [vmem:[#allocation2 + $0x122] sm:$0xff] }
 0x30d   : > { %v7672_v21 = vpop.f32.mrf.mxu1  ;;  %7959 = vmatmul.mubr.bf16.gmra.mxu1 %v5590_v28  ;;  %v4186_v11 = vpop.f32.mrf.mxu0  ;;  %v5574_v28 = vld [vmem:[#allocation2 + $0x12a] sm:$0xff] }
 0x30e   : > { %v4001_v49 = vadd.f32 %v7672_v21, %v9775_v0  ;;  %7962 = vmatprep.mubr.bf16.mxu1 %v5591_v20  ;;  %v9848_v53 = vadd.f32 %v4186_v11, %v3995_v13  ;;  %v5594_v21 = vpack.c.bf16 %v5572_v34, %v5571_v39 }
 0x30f   : > { %v3896_v26 = vpop.f32.mrf.mxu1  ;;  %v7717_v25 = vpop.f32.mrf.mxu0 }
 0x310   : > { %v3999_v56 = vadd.f32 %v3896_v26, %v9778_v43  ;;  %v9851_v8 = vadd.f32 %v7717_v25, %v3998_v46  ;;  %v5595_v26 = vpack.c.bf16 %v5574_v28, %v5573_v12  ;;  %v5579_v28 = vld [vmem:[#allocation2 + $0x16a] sm:$0xff] }
 0x311   : > { %v7673_v14 = vpop.f32.mrf.mxu1  ;;  %v4189_v44 = vpop.f32.mrf.mxu0 }
 0x312   : > { %v4002_v52 = vadd.f32 %v7673_v14, %v9780_v15  ;;  %v9854_v2 = vadd.f32 %v4189_v44, %v3996_v7  ;;  %v5576_v44 = vld [vmem:[#allocation2 + $0x142] sm:$0xff] }
 0x313   : > { %v3899_v0 = vpop.f32.mrf.mxu1  ;;  %v7720_v6 = vpop.f32.mrf.mxu0 }
 0x314   : > { %v4000_v61 = vadd.f32 %v3899_v0, %v9783_v10  ;;  %v9857_v17 = vadd.f32 %v7720_v6, %v4001_v49  ;;  %v5577_v0 = vld [vmem:[#allocation2 + $0x152] sm:$0xff] }
 0x315   : > { %v7676_v43 = vpop.f32.mrf.mxu1  ;;  %7963 = vmatmul.mubr.bf16.gmra.mxu1 %v5592_v4  ;;  %v4202_v13 = vpop.f32.mrf.mxu0  ;;  %v5578_v4 = vld [vmem:[#allocation2 + $0x15a] sm:$0xff] }
 0x316   : > { %v4005_v38 = vadd.f32 %v7676_v43, %v9785_v35  ;;  %7966 = vmatprep.mubr.bf16.mxu1 %v5593_v51  ;;  %v9860_v55 = vadd.f32 %v4202_v13, %v3999_v56  ;;  %v5596_v43 = vpack.c.bf16 %v5576_v44, %v5575_v60 }
 0x317   : > { %v3912_v47 = vpop.f32.mrf.mxu1  ;;  %v7721_v15 = vpop.f32.mrf.mxu0 }
 0x318   : > { %v4003_v59 = vadd.f32 %v3912_v47, %v9788_v42  ;;  %v9863_v46 = vadd.f32 %v7721_v15, %v4002_v52  ;;  %v5597_v47 = vpack.c.bf16 %v5578_v4, %v5577_v0 }
 0x319   : > { %v7677_v10 = vpop.f32.mrf.mxu1  ;;  %v4205_v27 = vpop.f32.mrf.mxu0 }
 0x31a   : > { %v4006_v7 = vadd.f32 %v7677_v10, %v9790_v16  ;;  %v9866_v20 = vadd.f32 %v4205_v27, %v4000_v61  ;;  %v5580_v27 = vld [vmem:[#allocation2 + $0x172] sm:$0xff] }
 0x31b   : > { %v3915_v35 = vpop.f32.mrf.mxu1  ;;  %v7724_v11 = vpop.f32.mrf.mxu0 }
 0x31c   : > { %v4004_v49 = vadd.f32 %v3915_v35, %v9792_v5  ;;  %v9869_v25 = vadd.f32 %v7724_v11, %v4005_v38 }
 0x31d   : > { %v7680_v42 = vpop.f32.mrf.mxu1  ;;  %7967 = vmatmul.mubr.bf16.gmra.mxu1 %v5594_v21  ;;  %v4218_v56 = vpop.f32.mrf.mxu0 }
 0x31e   : > { %v4009_v63 = vadd.f32 %v7680_v42, %v9794_v54  ;;  %7970 = vmatprep.mubr.bf16.mxu1 %v5595_v26  ;;  %v9872_v9 = vadd.f32 %v4218_v56, %v4003_v59  ;;  %v5598_v26 = vpack.c.bf16 %v5580_v27, %v5579_v28 }
 0x31f   : > { %v3928_v14 = vpop.f32.mrf.mxu1  ;;  %v7725_v16 = vpop.f32.mrf.mxu0 }
 0x320   : > { %v4007_v58 = vadd.f32 %v3928_v14, %v9797_v48  ;;  %v9875_v52 = vadd.f32 %v7725_v16, %v4006_v7  ;;  %v5583_v16 = vld [vmem:[#allocation2 + $0x19a] sm:$0xff] }
 0x321   : > { %v7681_v5 = vpop.f32.mrf.mxu1  ;;  %v4221_v6 = vpop.f32.mrf.mxu0 }
 0x322   : > { %v4010_v61 = vadd.f32 %v7681_v5, %v9799_v30  ;;  %v9878_v51 = vadd.f32 %v4221_v6, %v4004_v49 }
 0x323   : > { %v3931_v54 = vpop.f32.mrf.mxu1  ;;  %v7728_v13 = vpop.f32.mrf.mxu0 }
 0x324   : > { %v4008_v38 = vadd.f32 %v3931_v54, %v9801_v41  ;;  %v9881_v15 = vadd.f32 %v7728_v13, %v4009_v63 }
 0x325   : > { %v7684_v48 = vpop.f32.mrf.mxu1  ;;  %7971 = vmatmul.mubr.bf16.gmra.mxu1 %v5596_v43  ;;  %v4234_v59 = vpop.f32.mrf.mxu0 }
 0x326   : > { %v4013_v39 = vadd.f32 %v7684_v48, %v9804_v29  ;;  %7974 = vmatprep.mubr.bf16.mxu1 %v5597_v47  ;;  %v9884_v34 = vadd.f32 %v4234_v59, %v4007_v58  ;;  %v5584_v58 = vld [vmem:[#allocation2 + $0x1a2] sm:$0xff] }
 0x327   : > { %v3944_v10 = vpop.f32.mrf.mxu1  ;;  %v7729_v30 = vpop.f32.mrf.mxu0  ;;  %v5600_v4 = vpack.c.bf16 %v5584_v58, %v5583_v16 }
 0x328   : > { %v4011_v12 = vadd.f32 %v3944_v10, %v9807_v57  ;;  %v9887_v7 = vadd.f32 %v7729_v30, %v4010_v61 }
 0x329   : > { %v7685_v41 = vpop.f32.mrf.mxu1  ;;  %v4237_v35 = vpop.f32.mrf.mxu0 }
 0x32a   : > { %v4014_v21 = vadd.f32 %v7685_v41, %v9809_v23  ;;  %v9890_v11 = vadd.f32 %v4237_v35, %v4008_v38 }
 0x32b   : > { %v3947_v49 = vpop.f32.mrf.mxu1  ;;  %v7732_v29 = vpop.f32.mrf.mxu0 }
 0x32c   : > { %v4012_v42 = vadd.f32 %v3947_v49, %v9811_v33  ;;  %v9893_v56 = vadd.f32 %v7732_v29, %v4013_v39 }
 0x32d   : > { %v7688_v63 = vpop.f32.mrf.mxu1  ;;  %7975 = vmatmul.mubr.bf16.gmra.mxu1 %v5598_v26  ;;  %v4250_v57 = vpop.f32.mrf.mxu0 }
 0x32e   : > { %v4017_v14 = vadd.f32 %v7688_v63, %v9813_v45  ;;  %7978 = vmatprep.mubr.bf16.mxu1 %v9729_v40  ;;  %v9897_v60 = vadd.f32 %v4250_v57, %v4011_v12 }
 0x32f   : > { %v3960_v23 = vpop.f32.mrf.mxu1  ;;  %v7733_v44 = vpop.f32.mrf.mxu0 }
 0x330   : > { %v4015_v5 = vadd.f32 %v3960_v23, %v9815_v19  ;;  %v9900_v0 = vadd.f32 %v7733_v44, %v4014_v21 }
 0x331   : > { %v7689_v33 = vpop.f32.mrf.mxu1  ;;  %v4253_v6 = vpop.f32.mrf.mxu0 }
 0x332   : > { %v4018_v61 = vadd.f32 %v7689_v33, %v9817_v1  ;;  %v9903_v54 = vadd.f32 %v4253_v6, %v4012_v42 }
 0x333   : > { %v3963_v45 = vpop.f32.mrf.mxu1  ;;  %v7736_v43 = vpop.f32.mrf.mxu0 }
 0x334   : > { %v4016_v40 = vadd.f32 %v3963_v45, %v9819_v3  ;;  %v9906_v13 = vadd.f32 %v7736_v43, %v4017_v14 }
 0x335   : > { %v7692_v38 = vpop.f32.mrf.mxu1  ;;  %7979 = vmatmul.mubr.bf16.gmra.mxu1 %v5600_v4  ;;  %v4266_v47 = vpop.f32.mrf.mxu0 }
 0x336   : > { %v4021_v19 = vadd.f32 %v7692_v38, %v9821_v18  ;;  %v9909_v48 = vadd.f32 %v4266_v47, %v4015_v5 }
 0x337   : > { %v3976_v59 = vpop.f32.mrf.mxu1  ;;  %v7737_v39 = vpop.f32.mrf.mxu0 }
 0x338   : > { %v4019_v10 = vadd.f32 %v3976_v59, %v9824_v62  ;;  %v9912_v1 = vadd.f32 %v7737_v39, %v4018_v61 }
 0x339   : > { %v7693_v30 = vpop.f32.mrf.mxu1  ;;  %v4269_v12 = vpop.f32.mrf.mxu0 }
 0x33a   : > { %v4022_v28 = vadd.f32 %v7693_v30, %v9827_v50  ;;  %v9915_v3 = vadd.f32 %v4269_v12, %v4016_v40 }
 0x33b   : > { %v3979_v27 = vpop.f32.mrf.mxu1  ;;  %v7740_v41 = vpop.f32.mrf.mxu0 }
 0x33c   : > { %v4020_v35 = vadd.f32 %v3979_v27, %v9830_v24  ;;  %v9918_v21 = vadd.f32 %v7740_v41, %v4021_v19 }
 0x33d   : > { %v7760_v18 = vpop.f32.mrf.mxu1  ;;  %v4282_v49 = vpop.f32.mrf.mxu0 }
 0x33e   : > { %v9921_v26 = vadd.f32 %v7760_v18, %v9833_v37  ;;  %v9923_v62 = vadd.f32 %v4282_v49, %v4019_v10 }
 0x33f   : > { %v4476_v29 = vpop.f32.mrf.mxu1  ;;  %v7741_v42 = vpop.f32.mrf.mxu0 }
 0x340   : > { %v9926_v63 = vadd.f32 %v4476_v29, %v9836_v32  ;;  %v9928_v50 = vadd.f32 %v7741_v42, %v4022_v28 }
 0x341   : > { %v7761_v57 = vpop.f32.mrf.mxu1  ;;  %v4285_v14 = vpop.f32.mrf.mxu0 }
 0x342   : > { %v9931_v24 = vadd.f32 %v7761_v57, %v9839_v22  ;;  %v9933_v16 = vadd.f32 %v4285_v14, %v4020_v35 }
 0x343   : > { %v4479_v58 = vpop.f32.mrf.mxu1  ;;  %v9935_v23 = vpop.f32.mrf.mxu0 }
 0x344   : > { %v9938_v37 = vadd.f32 %v4479_v58, %v9842_v31 }
 0x345   : > { %v7764_v44 = vpop.f32.mrf.mxu1  ;;  %v9940_v5 = vpop.f32.mrf.mxu0 }
 0x346   : > { %v9943_v32 = vadd.f32 %v7764_v44, %v9845_v36 }
 0x347   : > { %v4492_v33 = vpop.f32.mrf.mxu1  ;;  %v9945_v4 = vpop.f32.mrf.mxu0 }
 0x348   : > { %v9948_v22 = vadd.f32 %v4492_v33, %v9848_v53 }
 0x349   : > { %v7765_v6 = vpop.f32.mrf.mxu1  ;;  %v9950_v61 = vpop.f32.mrf.mxu0 }
 0x34a   : > { %v9953_v45 = vadd.f32 %v7765_v6, %v9851_v8 }
 0x34b   : > { %v4495_v31 = vpop.f32.mrf.mxu1  ;;  %v9955_v43 = vpop.f32.mrf.mxu0 }
 0x34c   : > { %v9958_v40 = vadd.f32 %v4495_v31, %v9854_v2 }
 0x34d   : > { %v7768_v36 = vpop.f32.mrf.mxu1  ;;  %v9960_v38 = vpop.f32.mrf.mxu0 }
 0x34e   : > { %v9963_v47 = vadd.f32 %v7768_v36, %v9857_v17 }
 0x34f   : > { %v4508_v53 = vpop.f32.mrf.mxu1  ;;  %v9965_v19 = vpop.f32.mrf.mxu0 }
 0x350   : > { %v9968_v59 = vadd.f32 %v4508_v53, %v9860_v55 }
 0x351   : > { %v7769_v8 = vpop.f32.mrf.mxu1  ;;  %v9970_v39 = vpop.f32.mrf.mxu0 }
 0x352   : > { %v9973_v10 = vadd.f32 %v7769_v8, %v9863_v46 }
 0x353   : > { %v4511_v2 = vpop.f32.mrf.mxu1  ;;  %v9975_v30 = vpop.f32.mrf.mxu0 }
 0x354   : > { %v9978_v12 = vadd.f32 %v4511_v2, %v9866_v20 }
 0x355   : > { %v7772_v17 = vpop.f32.mrf.mxu1  ;;  %v9980_v28 = vpop.f32.mrf.mxu0 }
 0x356   : > { %v9983_v27 = vadd.f32 %v7772_v17, %v9869_v25 }
 0x357   : > { %v4524_v55 = vpop.f32.mrf.mxu1  ;;  %v9985_v41 = vpop.f32.mrf.mxu0 }
 0x358   : > { %v9988_v35 = vadd.f32 %v4524_v55, %v9872_v9 }
 0x359   : > { %v7773_v46 = vpop.f32.mrf.mxu1  ;;  %v9990_v18 = vpop.f32.mrf.mxu0 }
 0x35a   : > { %v9993_v49 = vadd.f32 %v7773_v46, %v9875_v52 }
 0x35b   : > { %v4527_v20 = vpop.f32.mrf.mxu1  ;;  %v9995_v29 = vpop.f32.mrf.mxu0 }
 0x35c   : > { %10621 = vst [vmem:[#allocation9_spill] sm:$0xff] %v9993_v49  ;;  %v9998_v42 = vadd.f32 %v4527_v20, %v9878_v51 }
 0x35d   : > { %v7776_v25 = vpop.f32.mrf.mxu1  ;;  %v10000_v57 = vpop.f32.mrf.mxu0 }
 0x35e   : > { %10622 = vst [vmem:[#allocation10_spill] sm:$0xff] %v9998_v42  ;;  %v10003_v14 = vadd.f32 %v7776_v25, %v9881_v15 }
 0x35f   : > { %v4540_v9 = vpop.f32.mrf.mxu1  ;;  %v10005_v58 = vpop.f32.mrf.mxu0 }
 0x360   : > { %10623 = vst [vmem:[#allocation5_spill] sm:$0xff] %v10003_v14  ;;  %10624 = vst [vmem:[#allocation11_spill] sm:$0xff] %v10005_v58  ;;  %v10008_v44 = vadd.f32 %v4540_v9, %v9884_v34 }
 0x361   : > { %v7777_v52 = vpop.f32.mrf.mxu1  ;;  %v10010_v33 = vpop.f32.mrf.mxu0 }
 0x362   : > { %10625 = vst [vmem:[#allocation12_spill] sm:$0xff] %v10008_v44  ;;  %10626 = vst [vmem:[#allocation60_spill] sm:$0xff] %v10010_v33  ;;  %v10013_v6 = vadd.f32 %v7777_v52, %v9887_v7 }
 0x363   : > { %v4543_v51 = vpop.f32.mrf.mxu1  ;;  %v10015_v31 = vpop.f32.mrf.mxu0 }
 0x364   : > { %10627 = vst [vmem:[#allocation56_spill] sm:$0xff] %v10013_v6  ;;  %10628 = vst [vmem:[#allocation3_spill] sm:$0xff] %v10015_v31  ;;  %v10018_v36 = vadd.f32 %v4543_v51, %v9890_v11 }
 0x365   : > { %v7780_v15 = vpop.f32.mrf.mxu1  ;;  %v10020_v53 = vpop.f32.mrf.mxu0 }
 0x366   : > { %10629 = vst [vmem:[#allocation4_spill] sm:$0xff] %v10018_v36  ;;  %10630 = vst [vmem:[#allocation13_spill] sm:$0xff] %v10020_v53  ;;  %v10023_v8 = vadd.f32 %v7780_v15, %v9893_v56 }
 0x367   : > { %v4556_v34 = vpop.f32.mrf.mxu1  ;;  %v10025_v2 = vpop.f32.mrf.mxu0 }
 0x368   : > { %10631 = vst [vmem:[#allocation63_spill] sm:$0xff] %v10023_v8  ;;  %10632 = vst [vmem:[#allocation57_spill] sm:$0xff] %v10025_v2  ;;  %v10028_v17 = vadd.f32 %v4556_v34, %v9897_v60 }
 0x369   : > { %v7781_v7 = vpop.f32.mrf.mxu1  ;;  %v10030_v55 = vpop.f32.mrf.mxu0 }
 0x36a   : > { %10633 = vst [vmem:[#allocation6_spill] sm:$0xff] %v10028_v17  ;;  %10634 = vst [vmem:[#allocation14_spill] sm:$0xff] %v10030_v55  ;;  %v10033_v46 = vadd.f32 %v7781_v7, %v9900_v0 }
 0x36b   : > { %v4559_v11 = vpop.f32.mrf.mxu1  ;;  %v10035_v20 = vpop.f32.mrf.mxu0 }
 0x36c   : > { %10635 = vst [vmem:[#allocation15_spill] sm:$0xff] %v10033_v46  ;;  %10636 = vst [vmem:[#allocation58_spill] sm:$0xff] %v10035_v20  ;;  %v10038_v25 = vadd.f32 %v4559_v11, %v9903_v54 }
 0x36d   : > { %v7784_v56 = vpop.f32.mrf.mxu1  ;;  %v10040_v9 = vpop.f32.mrf.mxu0 }
 0x36e   : > { %10637 = vst [vmem:[#allocation20_spill] sm:$0xff] %v10038_v25  ;;  %10638 = vst [vmem:[#allocation66_spill] sm:$0xff] %v10040_v9  ;;  %v10043_v52 = vadd.f32 %v7784_v56, %v9906_v13 }
 0x36f   : > { %v4572_v60 = vpop.f32.mrf.mxu1  ;;  %v10045_v51 = vpop.f32.mrf.mxu0 }
 0x370   : > { %10639 = vst [vmem:[#allocation7_spill] sm:$0xff] %v10043_v52  ;;  %10640 = vst [vmem:[#allocation16_spill] sm:$0xff] %v10045_v51  ;;  %v10048_v15 = vadd.f32 %v4572_v60, %v9909_v48 }
 0x371   : > { %v7785_v0 = vpop.f32.mrf.mxu1  ;;  %v10050_v34 = vpop.f32.mrf.mxu0 }
 0x372   : > { %10641 = vst [vmem:[#allocation17_spill] sm:$0xff] %v10048_v15  ;;  %10642 = vst [vmem:[#allocation21_spill] sm:$0xff] %v10050_v34  ;;  %v10053_v7 = vadd.f32 %v7785_v0, %v9912_v1 }
 0x373   : > { %v4575_v54 = vpop.f32.mrf.mxu1  ;;  %v10055_v11 = vpop.f32.mrf.mxu0 }
 0x374   : > { %10643 = vst [vmem:[#allocation59_spill] sm:$0xff] %v10053_v7  ;;  %10644 = vst [vmem:[#allocation69_spill] sm:$0xff] %v10055_v11  ;;  %v10058_v25 = vadd.f32 %v4575_v54, %v9915_v3 }
 0x375   : > { %v7788_v13 = vpop.f32.mrf.mxu1  ;;  %v10060_v56 = vpop.f32.mrf.mxu0 }
 0x376   : > { %10645 = vst [vmem:[#allocation18_spill] sm:$0xff] %v10058_v25  ;;  %10646 = vst [vmem:[#allocation19_spill] sm:$0xff] %v10060_v56  ;;  %v10063_v52 = vadd.f32 %v7788_v13, %v9918_v21 }
 0x377   : > { %v4588_v48 = vpop.f32.mrf.mxu1  ;;  %v10065_v60 = vpop.f32.mrf.mxu0 }
 0x378   : > { %10647 = vst [vmem:[#allocation61_spill] sm:$0xff] %v10063_v52  ;;  %10648 = vst [vmem:[#allocation22_spill] sm:$0xff] %v10065_v60  ;;  %v10068_v15 = vadd.f32 %v4588_v48, %v9923_v62 }
 0x379   : > { %v7789_v1 = vpop.f32.mrf.mxu1  ;;  %v10070_v0 = vpop.f32.mrf.mxu0 }
 0x37a   : > { %10649 = vst [vmem:[#allocation74_spill] sm:$0xff] %v10068_v15  ;;  %10650 = vst [vmem:[#allocation62_spill] sm:$0xff] %v10070_v0  ;;  %v10073_v7 = vadd.f32 %v7789_v1, %v9928_v50 }
 0x37b   : > { %v4591_v3 = vpop.f32.mrf.mxu1  ;;  %v10075_v54 = vpop.f32.mrf.mxu0 }
 0x37c   : > { %10651 = vst [vmem:[#allocation23_spill] sm:$0xff] %v10073_v7  ;;  %10652 = vst [vmem:[#allocation24_spill] sm:$0xff] %v10075_v54  ;;  %v10078_v25 = vadd.f32 %v4591_v3, %v9933_v16 }
 0x37d   : > { %v7856_v21 = vpop.f32.mrf.mxu1  ;;  %v10080_v13 = vpop.f32.mrf.mxu0 }
 0x37e   : > { %10653 = vst [vmem:[#allocation29_spill] sm:$0xff] %v10078_v25  ;;  %10654 = vst [vmem:[#allocation64_spill] sm:$0xff] %v10080_v13 }
 0x37f   : > { %v5088_v52 = vpop.f32.mrf.mxu1  ;;  %v10082_v60 = vpop.f32.mrf.mxu0 }
 0x380   : > { %10655 = vst [vmem:[#allocation77_spill] sm:$0xff] %v10082_v60 }
 0x381   : > { %v7857_v62 = vpop.f32.mrf.mxu1  ;;  %v10084_v48 = vpop.f32.mrf.mxu0 }
 0x382   : > { %10656 = vst [vmem:[#allocation25_spill] sm:$0xff] %v10084_v48 }
 0x383   : > { %v10086_v15 = vpop.f32.mrf.mxu1  ;;  %v7904_v0 = vpop.f32.mrf.mxu0 }
 0x385   : > { %v10088_v50 = vpop.f32.mrf.mxu1  ;;  %v5394_v1 = vpop.f32.mrf.mxu0 }
 0x387   : > { %v10090_v7 = vpop.f32.mrf.mxu1  ;;  %v7905_v54 = vpop.f32.mrf.mxu0 }
 0x389   : > { %v10092_v16 = vpop.f32.mrf.mxu1  ;;  %v10094_v3 = vpop.f32.mrf.mxu0 }
 0x38b   : > { %v10096_v25 = vpop.f32.mrf.mxu1  ;;  %v10098_v13 = vpop.f32.mrf.mxu0 }
 0x38d   : > { %v10100_v60 = vpop.f32.mrf.mxu1  ;;  %v10102_v48 = vpop.f32.mrf.mxu0 }
 0x38f   : > { %v10104_v56 = vpop.f32.mrf.mxu1  ;;  %v10108_v34 = vpop.f32.mrf.mxu0 }
 0x391   : > { %v10106_v11 = vpop.f32.mrf.mxu1  ;;  %v10114_v9 = vpop.f32.mrf.mxu0 }
 0x393   : > { %v10110_v51 = vpop.f32.mrf.mxu1  ;;  %v10120_v8 = vpop.f32.mrf.mxu0 }
 0x395   : > { %v10112_v46 = vpop.f32.mrf.mxu1  ;;  %v10126_v2 = vpop.f32.mrf.mxu0 }
 0x396   : > { %10657 = vst [vmem:[#allocation26_spill] sm:$0xff] %v10112_v46 }
 0x397   : > { %v10116_v17 = vpop.f32.mrf.mxu1  ;;  %v10132_v44 = vpop.f32.mrf.mxu0 }
 0x398   : > { %10658 = vst [vmem:[#allocation27_spill] sm:$0xff] %v10116_v17 }
 0x399   : > { %v10118_v20 = vpop.f32.mrf.mxu1  ;;  %v10138_v33 = vpop.f32.mrf.mxu0 }
 0x39a   : > { %10659 = vst [vmem:[#allocation28_spill] sm:$0xff] %v10118_v20 }
 0x39b   : > { %v10122_v55 = vpop.f32.mrf.mxu1 }
 0x39c   : > { %10660 = vst [vmem:[#allocation65_spill] sm:$0xff] %v10122_v55  ;;  %v10144_v55 = vpop.f32.mrf.mxu0 }
 0x39d   : > { %v10124_v36 = vpop.f32.mrf.mxu1  ;;  %10668 = vst [vmem:[#allocation37_spill] sm:$0xff] %v10144_v55 }
 0x39e   : > { %10661 = vst [vmem:[#allocation46_spill] sm:$0xff] %v10124_v36 }
 0x39f   : > { %v10128_v6 = vpop.f32.mrf.mxu1 }
 0x3a0   : > { %10662 = vst [vmem:[#allocation80_spill] sm:$0xff] %v10128_v6 }
 0x3a1   : > { %v10130_v53 = vpop.f32.mrf.mxu1 }
 0x3a2   : > { %10663 = vst [vmem:[#allocation30_spill] sm:$0xff] %v10130_v53  ;;  %v10150_v53 = vpop.f32.mrf.mxu0 }
 0x3a3   : > { %v10134_v31 = vpop.f32.mrf.mxu1  ;;  %10671 = vst [vmem:[#allocation34_spill] sm:$0xff] %v10150_v53 }
 0x3a4   : > { %10664 = vst [vmem:[#allocation67_spill] sm:$0xff] %v10134_v31 }
 0x3a5   : > { %v10136_v14 = vpop.f32.mrf.mxu1 }
 0x3a6   : > { %10665 = vst [vmem:[#allocation68_spill] sm:$0xff] %v10136_v14  ;;  %v10156_v14 = vpop.f32.mrf.mxu0 }
 0x3a7   : > { %v10140_v20 = vpop.f32.mrf.mxu1  ;;  %10674 = vst [vmem:[#allocation71_spill] sm:$0xff] %v10156_v14  ;;  %v6671_v14 = vld [vmem:[%s8241_s20 + $0x8] sm:$0xff]  }
 0x3a8   : > { %10666 = vst [vmem:[#allocation31_spill] sm:$0xff] %v10140_v20 }
 0x3a9   : > { %v10142_v42 = vpop.f32.mrf.mxu1 }
 0x3aa   : > { %10667 = vst [vmem:[#allocation32_spill] sm:$0xff] %v10142_v42  ;;  %v10162_v42 = vpop.f32.mrf.mxu0 }
 0x3ab   : > { %v10146_v36 = vpop.f32.mrf.mxu1  ;;  %10677 = vst [vmem:[#allocation73_spill] sm:$0xff] %v10162_v42  ;;  %v6593_v42 = vld [vmem:[%s8241_s20] sm:$0xff]  }
 0x3ac   : > { %10669 = vst [vmem:[#allocation70_spill] sm:$0xff] %v10146_v36  ;;  %v10172_v53 = vpop.f32.mrf.mxu0 }
 0x3ad   : > { %v10148_v6 = vpop.f32.mrf.mxu1 }
 0x3ae   : > { %10670 = vst [vmem:[#allocation33_spill] sm:$0xff] %v10148_v6  ;;  %v4911_v6 = vadd.f32 %v9935_v23, %v9921_v26  ;;  %v10183_v26 = vld [vmem:[%s10455_s4] ss:$0 sm:$0xff]  ;;  %v4910_v23 = vadd.f32 %v9950_v61, %v9938_v37  ;;  %v4913_v37 = vadd.f32 %v9960_v38, %v9948_v22 }
 0x3af   : > { %v10152_v17 = vpop.f32.mrf.mxu1 }
 0x3b0   : > { %10672 = vst [vmem:[#allocation35_spill] sm:$0xff] %v10152_v17  ;;  %v4909_v17 = vadd.f32 %v9940_v5, %v9926_v63  ;;  %v6598_v63 = vunpack.c.l.bf16 %v6671_v14  ;;  %v5219_v38 = vadd.f32 %v10090_v7, %v4913_v37 }
 0x3b1   : > { %v10154_v31 = vpop.f32.mrf.mxu1 }
 0x3b2   : > { %10673 = vst [vmem:[#allocation36_spill] sm:$0xff] %v10154_v31  ;;  %v5217_v31 = vadd.f32 %v7856_v21, %v4911_v6  ;;  %v10187_v21 = vpop.f32.mrf.mxu0 }
 0x3b3   : > { %v10158_v58 = vpop.f32.mrf.mxu1 }
 0x3b4   : > { %10675 = vst [vmem:[#allocation38_spill] sm:$0xff] %v10158_v58  ;;  %v5523_v58 = vadd.f32 %v7904_v0, %v5217_v31  ;;  %v6594_v31 = vunpack.c.l.bf16 %v6593_v42 }
 0x3b5   : > { %v10160_v20 = vpop.f32.mrf.mxu1 }
 0x3b6   : > { %10676 = vst [vmem:[#allocation72_spill] sm:$0xff] %v10160_v20  ;;  %v4912_v20 = vadd.f32 %v9945_v4, %v9931_v24  ;;  %v4915_v24 = vadd.f32 %v9955_v43, %v9943_v32  ;;  %v10198_v32 = vpop.f32.mrf.mxu0 }
 0x3b7   : > { %v10164_v55 = vpop.f32.mrf.mxu1 }
 0x3b8   : > { %10678 = vst [vmem:[#allocation39_spill] sm:$0xff] %v10164_v55  ;;  %v5215_v55 = vadd.f32 %v5088_v52, %v4909_v17  ;;  %v5218_v6 = vadd.f32 %v7857_v62, %v4912_v20  ;;  %v5216_v52 = vadd.f32 %v10086_v15, %v4910_v23  ;;  %v5221_v61 = vadd.f32 %v10088_v50, %v4915_v24 }
 0x3b9   : > { %v10168_v36 = vpop.f32.mrf.mxu1  ;;  %v6595_v62 = vunpack.c.h.bf16 %v6593_v42 }
 0x3ba   : > { %10679 = vst [vmem:[#allocation40_spill] sm:$0xff] %v10168_v36  ;;  %v5521_v5 = vadd.f32 %v5394_v1, %v5215_v55  ;;  %v5524_v17 = vadd.f32 %v7905_v54, %v5218_v6  ;;  %v10202_v54 = vld [vmem:[%s8241_s20 + $0x18] sm:$0xff]   ;;  %v5527_v22 = vadd.f32 %v10098_v13, %v5221_v61  ;;  %v4917_v61 = vadd.f32 %v9980_v28, %v9968_v59 }
 0x3bb   : > { %v10175_v49 = vpop.f32.mrf.mxu1  ;;  %v6606_v23 = vunpack.c.l.bf16 %v10202_v54  ;;  %v4920_v59 = vadd.f32 %v9985_v41, %v9973_v10 }
 0x3bc   : > { %10680 = vst [vmem:[#allocation45_spill] sm:$0xff] %v10175_v49 }
 0x3bd   : > { %v7952_v46 = vpop.f32.mrf.mxu1  ;;  %v5226_v41 = vadd.f32 %v10106_v11, %v4920_v59  ;;  %v10688_v59 = vld [vmem:[#allocation34_spill] sm:$0xff] }
 0x3be   : > { %v5829_v49 = vadd.f32 %v7952_v46, %v5523_v58  ;;  %v6599_v58 = vunpack.c.h.bf16 %v6671_v14  ;;  %v5522_v46 = vadd.f32 %v10094_v3, %v5216_v52 }
 0x3bf   : > { %v5700_v4 = vpop.f32.mrf.mxu1 }
 0x3c0   : > { %v5868_v0 = vadd.f32 %v10183_v26, %v5829_v49  ;;  %v5827_v36 = vadd.f32 %v5700_v4, %v5521_v5  ;;  %v4916_v49 = vadd.f32 %v9965_v19, %v9953_v45  ;;  %v4914_v45 = vadd.f32 %v9970_v39, %v9958_v40  ;;  %v10222_v5 = vpop.f32.mrf.mxu0 }
 0x3c1   : > { %v7953_v55 = vpop.f32.mrf.mxu1  ;;  %v5525_v19 = vadd.f32 %v10102_v48, %v5219_v38 }
 0x3c2   : > { %v5964_v43 = vadd.f32 %v6598_v63, %v5868_v0  ;;  %v5866_v20 = vadd.f32 %v10183_v26, %v5827_v36  ;;  %v5830_v15 = vadd.f32 %v7953_v55, %v5524_v17  ;;  %v10215_v63 = vld [vmem:[%s8241_s20 + $0x10] sm:$0xff]   ;;  %v5222_v7 = vadd.f32 %v10092_v16, %v4916_v49  ;;  %v10238_v55 = vpop.f32.mrf.mxu0 }
 0x3c3   : > { %v5703_v14 = vpop.f32.mrf.mxu1  ;;  %v5220_v39 = vadd.f32 %v10096_v25, %v4914_v45  ;;  %v6602_v16 = vunpack.c.l.bf16 %v10215_v63  ;;  %v6607_v25 = vunpack.c.h.bf16 %v10202_v54  ;;  %v6603_v54 = vunpack.c.h.bf16 %v10215_v63 }
 0x3c4   : > { %v5996_v50 = vmax.f32 %v5964_v43, 0.0  ;;  %v5962_v36 = vadd.f32 %v6594_v31, %v5866_v20  ;;  %v5869_v1 = vadd.f32 %v10183_v26, %v5830_v15  ;;  %v5828_v3 = vadd.f32 %v5703_v14, %v5522_v46  ;;  %v10243_v15 = vld [vmem:[%s8241_s20 + $0x28] sm:$0xff]  }
 0x3c5   : > { %v7956_v13 = vpop.f32.mrf.mxu1  ;;  %v4919_v31 = vadd.f32 %v9975_v30, %v9963_v47  ;;  %v5528_v40 = vadd.f32 %v10108_v34, %v5222_v7  ;;  %v5526_v47 = vadd.f32 %v10114_v9, %v5220_v39  ;;  %v5223_v9 = vadd.f32 %v10104_v56, %v4917_v61 }
 0x3c6   : > { %6028 = vst [vmem:[%s10211_s6 + $0x10] sm:$0xff] %v5996_v50  ;;  %v5994_v42 = vmax.f32 %v5962_v36, 0.0  ;;  %v5965_v6 = vadd.f32 %v6599_v58, %v5869_v1  ;;  %v5867_v24 = vadd.f32 %v10183_v26, %v5828_v3  ;;  %v5833_v4 = vadd.f32 %v7956_v13, %v5527_v22  ;;  %v10260_v36 = vpop.f32.mrf.mxu0 }
 0x3c7   : > { %v5716_v48 = vpop.f32.mrf.mxu1  ;;  %v5225_v30 = vadd.f32 %v10100_v60, %v4919_v31  ;;  %v4918_v50 = vadd.f32 %v9990_v18, %v9978_v12  ;;  %v5529_v10 = vadd.f32 %v10126_v2, %v5223_v9  ;;  %v6614_v56 = vunpack.c.l.bf16 %v10243_v15  ;;  %v10689_v9 = vld [vmem:[#allocation28_spill] sm:$0xff] }
 0x3c8   : > { %6026 = vst [vmem:[%s10211_s6] sm:$0xff] %v5994_v42  ;;  %v5997_v17 = vmax.f32 %v5965_v6, 0.0  ;;  %v5963_v52 = vadd.f32 %v6595_v62, %v5867_v24  ;;  %v5872_v0 = vadd.f32 %v10183_v26, %v5833_v4  ;;  %v5831_v37 = vadd.f32 %v5716_v48, %v5525_v19  ;;  %v10253_v62 = vld [vmem:[%s8241_s20 + $0x20] sm:$0xff]   ;;  %v10276_v4 = vpop.f32.mrf.mxu0 }
 0x3c9   : > { %v7957_v34 = vpop.f32.mrf.mxu1  ;;  %v5531_v28 = vadd.f32 %v10120_v8, %v5225_v30  ;;  %v4923_v19 = vadd.f32 %v9995_v29, %v9983_v27  ;;  %v5532_v12 = vadd.f32 %v10132_v44, %v5226_v41  ;;  %v5224_v18 = vadd.f32 %v10110_v51, %v4918_v50  ;;  %v10681_v29 = vld [vmem:[#allocation26_spill] sm:$0xff]  ;;  %v10691_v41 = vld [vmem:[#allocation3_spill] sm:$0xff] }
 0x3ca   : > { %6029 = vst [vmem:[%s10211_s6 + $0x18] sm:$0xff] %v5997_v17  ;;  %v5995_v58 = vmax.f32 %v5963_v52, 0.0  ;;  %v5968_v46 = vadd.f32 %v6606_v23, %v5872_v0  ;;  %v5870_v43 = vadd.f32 %v10183_v26, %v5831_v37  ;;  %v5834_v20 = vadd.f32 %v7957_v34, %v5528_v40  ;;  %v10684_v17 = vld [vmem:[#allocation37_spill] sm:$0xff]  ;;  %v10685_v0 = vld [vmem:[#allocation27_spill] sm:$0xff] }
 0x3cb   : > { %v5719_v60 = vpop.f32.mrf.mxu1  ;;  %v6610_v11 = vunpack.c.l.bf16 %v10253_v62  ;;  %v4921_v6 = vadd.f32 %v10000_v57, %v9988_v35  ;;  %v5530_v27 = vadd.f32 %v10138_v33, %v5224_v18  ;;  %v5229_v44 = vadd.f32 %v10681_v29, %v4923_v19  ;;  %v10682_v35 = vld [vmem:[#allocation9_spill] sm:$0xff]  ;;  %v10683_v57 = vld [vmem:[#allocation11_spill] sm:$0xff] }
 0x3cc   : > { %6027 = vst [vmem:[%s10211_s6 + $0x8] sm:$0xff] %v5995_v58  ;;  %v6000_v49 = vmax.f32 %v5968_v46, 0.0  ;;  %v5966_v22 = vadd.f32 %v6602_v16, %v5870_v43  ;;  %v5873_v38 = vadd.f32 %v10183_v26, %v5834_v20  ;;  %v5832_v14 = vadd.f32 %v5719_v60, %v5526_v47  ;;  %v10281_v16 = vld [vmem:[%s8241_s20 + $0x38] sm:$0xff]   ;;  %v10291_v46 = vld [vmem:[%s8241_s20 + $0x30] sm:$0xff]   ;;  %v10686_v43 = vld [vmem:[#allocation10_spill] sm:$0xff] }
 0x3cd   : > { %v7960_v8 = vpop.f32.mrf.mxu1  ;;  %v6615_v51 = vunpack.c.h.bf16 %v10243_v15  ;;  %v4924_v33 = vadd.f32 %v10683_v57, %v10682_v35  ;;  %v5535_v52 = vadd.f32 %v10684_v17, %v5229_v44  ;;  %v5227_v37 = vadd.f32 %v10685_v0, %v4921_v6  ;;  %v10687_v20 = vld [vmem:[#allocation60_spill] sm:$0xff]  ;;  %v10319_v35 = vld [vmem:[%s8241_s20 + $0x48] sm:$0xff]  }
 0x3ce   : > { %6032 = vst [vmem:[%s10211_s6 + $0x30] sm:$0xff] %v6000_v49  ;;  %v5998_v1 = vmax.f32 %v5966_v22, 0.0  ;;  %v5969_v3 = vadd.f32 %v6607_v25, %v5873_v38  ;;  %v5871_v63 = vadd.f32 %v10183_v26, %v5832_v14  ;;  %v5837_v45 = vadd.f32 %v7960_v8, %v5531_v28  ;;  %v10298_v22 = vpop.f32.mrf.mxu0  ;;  %v10698_v57 = vld [vmem:[#allocation56_spill] sm:$0xff] }
 0x3cf   : > { %v5732_v2 = vpop.f32.mrf.mxu1  ;;  %v6611_v47 = vunpack.c.h.bf16 %v10253_v62  ;;  %v4922_v15 = vadd.f32 %v10687_v20, %v10686_v43  ;;  %v5533_v28 = vadd.f32 %v10688_v59, %v5227_v37  ;;  %v5230_v60 = vadd.f32 %v10689_v9, %v4924_v33  ;;  %v10699_v33 = vld [vmem:[#allocation57_spill] sm:$0xff]  ;;  %v10700_v0 = vld [vmem:[#allocation80_spill] sm:$0xff]  ;;  %v10702_v20 = vld [vmem:[#allocation14_spill] sm:$0xff] }
 0x3d0   : > { %6030 = vst [vmem:[%s10211_s6 + $0x20] sm:$0xff] %v5998_v1  ;;  %v6001_v7 = vmax.f32 %v5969_v3, 0.0  ;;  %v5967_v13 = vadd.f32 %v6603_v54, %v5871_v63  ;;  %v5876_v23 = vadd.f32 %v10183_v26, %v5837_v45  ;;  %v5835_v42 = vadd.f32 %v5732_v2, %v5529_v10  ;;  %v10690_v10 = vld [vmem:[#allocation5_spill] sm:$0xff]  ;;  %v10701_v43 = vld [vmem:[#allocation4_spill] sm:$0xff]  ;;  %v10703_v59 = vld [vmem:[#allocation30_spill] sm:$0xff] }
 0x3d1   : > { %v7961_v24 = vpop.f32.mrf.mxu1  ;;  %v6622_v49 = vunpack.c.l.bf16 %v10281_v16  ;;  %v4927_v8 = vadd.f32 %v10691_v41, %v10690_v10  ;;  %v10693_v3 = vld [vmem:[#allocation65_spill] sm:$0xff]  ;;  %v6618_v19 = vunpack.c.l.bf16 %v10291_v46  ;;  %v4928_v17 = vadd.f32 %v10699_v33, %v10698_v57 }
 0x3d2   : > { %6033 = vst [vmem:[%s10211_s6 + $0x38] sm:$0xff] %v6001_v7  ;;  %v5999_v31 = vmax.f32 %v5967_v13, 0.0  ;;  %v5972_v40 = vadd.f32 %v6614_v56, %v5876_v23  ;;  %v5874_v39 = vadd.f32 %v10183_v26, %v5835_v42  ;;  %v5838_v48 = vadd.f32 %v7961_v24, %v5532_v12  ;;  %v10692_v56 = vld [vmem:[#allocation71_spill] sm:$0xff]  ;;  %v10694_v7 = vld [vmem:[#allocation12_spill] sm:$0xff]  ;;  %v10695_v13 = vld [vmem:[#allocation13_spill] sm:$0xff] }
 0x3d3   : > { %v5735_v61 = vpop.f32.mrf.mxu1  ;;  %v5536_v1 = vadd.f32 %v10692_v56, %v5230_v60  ;;  %v5228_v63 = vadd.f32 %v10693_v3, %v4922_v15  ;;  %v4925_v23 = vadd.f32 %v10695_v13, %v10694_v7  ;;  %v10696_v42 = vld [vmem:[#allocation73_spill] sm:$0xff]  ;;  %v6623_v24 = vunpack.c.h.bf16 %v10281_v16  ;;  %v10709_v7 = vld [vmem:[#allocation68_spill] sm:$0xff] }
 0x3d4   : > { %6031 = vst [vmem:[%s10211_s6 + $0x28] sm:$0xff] %v5999_v31  ;;  %v6004_v30 = vmax.f32 %v5972_v40, 0.0  ;;  %v5970_v34 = vadd.f32 %v6610_v11, %v5874_v39  ;;  %v5877_v25 = vadd.f32 %v10183_v26, %v5838_v48  ;;  %v5836_v58 = vadd.f32 %v5735_v61, %v5530_v27  ;;  %v10697_v27 = vld [vmem:[#allocation46_spill] sm:$0xff] }
 0x3d5   : > { %v7964_v54 = vpop.f32.mrf.mxu1  ;;  %v5534_v6 = vadd.f32 %v10696_v42, %v5228_v63  ;;  %v5233_v29 = vadd.f32 %v10697_v27, %v4927_v8  ;;  %v5231_v37 = vadd.f32 %v10700_v0, %v4925_v23  ;;  %v6619_v61 = vunpack.c.h.bf16 %v10291_v46 }
 0x3d6   : > { %6036 = vst [vmem:[%s10211_s6 + $0x50] sm:$0xff] %v6004_v30  ;;  %v6002_v38 = vmax.f32 %v5970_v34, 0.0  ;;  %v5973_v14 = vadd.f32 %v6615_v51, %v5877_v25  ;;  %v5875_v62 = vadd.f32 %v10183_v26, %v5836_v58  ;;  %v5841_v50 = vadd.f32 %v7964_v54, %v5535_v52  ;;  %v10314_v51 = vpop.f32.mrf.mxu0  ;;  %v10329_v58 = vld [vmem:[%s8241_s20 + $0x40] sm:$0xff]  }
 0x3d7   : > { %v5748_v45 = vpop.f32.mrf.mxu1  ;;  %v5539_v52 = vadd.f32 %v10172_v53, %v5233_v29  ;;  %v4926_v15 = vadd.f32 %v10702_v20, %v10701_v43  ;;  %v5537_v53 = vadd.f32 %v10187_v21, %v5231_v37  ;;  %v6630_v60 = vunpack.c.l.bf16 %v10319_v35  ;;  %v10706_v21 = vld [vmem:[#allocation67_spill] sm:$0xff] }
 0x3d8   : > { %6034 = vst [vmem:[%s10211_s6 + $0x40] sm:$0xff] %v6002_v38  ;;  %v6005_v12 = vmax.f32 %v5973_v14, 0.0  ;;  %v5971_v18 = vadd.f32 %v6611_v47, %v5875_v62  ;;  %v5880_v2 = vadd.f32 %v10183_v26, %v5841_v50  ;;  %v5839_v11 = vadd.f32 %v5748_v45, %v5533_v28  ;;  %v10336_v46 = vpop.f32.mrf.mxu0  ;;  %v10704_v62 = vld [vmem:[#allocation63_spill] sm:$0xff]  ;;  %v10705_v50 = vld [vmem:[#allocation58_spill] sm:$0xff] }
 0x3d9   : > { %v7965_v44 = vpop.f32.mrf.mxu1  ;;  %v5234_v28 = vadd.f32 %v10703_v59, %v4928_v17  ;;  %v4931_v10 = vadd.f32 %v10705_v50, %v10704_v62  ;;  %v5232_v8 = vadd.f32 %v10706_v21, %v4926_v15  ;;  %v6631_v23 = vunpack.c.h.bf16 %v10319_v35 }
 0x3da   : > { %6037 = vst [vmem:[%s10211_s6 + $0x58] sm:$0xff] %v6005_v12  ;;  %v6003_v31 = vmax.f32 %v5971_v18, 0.0  ;;  %v5976_v40 = vadd.f32 %v6622_v49, %v5880_v2  ;;  %v5878_v39 = vadd.f32 %v10183_v26, %v5839_v11  ;;  %v5842_v48 = vadd.f32 %v7965_v44, %v5536_v1  ;;  %v10707_v12 = vld [vmem:[#allocation6_spill] sm:$0xff]  ;;  %v10352_v42 = vpop.f32.mrf.mxu0 }
 0x3db   : > { %v5751_v16 = vpop.f32.mrf.mxu1  ;;  %v5540_v41 = vadd.f32 %v10198_v32, %v5234_v28  ;;  %v6626_v1 = vunpack.c.l.bf16 %v10329_v58  ;;  %v10708_v18 = vld [vmem:[#allocation66_spill] sm:$0xff]  ;;  %v5538_v11 = vadd.f32 %v10222_v5, %v5232_v8  ;;  %v5237_v32 = vadd.f32 %v10709_v7, %v4931_v10  ;;  %v10719_v8 = vld [vmem:[#allocation17_spill] sm:$0xff] }
 0x3dc   : > { %6035 = vst [vmem:[%s10211_s6 + $0x48] sm:$0xff] %v6003_v31  ;;  %v6008_v47 = vmax.f32 %v5976_v40, 0.0  ;;  %v5974_v30 = vadd.f32 %v6618_v19, %v5878_v39  ;;  %v5881_v34 = vadd.f32 %v10183_v26, %v5842_v48  ;;  %v5840_v25 = vadd.f32 %v5751_v16, %v5534_v6  ;;  %v10710_v31 = vld [vmem:[#allocation15_spill] sm:$0xff]  ;;  %v10711_v40 = vld [vmem:[#allocation16_spill] sm:$0xff] }
 0x3dd   : > { %v7968_v9 = vpop.f32.mrf.mxu1  ;;  %v4929_v2 = vadd.f32 %v10708_v18, %v10707_v12  ;;  %v4932_v5 = vadd.f32 %v10711_v40, %v10710_v31  ;;  %v5543_v39 = vadd.f32 %v10238_v55, %v5237_v32  ;;  %v10712_v48 = vld [vmem:[#allocation31_spill] sm:$0xff]  ;;  %v6627_v33 = vunpack.c.h.bf16 %v10329_v58  ;;  %v5493_v58 = vpop.f32.mrf.mxu0  ;;  %v10391_v32 = vld [vmem:[%s8241_s20 + $0x68] sm:$0xff]  }
 0x3de   : > { %6040 = vst [vmem:[%s10211_s6 + $0x70] sm:$0xff] %v6008_v47  ;;  %v6006_v54 = vmax.f32 %v5974_v30, 0.0  ;;  %v5977_v49 = vadd.f32 %v6623_v24, %v5881_v34  ;;  %v5879_v38 = vadd.f32 %v10183_v26, %v5840_v25  ;;  %v5845_v14 = vadd.f32 %v7968_v9, %v5539_v52  ;;  %v10357_v24 = vld [vmem:[%s8241_s20 + $0x58] sm:$0xff]   ;;  %v10367_v16 = vld [vmem:[%s8241_s20 + $0x50] sm:$0xff]   ;;  %v10714_v47 = vld [vmem:[#allocation21_spill] sm:$0xff] }
 0x3df   : > { %v5764_v56 = vpop.f32.mrf.mxu1  ;;  %v5235_v57 = vadd.f32 %v10712_v48, %v4929_v2  ;;  %v10715_v34 = vld [vmem:[#allocation32_spill] sm:$0xff]  ;;  %v6638_v20 = vunpack.c.l.bf16 %v10357_v24  ;;  %v10716_v9 = vld [vmem:[#allocation7_spill] sm:$0xff]  ;;  %v6634_v62 = vunpack.c.l.bf16 %v10367_v16  ;;  %v7932_v12 = vpop.f32.mrf.mxu0  ;;  %v10401_v48 = vld [vmem:[%s8241_s20 + $0x60] sm:$0xff]  }
 0x3e0   : > { %6038 = vst [vmem:[%s10211_s6 + $0x60] sm:$0xff] %v6006_v54  ;;  %v6009_v3 = vmax.f32 %v5977_v49, 0.0  ;;  %v5975_v63 = vadd.f32 %v6619_v61, %v5879_v38  ;;  %v5884_v45 = vadd.f32 %v10183_v26, %v5845_v14  ;;  %v5843_v19 = vadd.f32 %v5764_v56, %v5537_v53  ;;  %v10713_v61 = vld [vmem:[#allocation20_spill] sm:$0xff]  ;;  %v10718_v38 = vld [vmem:[#allocation70_spill] sm:$0xff]  ;;  %v10720_v56 = vld [vmem:[#allocation19_spill] sm:$0xff] }
 0x3e1   : > { %v7969_v13 = vpop.f32.mrf.mxu1  ;;  %v4930_v30 = vadd.f32 %v10714_v47, %v10713_v61  ;;  %v5541_v55 = vadd.f32 %v10260_v36, %v5235_v57  ;;  %v5238_v25 = vadd.f32 %v10715_v34, %v4932_v5  ;;  %v10725_v57 = vld [vmem:[#allocation18_spill] sm:$0xff]  ;;  %v10728_v34 = vld [vmem:[#allocation61_spill] sm:$0xff] }
 0x3e2   : > { %6041 = vst [vmem:[%s10211_s6 + $0x78] sm:$0xff] %v6009_v3  ;;  %v6007_v6 = vmax.f32 %v5975_v63, 0.0  ;;  %v5980_v27 = vadd.f32 %v6630_v60, %v5884_v45  ;;  %v5882_v29 = vadd.f32 %v10183_v26, %v5843_v19  ;;  %v5846_v44 = vadd.f32 %v7969_v13, %v5540_v41  ;;  %v10717_v60 = vld [vmem:[#allocation69_spill] sm:$0xff]  ;;  %v10722_v13 = vld [vmem:[#allocation59_spill] sm:$0xff] }
 0x3e3   : > { %v5767_v35 = vpop.f32.mrf.mxu1  ;;  %v4935_v54 = vadd.f32 %v10717_v60, %v10716_v9  ;;  %v5544_v49 = vadd.f32 %v10276_v4, %v5238_v25  ;;  %v5236_v36 = vadd.f32 %v10718_v38, %v4930_v30  ;;  %v10721_v63 = vld [vmem:[#allocation33_spill] sm:$0xff]  ;;  %v6639_v19 = vunpack.c.h.bf16 %v10357_v24  ;;  %v10729_v25 = vld [vmem:[#allocation24_spill] sm:$0xff] }
 0x3e4   : > { %6039 = vst [vmem:[%s10211_s6 + $0x68] sm:$0xff] %v6007_v6  ;;  %v6012_v17 = vmax.f32 %v5980_v27, 0.0  ;;  %v5978_v52 = vadd.f32 %v6626_v1, %v5882_v29  ;;  %v5885_v0 = vadd.f32 %v10183_v26, %v5846_v44  ;;  %v5844_v37 = vadd.f32 %v5767_v35, %v5538_v11  ;;  %v10724_v27 = vld [vmem:[#allocation35_spill] sm:$0xff]  ;;  %v10726_v35 = vld [vmem:[#allocation62_spill] sm:$0xff]  ;;  %v10732_v38 = vld [vmem:[#allocation64_spill] sm:$0xff] }
 0x3e5   : > { %v7972_v43 = vpop.f32.mrf.mxu1  ;;  %v4933_v1 = vadd.f32 %v10720_v56, %v10719_v8  ;;  %v5542_v3 = vadd.f32 %v10298_v22, %v5236_v36  ;;  %v5241_v4 = vadd.f32 %v10721_v63, %v4935_v54  ;;  %v6635_v24 = vunpack.c.h.bf16 %v10367_v16  ;;  %v5506_v16 = vpop.f32.mrf.mxu0  ;;  %v10734_v63 = vld [vmem:[#allocation23_spill] sm:$0xff] }
 0x3e6   : > { %6044 = vst [vmem:[%s10211_s6 + $0x90] sm:$0xff] %v6012_v17  ;;  %v6010_v15 = vmax.f32 %v5978_v52, 0.0  ;;  %v5981_v53 = vadd.f32 %v6631_v23, %v5885_v0  ;;  %v5883_v59 = vadd.f32 %v10183_v26, %v5844_v37  ;;  %v5849_v28 = vadd.f32 %v7972_v43, %v5543_v39  ;;  %v10723_v23 = vld [vmem:[#allocation22_spill] sm:$0xff]  ;;  %v10727_v17 = vld [vmem:[#allocation36_spill] sm:$0xff] }
 0x3e7   : > { %v5780_v14 = vpop.f32.mrf.mxu1  ;;  %v4936_v6 = vadd.f32 %v10723_v23, %v10722_v13  ;;  %v5547_v22 = vadd.f32 %v10314_v51, %v5241_v4  ;;  %v5239_v29 = vadd.f32 %v10724_v27, %v4933_v1  ;;  %v6646_v37 = vunpack.c.l.bf16 %v10391_v32  ;;  %v10735_v4 = vld [vmem:[#allocation77_spill] sm:$0xff] }
 0x3e8   : > { %6042 = vst [vmem:[%s10211_s6 + $0x80] sm:$0xff] %v6010_v15  ;;  %v6013_v50 = vmax.f32 %v5981_v53, 0.0  ;;  %v5979_v10 = vadd.f32 %v6627_v33, %v5883_v59  ;;  %v5888_v41 = vadd.f32 %v10183_v26, %v5849_v28  ;;  %v5847_v21 = vadd.f32 %v5780_v14, %v5541_v55  ;;  %v10730_v15 = vld [vmem:[#allocation38_spill] sm:$0xff]  ;;  %v10738_v27 = vld [vmem:[#allocation25_spill] sm:$0xff] }
 0x3e9   : > { %v7973_v45 = vpop.f32.mrf.mxu1  ;;  %v4934_v33 = vadd.f32 %v10726_v35, %v10725_v57  ;;  %v5545_v51 = vadd.f32 %v10336_v46, %v5239_v29  ;;  %v5242_v52 = vadd.f32 %v10727_v17, %v4936_v6  ;;  %v4939_v43 = vadd.f32 %v10729_v25, %v10728_v34  ;;  %v6684_v6 = vld [vmem:[%s8241_s20 + $0x70] sm:$0xff]  }
 0x3ea   : > { %6045 = vst [vmem:[%s10211_s6 + $0x98] sm:$0xff] %v6013_v50  ;;  %v6011_v18 = vmax.f32 %v5979_v10, 0.0  ;;  %v5984_v2 = vadd.f32 %v6638_v20, %v5888_v41  ;;  %v5886_v11 = vadd.f32 %v10183_v26, %v5847_v21  ;;  %v5850_v7 = vadd.f32 %v7973_v45, %v5544_v49  ;;  %v10731_v49 = vld [vmem:[#allocation74_spill] sm:$0xff]  ;;  %v7933_v41 = vpop.f32.mrf.mxu0 }
 0x3eb   : > { %v5783_v44 = vpop.f32.mrf.mxu1  ;;  %v5548_v20 = vadd.f32 %v10352_v42, %v5242_v52  ;;  %v5240_v46 = vadd.f32 %v10730_v15, %v4934_v33  ;;  %v6642_v59 = vunpack.c.l.bf16 %v10401_v48  ;;  %v4937_v36 = vadd.f32 %v10732_v38, %v10731_v49  ;;  %v10740_v33 = vld [vmem:[#allocation45_spill] sm:$0xff] }
 0x3ec   : > { %6043 = vst [vmem:[%s10211_s6 + $0x88] sm:$0xff] %v6011_v18  ;;  %v6016_v31 = vmax.f32 %v5984_v2, 0.0  ;;  %v5982_v40 = vadd.f32 %v6634_v62, %v5886_v11  ;;  %v5889_v5 = vadd.f32 %v10183_v26, %v5850_v7  ;;  %v5848_v39 = vadd.f32 %v5783_v44, %v5542_v3  ;;  %v10733_v62 = vld [vmem:[#allocation72_spill] sm:$0xff] }
 0x3ed   : > { %v7976_v0 = vpop.f32.mrf.mxu1  ;;  %v5546_v14 = vadd.f32 %v5493_v58, %v5240_v46  ;;  %v5245_v50 = vadd.f32 %v10733_v62, %v4939_v43  ;;  %v6647_v10 = vunpack.c.h.bf16 %v10391_v32  ;;  %v6685_v3 = vld [vmem:[%s8241_s20 + $0x78] sm:$0xff]   ;;  %v4940_v45 = vadd.f32 %v10735_v4, %v10734_v63 }
 0x3ee   : > { %6048 = vst [vmem:[%s10211_s6 + $0xb0] sm:$0xff] %v6016_v31  ;;  %v6014_v61 = vmax.f32 %v5982_v40, 0.0  ;;  %v5985_v47 = vadd.f32 %v6639_v19, %v5889_v5  ;;  %v5887_v30 = vadd.f32 %v10183_v26, %v5848_v39  ;;  %v5853_v55 = vadd.f32 %v7976_v0, %v5547_v22  ;;  %v10736_v19 = vld [vmem:[#allocation39_spill] sm:$0xff]  ;;  %v10737_v22 = vld [vmem:[#allocation29_spill] sm:$0xff]  ;;  %v10739_v44 = vld [vmem:[#allocation40_spill] sm:$0xff] }
 0x3ef   : > { %v5796_v53 = vpop.f32.mrf.mxu1  ;;  %v5243_v58 = vadd.f32 %v10736_v19, %v4937_v36  ;;  %v5551_v18 = vadd.f32 %v7932_v12, %v5245_v50  ;;  %v6643_v11 = vunpack.c.h.bf16 %v10401_v48  ;;  %v4938_v29 = vadd.f32 %v10738_v27, %v10737_v22  ;;  %v5509_v12 = vpop.f32.mrf.mxu0 }
 0x3f0   : > { %6046 = vst [vmem:[%s10211_s6 + $0xa0] sm:$0xff] %v6014_v61  ;;  %v6017_v28 = vmax.f32 %v5985_v47, 0.0  ;;  %v5983_v9 = vadd.f32 %v6635_v24, %v5887_v30  ;;  %v5892_v60 = vadd.f32 %v10183_v26, %v5853_v55  ;;  %v5851_v54 = vadd.f32 %v5796_v53, %v5545_v51 }
 0x3f1   : > { %v7977_v42 = vpop.f32.mrf.mxu1  ;;  %v5246_v24 = vadd.f32 %v10739_v44, %v4940_v45  ;;  %v5549_v31 = vadd.f32 %v5506_v16, %v5243_v58  ;;  %v6654_v5 = vunpack.c.l.bf16 %v6685_v3  ;;  %v5244_v51 = vadd.f32 %v10740_v33, %v4938_v29 }
 0x3f2   : > { %6049 = vst [vmem:[%s10211_s6 + $0xb8] sm:$0xff] %v6017_v28  ;;  %v6015_v21 = vmax.f32 %v5983_v9, 0.0  ;;  %v5988_v8 = vadd.f32 %v6646_v37, %v5892_v60  ;;  %v5890_v56 = vadd.f32 %v10183_v26, %v5851_v54  ;;  %v5854_v1 = vadd.f32 %v7977_v42, %v5548_v20 }
 0x3f3   : > { %v5799_v2 = vpop.f32.mrf.mxu1  ;;  %v5552_v17 = vadd.f32 %v7933_v41, %v5246_v24  ;;  %v6650_v0 = vunpack.c.l.bf16 %v6684_v6  ;;  %v5550_v30 = vadd.f32 %v5509_v12, %v5244_v51  ;;  %v6655_v34 = vunpack.c.h.bf16 %v6685_v3 }
 0x3f4   : > { %6047 = vst [vmem:[%s10211_s6 + $0xa8] sm:$0xff] %v6015_v21  ;;  %v6020_v7 = vmax.f32 %v5988_v8, 0.0  ;;  %v5986_v32 = vadd.f32 %v6642_v59, %v5890_v56  ;;  %v5893_v13 = vadd.f32 %v10183_v26, %v5854_v1  ;;  %v5852_v23 = vadd.f32 %v5799_v2, %v5546_v14 }
 0x3f5   : > { %v7980_v40 = vpop.f32.mrf.mxu1  ;;  %v6651_v53 = vunpack.c.h.bf16 %v6684_v6 }
 0x3f6   : > { %6052 = vst [vmem:[%s10211_s6 + $0xd0] sm:$0xff] %v6020_v7  ;;  %v6018_v39 = vmax.f32 %v5986_v32, 0.0  ;;  %v5989_v48 = vadd.f32 %v6647_v10, %v5893_v13  ;;  %v5891_v57 = vadd.f32 %v10183_v26, %v5852_v23  ;;  %v5857_v35 = vadd.f32 %v7980_v40, %v5551_v18 }
 0x3f7   : > { %v5812_v52 = vpop.f32.mrf.mxu1 }
 0x3f8   : > { %6050 = vst [vmem:[%s10211_s6 + $0xc0] sm:$0xff] %v6018_v39  ;;  %v6021_v37 = vmax.f32 %v5989_v48, 0.0  ;;  %v5987_v61 = vadd.f32 %v6643_v11, %v5891_v57  ;;  %v5896_v16 = vadd.f32 %v10183_v26, %v5857_v35  ;;  %v5855_v47 = vadd.f32 %v5812_v52, %v5549_v31 }
 0x3f9   : > { %v7981_v55 = vpop.f32.mrf.mxu1 }
 0x3fa   : > { %6053 = vst [vmem:[%s10211_s6 + $0xd8] sm:$0xff] %v6021_v37  ;;  %v6019_v25 = vmax.f32 %v5987_v61, 0.0  ;;  %v5992_v43 = vadd.f32 %v6654_v5, %v5896_v16  ;;  %v5894_v20 = vadd.f32 %v10183_v26, %v5855_v47  ;;  %v5858_v15 = vadd.f32 %v7981_v55, %v5552_v17 }
 0x3fb   : > { %v5815_v46 = vpop.f32.mrf.mxu1 }
 0x3fc   : > { %6051 = vst [vmem:[%s10211_s6 + $0xc8] sm:$0xff] %v6019_v25  ;;  %v6024_v59 = vmax.f32 %v5992_v43, 0.0  ;;  %v5990_v28 = vadd.f32 %v6650_v0, %v5894_v20  ;;  %v5897_v9 = vadd.f32 %v10183_v26, %v5858_v15  ;;  %v5856_v60 = vadd.f32 %v5815_v46, %v5550_v30 }
 0x3fe   : > { %6056 = vst [vmem:[%s10211_s6 + $0xf0] sm:$0xff] %v6024_v59  ;;  %v6022_v54 = vmax.f32 %v5990_v28, 0.0  ;;  %v5993_v49 = vadd.f32 %v6655_v34, %v5897_v9  ;;  %v5895_v38 = vadd.f32 %v10183_v26, %v5856_v60 }
 0x400   : > { %6054 = vst [vmem:[%s10211_s6 + $0xe0] sm:$0xff] %v6022_v54  ;;  %v6025_v36 = vmax.f32 %v5993_v49, 0.0  ;;  %v5991_v14 = vadd.f32 %v6651_v53, %v5895_v38 }
 0x402   : > { %6057 = vst [vmem:[%s10211_s6 + $0xf8] sm:$0xff] %v6025_v36  ;;  %v6023_v62 = vmax.f32 %v5991_v14, 0.0 }
 0x404   : > { %6055 = vst [vmem:[%s10211_s6 + $0xe8] sm:$0xff] %v6023_v62 }
 0x405 PF: > { %s15_s18 = sadd.s32 1, %s8159_s18  }
 0x406   : > { %p12_p4 = scmp.ge.s32.totalorder %s15_s18, 4  }
 0x408   :  { %14 = sbr.rel (!%p12_p4) target bundleno = 1 (0x1), region = 88 }

</bundles_post_ra>
